<compile_context>
chip_gen: v7x
topology: tpu7x:2x2x1
jax: 0.10.0
libtpu: 0.0.40
codegen_flags: <defaults>
</compile_context>

<pallas_src>
import functools

import jax
import jax.numpy as jnp
from jax.experimental import pallas as pl
from jax.experimental.pallas import tpu as pltpu


def _ffn_kernel_resident(x_ref, w1_ref, b1_ref, w2_ref, b2_ref, o_ref):
    # Grid: (M // tm,).  W1/W2/b1/b2 use constant index maps -> VMEM resident.
    h = jnp.dot(x_ref[...], w1_ref[...], preferred_element_type=jnp.float32)
    h = jnp.maximum(h + b1_ref[...].astype(jnp.float32), 0.0)  # relu
    # TODO(synk): training-mode dropout omitted (inference: identity).
    out = jnp.dot(h.astype(w2_ref.dtype), w2_ref[...],
                  preferred_element_type=jnp.float32)
    o_ref[...] = (out + b2_ref[...].astype(jnp.float32)).astype(o_ref.dtype)


def _ffn_kernel_tiled(x_ref, w1_ref, b1_ref, w2_ref, b2_ref, o_ref, acc_ref):
    # Grid: (M // tm, Dff // tn_ff); axis 1 (k) reduces over d_ff tiles.
    k = pl.program_id(1)

    @pl.when(k == 0)
    def _init():
        # Fold b2 into the accumulator init (saves an epilogue (tm, D) add
        # and the zero-fill).
        acc_ref[...] = jnp.broadcast_to(
            b2_ref[...].astype(jnp.float32), acc_ref.shape)

    # First matmul: native-dtype operands, f32 accumulation on the MXU.
    h = jnp.dot(x_ref[...], w1_ref[...], preferred_element_type=jnp.float32)
    h = jnp.maximum(h + b1_ref[...].astype(jnp.float32), 0.0)  # relu
    # TODO(synk): training-mode dropout omitted (inference: identity).

    # Second matmul: activation cast back to weight dtype (native MXU rate),
    # partial product accumulated into f32 scratch.
    acc_ref[...] += jnp.dot(h.astype(w2_ref.dtype), w2_ref[...],
                            preferred_element_type=jnp.float32)

    @pl.when(k == pl.num_programs(1) - 1)
    def _finalize():
        o_ref[...] = acc_ref[...].astype(o_ref.dtype)


# Weight-residency budget, conservative for v7x (64 MiB physical VMEM).
_RESIDENT_BUDGET_BYTES = 40 << 20


@functools.partial(jax.jit, static_argnames=("tm", "tn_ff", "allow_resident"))
def feed_forward(x, w1, b1, w2, b2, *, tm=256, tn_ff=512, allow_resident=True):
    """x: (batch, seq, d_model) -> (batch, seq, d_model).

    Weights are transposed relative to PyTorch nn.Linear:
    w1: (d_model, d_ff), w2: (d_ff, d_model).
    """
    B, S, D = x.shape
    Dff = w1.shape[1]
    M = B * S

    x_item = jnp.dtype(x.dtype).itemsize
    w_item = jnp.dtype(w1.dtype).itemsize

    # --- row tile: keep >= 2 steps on the parallel axis (megacore + pipeline)
    tm = max(8, min(tm, M))
    while M % tm != 0 and tm > 8:
        tm //= 2
    if M // tm < 2 and tm % 16 == 0:
        tm //= 2
    assert M % tm == 0, "batch*seq must be divisible by the row tile tm"
    assert tm % 8 == 0, "row tile must be a multiple of 8 (sublane)"

    # --- residency decision / hidden tile
    resident_bytes = (2 * 2 * D * Dff * w_item       # W1 + W2 (double-buffered)
                      + tm * Dff * 4                 # f32 activation temporary
                      + 4 * tm * D * x_item)         # x / out double buffers
    resident = bool(allow_resident) and resident_bytes <= _RESIDENT_BUDGET_BYTES
    if resident:
        tn_ff = Dff
    else:
        tn_ff = min(tn_ff, Dff)
        while Dff % tn_ff != 0 and tn_ff > 128:
            tn_ff //= 2
        assert Dff % tn_ff == 0, "d_ff must be divisible by the hidden tile"

    # --- VMEM budget from the actual footprint (headroom for compiler scratch)
    w_bufs = 2 * (D * tn_ff + tn_ff * D) * w_item
    io_bufs = 4 * tm * D * x_item
    h_tmp = tm * tn_ff * 4
    acc_bytes = 0 if resident else tm * D * 4
    bias_bytes = 2 * (tn_ff + D) * 4
    vmem_limit = min(
        int(1.5 * (w_bufs + io_bufs + h_tmp + acc_bytes + bias_bytes)) + (8 << 20),
        64 << 20)

    # --- cost estimate (counts weight re-streaming under the actual loop nest)
    weight_reads = 1 if resident else (M // tm)
    cost = pl.CostEstimate(
        flops=4 * M * D * Dff,  # two matmuls, 2*M*D*Dff each
        transcendentals=0,
        bytes_accessed=(2 * M * D * x_item
                        + weight_reads * 2 * D * Dff * w_item
                        + (D + Dff) * w_item),
    )

    x2d = x.reshape(M, D)
    b1_2d = b1.reshape(1, Dff)
    b2_2d = b2.reshape(1, D)

    if resident:
        kernel = _ffn_kernel_resident
        grid_spec = pltpu.PrefetchScalarGridSpec(
            num_scalar_prefetch=0,
            grid=(M // tm,),
            in_specs=[
                pl.BlockSpec((tm, D), lambda i: (i, 0)),     # x rows
                pl.BlockSpec((D, Dff), lambda i: (0, 0)),    # W1 (resident)
                pl.BlockSpec((1, Dff), lambda i: (0, 0)),    # b1
                pl.BlockSpec((Dff, D), lambda i: (0, 0)),    # W2 (resident)
                pl.BlockSpec((1, D), lambda i: (0, 0)),      # b2
            ],
            out_specs=pl.BlockSpec((tm, D), lambda i: (i, 0)),
            scratch_shapes=[],
        )
        dims = ("parallel",)
    else:
        kernel = _ffn_kernel_tiled
        grid_spec = pltpu.PrefetchScalarGridSpec(
            num_scalar_prefetch=0,
            grid=(M // tm, Dff // tn_ff),  # reduction (d_ff) axis last
            in_specs=[
                pl.BlockSpec((tm, D), lambda i, k: (i, 0)),      # x rows
                pl.BlockSpec((D, tn_ff), lambda i, k: (0, k)),   # W1 col tile
                pl.BlockSpec((1, tn_ff), lambda i, k: (0, k)),   # b1 tile
                pl.BlockSpec((tn_ff, D), lambda i, k: (k, 0)),   # W2 row tile
                pl.BlockSpec((1, D), lambda i, k: (0, 0)),       # b2
            ],
            out_specs=pl.BlockSpec((tm, D), lambda i, k: (i, 0)),
            scratch_shapes=[pltpu.VMEM((tm, D), jnp.float32)],   # f32 accumulator
        )
        dims = ("parallel", "arbitrary")

    out2d = pl.pallas_call(
        kernel,
        out_shape=jax.ShapeDtypeStruct((M, D), x.dtype),
        grid_spec=grid_spec,
        compiler_params=pltpu.CompilerParams(
            dimension_semantics=dims,
            vmem_limit_bytes=vmem_limit,
        ),
        cost_estimate=cost,
    )(x2d, w1, b1_2d, w2, b2_2d)

    return out2d.reshape(B, S, D)


def init_params(key, d_model, d_ff, dtype=jnp.bfloat16):
    """Deterministic nn.Linear-style init (uniform +-1/sqrt(fan_in)).
    Weights stored transposed relative to PyTorch: (d_in, d_out)."""
    k1, k2, k3, k4 = jax.random.split(key, 4)
    bound1 = 1.0 / (d_model ** 0.5)
    bound2 = 1.0 / (d_ff ** 0.5)
    w1 = jax.random.uniform(k1, (d_model, d_ff), jnp.float32, -bound1, bound1)
    b1 = jax.random.uniform(k2, (d_ff,), jnp.float32, -bound1, bound1)
    w2 = jax.random.uniform(k3, (d_ff, d_model), jnp.float32, -bound2, bound2)
    b2 = jax.random.uniform(k4, (d_model,), jnp.float32, -bound2, bound2)
    return (w1.astype(dtype), b1.astype(dtype),
            w2.astype(dtype), b2.astype(dtype))


if __name__ == "__main__":
    # Small shapes consistent with TransformerConfig defaults
    # (d_model=256, d_ff=1024); batch*seq = 512 so the M grid has extent 2.
    batch, seq, d_model, d_ff = 2, 256, 256, 1024

    key = jax.random.PRNGKey(0)
    kx, kp = jax.random.split(key)
    x = jax.random.normal(kx, (batch, seq, d_model),
                          dtype=jnp.float32).astype(jnp.bfloat16)
    w1, b1, w2, b2 = init_params(kp, d_model, d_ff, dtype=jnp.bfloat16)

    # f32 reference computed from the same bf16-quantized operands (same math
    # as the PyTorch forward in eval mode).
    xf, w1f, b1f, w2f, b2f = (a.astype(jnp.float32)
                              for a in (x, w1, b1, w2, b2))
    ref = jnp.maximum(xf @ w1f + b1f, 0.0) @ w2f + b2f

    # Path 1: VMEM-resident weights (single parallel grid axis).
    out = feed_forward(x, w1, b1, w2, b2)
    out = jax.block_until_ready(out)
    assert out.shape == (batch, seq, d_model)
    assert float(jnp.max(jnp.abs(out.astype(jnp.float32) - ref))) < 5e-2

    # Path 2: d_ff-tiled accumulator path (exercised for coverage).
    out_t = feed_forward(x, w1, b1, w2, b2, tn_ff=512, allow_resident=False)
    out_t = jax.block_until_ready(out_t)
    assert float(jnp.max(jnp.abs(out_t.astype(jnp.float32) - ref))) < 5e-2

    print("KERNEL_OK")
</pallas_src>

<mosaic_0001>
module attributes {stable_mosaic.version = 11 : i64} {
  func.func @_ffn_kernel_resident(%arg0: i32, %arg1: memref<256x256xbf16, #tpu.memory_space<vmem>>, %arg2: memref<256x1024xbf16, #tpu.memory_space<vmem>>, %arg3: memref<1x1024xbf16, #tpu.memory_space<vmem>>, %arg4: memref<1024x256xbf16, #tpu.memory_space<vmem>>, %arg5: memref<1x256xbf16, #tpu.memory_space<vmem>>, %arg6: memref<256x256xbf16, #tpu.memory_space<vmem>>) attributes {dimension_semantics = [#tpu.dimension_semantics<parallel>], iteration_bounds = array<i64: 2>, scalar_prefetch = 0 : i64, scratch_operands = 0 : i64, tpu.core_type = #tpu.core_type<tc>, window_params = [{transform_indices = @transform_0, window_bounds = array<i64: 256, 256>}, {pipeline_mode = #tpu.pipeline_mode<synchronous>, transform_indices = @transform_1, window_bounds = array<i64: 256, 1024>}, {pipeline_mode = #tpu.pipeline_mode<synchronous>, transform_indices = @transform_2, window_bounds = array<i64: 1, 1024>}, {pipeline_mode = #tpu.pipeline_mode<synchronous>, transform_indices = @transform_3, window_bounds = array<i64: 1024, 256>}, {pipeline_mode = #tpu.pipeline_mode<synchronous>, transform_indices = @transform_4, window_bounds = array<i64: 1, 256>}, {transform_indices = @transform_5, window_bounds = array<i64: 256, 256>}]} {
    %c0 = arith.constant 0 : index
    %c0_0 = arith.constant 0 : index
    %0 = vector.load %arg1[%c0, %c0_0] : memref<256x256xbf16, #tpu.memory_space<vmem>>, vector<256x256xbf16>
    %c0_1 = arith.constant 0 : index
    %c0_2 = arith.constant 0 : index
    %1 = vector.load %arg2[%c0_1, %c0_2] : memref<256x1024xbf16, #tpu.memory_space<vmem>>, vector<256x1024xbf16>
    %cst = arith.constant dense<0.000000e+00> : vector<256x1024xf32>
    %2 = tpu.matmul %0, %1, %cst {dimension_numbers = #tpu.dot_dimension_numbers<[1], [0], [0], [1], [0, 0, 1, 1], [], []>} : vector<256x256xbf16>, vector<256x1024xbf16>, vector<256x1024xf32> -> vector<256x1024xf32>
    %c0_3 = arith.constant 0 : index
    %c0_4 = arith.constant 0 : index
    %3 = vector.load %arg3[%c0_3, %c0_4] : memref<1x1024xbf16, #tpu.memory_space<vmem>>, vector<1x1024xbf16>
    %4 = arith.extf %3 : vector<1x1024xbf16> to vector<1x1024xf32>
    %5 = vector.broadcast %4 : vector<1x1024xf32> to vector<256x1024xf32>
    %6 = arith.addf %2, %5 : vector<256x1024xf32>
    %cst_5 = arith.constant 0.000000e+00 : f32
    %7 = vector.broadcast %cst_5 : f32 to vector<256x1024xf32>
    %8 = arith.maximumf %6, %7 : vector<256x1024xf32>
    %9 = arith.truncf %8 : vector<256x1024xf32> to vector<256x1024xbf16>
    %c0_6 = arith.constant 0 : index
    %c0_7 = arith.constant 0 : index
    %10 = vector.load %arg4[%c0_6, %c0_7] : memref<1024x256xbf16, #tpu.memory_space<vmem>>, vector<1024x256xbf16>
    %cst_8 = arith.constant dense<0.000000e+00> : vector<256x256xf32>
    %11 = tpu.matmul %9, %10, %cst_8 {dimension_numbers = #tpu.dot_dimension_numbers<[1], [0], [0], [1], [0, 0, 1, 1], [], []>} : vector<256x1024xbf16>, vector<1024x256xbf16>, vector<256x256xf32> -> vector<256x256xf32>
    %c0_9 = arith.constant 0 : index
    %c0_10 = arith.constant 0 : index
    %12 = vector.load %arg5[%c0_9, %c0_10] : memref<1x256xbf16, #tpu.memory_space<vmem>>, vector<1x256xbf16>
    %13 = arith.extf %12 : vector<1x256xbf16> to vector<1x256xf32>
    %14 = vector.broadcast %13 : vector<1x256xf32> to vector<256x256xf32>
    %15 = arith.addf %11, %14 : vector<256x256xf32>
    %16 = arith.truncf %15 : vector<256x256xf32> to vector<256x256xbf16>
    %c0_11 = arith.constant 0 : index
    %c0_12 = arith.constant 0 : index
    %17 = vector.load %arg6[%c0_11, %c0_12] : memref<256x256xbf16, #tpu.memory_space<vmem>>, vector<256x256xbf16>
    tpu.vector_store %arg6[%c0_11, %c0_12], %16 {strides = array<i32>} : memref<256x256xbf16, #tpu.memory_space<vmem>>, vector<256x256xbf16>,
    return
  }
  func.func @transform_0(%arg0: i32) -> (i32, i32) {
    %c0_i32 = arith.constant 0 : i32
    %c0_i32_0 = arith.constant 0 : i32
    return %arg0, %c0_i32 : i32, i32
  }
  func.func @transform_1(%arg0: i32) -> (i32, i32) {
    %c0_i32 = arith.constant 0 : i32
    %c0_i32_0 = arith.constant 0 : i32
    %c0_i32_1 = arith.constant 0 : i32
    return %c0_i32, %c0_i32_0 : i32, i32
  }
  func.func @transform_2(%arg0: i32) -> (i32, i32) {
    %c0_i32 = arith.constant 0 : i32
    %c0_i32_0 = arith.constant 0 : i32
    %c0_i32_1 = arith.constant 0 : i32
    return %c0_i32, %c0_i32_0 : i32, i32
  }
  func.func @transform_3(%arg0: i32) -> (i32, i32) {
    %c0_i32 = arith.constant 0 : i32
    %c0_i32_0 = arith.constant 0 : i32
    %c0_i32_1 = arith.constant 0 : i32
    return %c0_i32, %c0_i32_0 : i32, i32
  }
  func.func @transform_4(%arg0: i32) -> (i32, i32) {
    %c0_i32 = arith.constant 0 : i32
    %c0_i32_0 = arith.constant 0 : i32
    %c0_i32_1 = arith.constant 0 : i32
    return %c0_i32, %c0_i32_0 : i32, i32
  }
  func.func @transform_5(%arg0: i32) -> (i32, i32) {
    %c0_i32 = arith.constant 0 : i32
    %c0_i32_0 = arith.constant 0 : i32
    return %arg0, %c0_i32 : i32, i32
  }
}

</mosaic_0001>

<bundles_post_ra>
// kernel: feed_forward.1
= control target key start
LH: loop header
LB: loop body
LE: loop exit
PB: predicated region body
PF: predicated region fallthrough
CT: control target
= control target key end

     0   :  { %10 = vsyncpa [#allocation3], 0  ;;  %s6554_s0 = inlined_call_operand.hbm [shape: bf16[512,256], index: 0, kind: input, shape index: {}]   ;;  %s6555_s1 = inlined_call_operand.hbm [shape: bf16[256,1024], index: 1, kind: input, shape index: {}]   ;;  %s6556_s2 = inlined_call_operand.vmem [shape: bf16[1,1024], index: 2, kind: input, shape index: {}]   ;;  %s6557_s3 = inlined_call_operand.hbm [shape: bf16[1024,256], index: 3, kind: input, shape index: {}]   ;;  %s6558_s4 = inlined_call_operand.vmem [shape: bf16[1,256], index: 4, kind: input, shape index: {}]   ;;  %s6559_s5 = inlined_call_operand.hbm [shape: bf16[512,256], index: 5, kind: output, shape index: {}]  }
   0x1   :  { %12 = vsyncpa [#allocation3 + $0x1], 0 }
   0x2   :  { %13 = vsyncpa [#allocation6], 0 }
   0x3   :  { %14 = vsyncpa [#allocation4], 0 }
   0x4   :  { %16 = vsyncpa [#allocation4 + $0x1], 0  ;;  %s5536_s18 = smov 0   ;;  %s5538_s19 = smov 0  }
   0x5   :  { %s5540_s20 = smov 0   ;;  %s5542_s21 = smov 0  }
   0x6 LB: > { %s5557_s22 = sadd.s32 4294967295, %s5494_s21   ;;  %s4360_s23 = sadd.s32 4294967294, %s5494_s21   ;;  %s5494_s21 = sphi %s5542_s21, %s6579_s21   ;;  %s5490_s20 = sphi %s5540_s20, %s6578_s20   ;;  %s5486_s19 = sphi %s5538_s19, %s6577_s19   ;;  %s5482_s18 = sphi %s5536_s18, %s6576_s18  }
   0x7   : > { %p42_p0 = scmp.ne.s32.totalorder %s5486_s19, %s5482_s18  ;;  %p6560_p1 = scmp.eq.s32.totalorder %s5557_s22, 0 }
   0x8   : > { %p156_p3 = scmp.eq.s32.totalorder %s4360_s23, 1  ;;  %p4361_p5 = scmp.ge.s32.totalorder %s5494_s21, 1 }
   0x9   : > { %p5566_p4 = por %p6560_p1, %p42_p0  ;;  %p163_p7 = scmp.lt.s32.totalorder %s5494_s21, 3 }
   0xa   : > { %p5571_p6 = por %p156_p3, %p42_p0  ;;  %s5496_s27 = smov [#allocation5]  }
   0xb   : > { %s6563_s24 = scalar_select %p5566_p4, 1, 0 }
   0xc   : > { %s6564_s25 = scalar_select %p5571_p6, 1, 0 }
   0xd   : > { %p5576_p8 = pnand %p4361_p5, %p163_p7  ;;  %s175_s28 = sshll.u32 %s5496_s27, 4  ;;  %s5580_s28 = int_to_ptr.vmem [resolvable:$true] %s175_s28 }
   0xe   : > { %s5497_s30 = smov [#allocation7]   ;;  %s5338_s9 = scalar_lea.hbm %s6555_s1, 16384 }
   0xf   : > { %p5004_p9 = pneg %p5576_p8  ;;  %s191_s6 = sshll.u32 %s5497_s30, 4  ;;  %s5591_s6 = int_to_ptr.vmem [resolvable:$true] %s191_s6 }
  0x10   : > { %p5339_p12 = scmp.ne.s32.totalorder %s6555_s1, %s5338_s9  ;;  %p5345_p5 = scmp.lt.u32.totalorder %s5338_s9, %s6555_s1 }
  0x11   : > { %p5587_p11 = pnand %p5004_p9, %p6560_p1 }
  0x13   : > { %p5340_p13 = pneg %p5587_p11 }
  0x15   : > { %p5341_p0 = pnand %p5340_p13, %p5339_p12 }
  0x17   : > { %p5342_p3 = pneg %p5341_p0 }
  0x19   : > { %p5347_p7 = pnand %p5345_p5, %p5342_p3 }
  0x1b   : > { %5350 = shalt.err (!%p5347_p7)
}
  0x1c   : > { %s5351_s14 = scalar_lea.vmem %s5580_s28, 16384  ;;  %p5359_p2 = scmp.lt.s32.totalorder %s5580_s28, %s5580_s28 }
  0x1d   : > { %p5352_p9 = scmp.ne.s32.totalorder %s5580_s28, %s5351_s14  ;;  %p5360_p12 = scmp.lt.s32.totalorder %s5351_s14, %s5351_s14 }
  0x1f   : > { %p5354_p10 = pnand %p5352_p9, %p5340_p13  ;;  %p5361_p0 = por %p5360_p12, %p5359_p2 }
  0x21   : > { %p5355_p1 = pneg %p5354_p10 }
  0x23   : > { %p5362_p6 = pnand %p5361_p0, %p5355_p1 }
  0x25   : > { %5365 = shalt.err (!%p5362_p6)
}
  0x26   : > { %s5498_s15 = smov 512   ;;  %s5499_s16 = smov 32  }
  0x27   : > { %5007 = dma.hbm_to_vmem [thread:$0]  (!%p5587_p11), %s6555_s1, 16384, %s5580_s28, [#allocation6], %s5498_s15, %s5498_s15, %s5499_s16  }
  0x28   : > { %s5366_s7 = scalar_lea.hbm %s6557_s3, 16384 }
  0x29   : > { %p5367_p2 = scmp.ne.s32.totalorder %s6557_s3, %s5366_s7  ;;  %p5373_p10 = scmp.lt.u32.totalorder %s5366_s7, %s6557_s3 }
  0x2b   : > { %p5369_p1 = pnand %p5367_p2, %p5340_p13 }
  0x2d   : > { %p5370_p6 = pneg %p5369_p1 }
  0x2f   : > { %p5375_p3 = pnand %p5373_p10, %p5370_p6 }
  0x31   : > { %5378 = shalt.err (!%p5375_p3)
}
  0x32   : > { %s5379_s28 = scalar_lea.vmem %s5591_s6, 16384  ;;  %p5387_p12 = scmp.lt.s32.totalorder %s5591_s6, %s5591_s6 }
  0x33   : > { %p5380_p5 = scmp.ne.s32.totalorder %s5591_s6, %s5379_s28  ;;  %p5388_p0 = scmp.lt.s32.totalorder %s5379_s28, %s5379_s28 }
  0x35   : > { %p5382_p7 = pnand %p5380_p5, %p5340_p13  ;;  %p5389_p2 = por %p5388_p0, %p5387_p12 }
  0x37   : > { %p5383_p9 = pneg %p5382_p7 }
  0x39   : > { %p5390_p1 = pnand %p5389_p2, %p5383_p9 }
  0x3b   : > { %5393 = shalt.err (!%p5390_p1)
}
  0x3c   : > { %s5500_s12 = smov 128   ;;  %s5501_s13 = smov 8  }
  0x3d   : > { %5010 = dma.hbm_to_vmem [thread:$0]  (!%p5587_p11), %s6557_s3, 16384, %s5591_s6, [#allocation6], %s5500_s12, %s5500_s12, %s5501_s13  }
  0x3e   : > { %s5649_s16 = sadd.s32 1, %s5494_s21   ;;  %s29_s23 = sadd.s32 1, %s5490_s20 }
  0x3f   : > { %s26_s17 = ssub.s32 %s5494_s21, %s5649_s16  ;;  %p36_p6 = scmp.ne.s32.totalorder %s5490_s20, %s5486_s19 }
  0x40   : > { %p27_p13 = scmp.eq.s32.totalorder %s26_s17, 0  ;;  %p37_p10 = scmp.eq.s32.totalorder %s5494_s21, 0 }
  0x41   : > { %p6567_p5 = scmp.eq.s32.totalorder %s5557_s22, 1  ;;  %p5021_p9 = scmp.lt.s32.totalorder %s5494_s21, 2 }
  0x42   : > { %s5658_s27 = scalar_select %p27_p13, %s5490_s20, %s29_s23  }
  0x43   : > { %p38_p3 = por %p37_p10, %p36_p6  ;;  %p5662_p7 = por %p6567_p5, %p36_p6 }
  0x44   : > { %s208_s30 = sand.u32 1, %s5490_s20   ;;  %s4701_s6 = sshll.u32 %s5494_s21, 12 }
  0x45   : > { %s6568_s29 = scalar_select %p5662_p7, 1, 0 }
  0x46   : > { %s4365_s7 = sshll.u32 %s208_s30, 8  ;;  %s5672_s10 = scalar_lea.hbm %s6554_s0, %s4701_s6 }
  0x47   : > { %s212_s11 = scalar_lea.vmem [#allocation2], %s4365_s7  ;;  %p5676_p11 = pnand %p5021_p9, %p38_p3 }
  0x48   : > { %s220_s28 = sshll.u32 %s212_s11, 4  ;;  %s5680_s15 = scalar_lea.sflag [#allocation3], %s208_s30  ;;  %s5674_s28 = int_to_ptr.vmem [resolvable:$true] %s220_s28 }
  0x49   : > { %s5394_s17 = scalar_lea.hbm %s5672_s10, 4096  ;;  %p5396_p0 = pneg %p5676_p11 }
  0x4a   : > { %p5395_p12 = scmp.ne.s32.totalorder %s5672_s10, %s5394_s17  ;;  %s5399_s6 = scalar_lea.hbm %s6554_s0, 8192 }
  0x4b   : > { %p5400_p13 = scmp.lt.u32.totalorder %s5672_s10, %s6554_s0  ;;  %p5401_p6 = scmp.lt.u32.totalorder %s5399_s6, %s5394_s17 }
  0x4c   : > { %p5397_p2 = pnand %p5396_p0, %p5395_p12  ;;  %p5403_p3 = scmp.lt.u32.totalorder %s5394_s17, %s5672_s10 }
  0x4d   : > { %p5402_p10 = por %p5401_p6, %p5400_p13 }
  0x4e   : > { %p5398_p1 = pneg %p5397_p2 }
  0x4f   : > { %p5404_p5 = por %p5403_p3, %p5402_p10 }
  0x51   : > { %p5405_p9 = pnand %p5404_p5, %p5398_p1 }
  0x53   : > { %5408 = shalt.err (!%p5405_p9)
}
  0x54   : > { %s5409_s30 = scalar_lea.vmem %s5674_s28, 4096  ;;  %s5502_s11 = smov [#allocation2]  }
  0x55   : > { %p5410_p12 = scmp.ne.s32.totalorder %s5674_s28, %s5409_s30  ;;  %s5414_s23 = sshll.u32 %s5502_s11, 4  ;;  %s5415_s23 = int_to_ptr.vmem [resolvable:$false] %s5414_s23 }
  0x56   : > { %s5416_s7 = scalar_lea.vmem %s5415_s23, 8192  ;;  %p5417_p4 = scmp.lt.s32.totalorder %s5674_s28, %s5415_s23 }
  0x57   : > { %p5412_p2 = pnand %p5410_p12, %p5396_p0  ;;  %p5418_p13 = scmp.lt.s32.totalorder %s5416_s7, %s5409_s30 }
  0x59   : > { %p5413_p7 = pneg %p5412_p2  ;;  %p5419_p6 = por %p5418_p13, %p5417_p4 }
  0x5b   : > { %p5420_p10 = pnand %p5419_p6, %p5413_p7 }
  0x5d   : > { %5423 = shalt.err (!%p5420_p10)
}
  0x5e   : > { %5014 = dma.hbm_to_vmem [thread:$0]  (!%p5676_p11), %s5672_s10, 4096, %s5674_s28, %s5680_s15, %s5500_s12, %s5500_s12, %s5501_s13  }
  0x5f   : > { %232 = sbr.rel (%p5576_p8) target bundleno = 1134 (0x46e), region = 40  ;;  %s5714_s17 = sand.u32 (!%p5576_p8), 1, %s5486_s19  }
  0x60   : > { %s4370_s6 = sshll.u32 (!%p5576_p8), %s5714_s17, 8  ;;  %s235_s8 = scalar_lea.sflag (!%p5576_p8), [#allocation3], %s5714_s17 }
  0x61   : > { %s5720_s14 = scalar_lea.vmem (!%p5576_p8), [#allocation2], %s4370_s6  ;;  %p6570_p4 = scmp.ne.s32.totalorder (!%p5576_p8), %s6563_s24, 0 }
  0x66   : > { %5469 = dma.done.wait (%p6570_p4), %s235_s8, 4096  }
  0x67   : > { %5471 = vsyncadd (%p6570_p4), %s235_s8, 4294963200  ;;  %p6571_p7 = scmp.eq.s32.totalorder %s5557_s22, 0 }
  0x69   : > { %5473 = dma.done.wait (%p6571_p7), [#allocation6], 32768   ;;  %p6572_p8 = pmov %p6571_p7 }
  0x6a   : > { %v307_v0 = vld [vmem:[#allocation5] sm:$0xff]  ;;  %v308_v63 = vld [vmem:[#allocation5 + $0x8] sm:$0xff]  ;;  %s6409_s15 = scalar_lea.vmem [#allocation8], %s4370_s6  ;;  %s4735_s9 = sshll.u32 %s5557_s22, 12 }
  0x6b   : > { %5475 = vsyncadd (%p6572_p8), [#allocation6], 4294934528  ;;  %v311_v1 = vld [vmem:[#allocation5 + $0x20] sm:$0xff]  ;;  %s4268_s30 = sshll.u32 %s6409_s15, 4  ;;  %s6506_s7 = scalar_lea.hbm %s6559_s5, %s4735_s9  ;;  %s6508_s30 = int_to_ptr.vmem [resolvable:$true] %s4268_s30 }
  0x6c   : > { %v315_v2 = vld [vmem:[#allocation5 + $0x40] sm:$0xff]  ;;  %v4407_v3 = vcombine.high %v307_v0, %v311_v1  ;;  %v4406_v4 = vcombine.low %v307_v0, %v311_v1  ;;  %v312_v0 = vld [vmem:[#allocation5 + $0x28] sm:$0xff]  ;;  %s4254_s22 = scalar_lea.sflag [#allocation4], %s5714_s17  ;;  %s5424_s6 = scalar_lea.vmem %s6508_s30, 4096 }
  0x6d   : > { %v319_v5 = vld [vmem:[#allocation5 + $0x60] sm:$0xff]  ;;  %p5425_p11 = scmp.ne.s32.totalorder %s6508_s30, %s5424_s6  ;;  %p6573_p0 = scmp.ne.s32.totalorder %s6568_s29, 0 }
  0x6e   : > { %v4415_v6 = vcombine.high %v315_v2, %v319_v5  ;;  %v323_v7 = vld [vmem:[#allocation5 + $0x80] sm:$0xff]  ;;  %1312 = vmatprep.subr.bf16.mxu1 %v4407_v3  ;;  %v4414_v9 = vcombine.low %v315_v2, %v319_v5  ;;  %v316_v3 = vld [vmem:[#allocation5 + $0x48] sm:$0xff]  ;;  %s5503_s8 = smov [#allocation8]  }
  0x6f   : > { %v327_v8 = vld [vmem:[#allocation5 + $0xa0] sm:$0xff]  ;;  %1313 = vmatpush1.bf16.msra.mxu1 %v4406_v4  ;;  %v320_v4 = vld [vmem:[#allocation5 + $0x68] sm:$0xff]  ;;  %p5426_p1 = pnand %p5425_p11, %p6573_p0 }
  0x70   : > { %1314 = vmatprep.subr.bf16.mxu1 %v4415_v6  ;;  %v4423_v10 = vcombine.high %v323_v7, %v327_v8  ;;  %v331_v11 = vld [vmem:[#allocation5 + $0xc0] sm:$0xff]  ;;  %v4422_v13 = vcombine.low %v323_v7, %v327_v8  ;;  %v4409_v6 = vcombine.high %v308_v63, %v312_v0  ;;  %v5738_v7 = vld [vmem:[%s5720_s14 + $0x14] ss:$8 sps:$4 sm:$0xff]   ;;  %v4408_v8 = vcombine.low %v308_v63, %v312_v0  ;;  %v396_v63 = vld [vmem:[#allocation5 + $0x2c8] sm:$0xff] }
  0x71   : > { %v335_v12 = vld [vmem:[#allocation5 + $0xe0] sm:$0xff]  ;;  %v400_v0 = vld [vmem:[#allocation5 + $0x2e8] sm:$0xff]  ;;  %p5427_p3 = pneg %p5426_p1 }
  0x72   : > { %v4431_v14 = vcombine.high %v331_v11, %v335_v12  ;;  %v339_v15 = vld [vmem:[#allocation5 + $0x100] sm:$0xff]  ;;  %v4430_v18 = vcombine.low %v331_v11, %v335_v12  ;;  %v4417_v11 = vcombine.high %v316_v3, %v320_v4  ;;  %v5741_v12 = vld [vmem:[#allocation5 + $0x10] sm:$0xff] }
  0x73   : > { %1315 = vmatpush1.bf16.msra.mxu1 %v4414_v9  ;;  %v343_v16 = vld [vmem:[#allocation5 + $0x120] sm:$0xff]  ;;  %v324_v9 = vld [vmem:[#allocation5 + $0x88] sm:$0xff] }
  0x74   : > { %1316 = vmatprep.subr.bf16.mxu1 %v4423_v10  ;;  %v5731_v17 = vld [vmem:[%s5720_s14 + $0x4] ss:$8 sps:$4 sm:$0xff]   ;;  %v4439_v19 = vcombine.high %v339_v15, %v343_v16  ;;  %v4438_v22 = vcombine.low %v339_v15, %v343_v16  ;;  %v5735_v5 = vld [vmem:[%s5720_s14] ss:$8 sps:$4 sm:$0xff]  }
  0x75   : > { %1344 = vmatprep.mubr.bf16.mxu1 %v5731_v17  ;;  %v347_v20 = vld [vmem:[#allocation5 + $0x140] sm:$0xff]  ;;  %v328_v10 = vld [vmem:[#allocation5 + $0xa8] sm:$0xff] }
  0x76   : > { %v351_v21 = vld [vmem:[#allocation5 + $0x160] sm:$0xff]  ;;  %v332_v15 = vld [vmem:[#allocation5 + $0xc8] sm:$0xff] }
  0x77   : > { %1317 = vmatpush1.bf16.msra.mxu1 %v4422_v13  ;;  %v4447_v23 = vcombine.high %v347_v20, %v351_v21  ;;  %v355_v24 = vld [vmem:[#allocation5 + $0x180] sm:$0xff]  ;;  %v4446_v26 = vcombine.low %v347_v20, %v351_v21  ;;  %v5743_v13 = vld [vmem:[#allocation5 + $0x30] sm:$0xff]  ;;  %v336_v16 = vld [vmem:[#allocation5 + $0xe8] sm:$0xff]  ;;  %v4425_v20 = vcombine.high %v324_v9, %v328_v10 }
  0x78   : > { %1318 = vmatprep.subr.bf16.mxu1 %v4431_v14  ;;  %v359_v25 = vld [vmem:[#allocation5 + $0x1a0] sm:$0xff]  ;;  %v4416_v14 = vcombine.low %v316_v3, %v320_v4 }
  0x79   : > { %v4455_v27 = vcombine.high %v355_v24, %v359_v25  ;;  %v363_v28 = vld [vmem:[#allocation5 + $0x1c0] sm:$0xff]  ;;  %v4454_v30 = vcombine.low %v355_v24, %v359_v25  ;;  %v344_v24 = vld [vmem:[#allocation5 + $0x128] sm:$0xff]  ;;  %v4433_v25 = vcombine.high %v332_v15, %v336_v16 }
  0x7a   : > { %v367_v29 = vld [vmem:[#allocation5 + $0x1e0] sm:$0xff] }
  0x7b   : > { %1319 = vmatpush1.bf16.msra.mxu1 %v4430_v18  ;;  %v4463_v31 = vcombine.high %v363_v28, %v367_v29  ;;  %v371_v32 = vld [vmem:[#allocation5 + $0x200] sm:$0xff]  ;;  %v4462_v34 = vcombine.low %v363_v28, %v367_v29  ;;  %v4410_v18 = vcombine.low %v5741_v12, %v5743_v13  ;;  %v352_v28 = vld [vmem:[#allocation5 + $0x168] sm:$0xff] }
  0x7c   : > { %1320 = vmatprep.subr.bf16.mxu1 %v4439_v19  ;;  %v375_v33 = vld [vmem:[#allocation5 + $0x220] sm:$0xff]  ;;  %v5749_v19 = vld [vmem:[%s5720_s14 + $0x10] ss:$8 sps:$4 sm:$0xff]  }
  0x7d   : > { %v4471_v35 = vcombine.high %v371_v32, %v375_v33  ;;  %v379_v36 = vld [vmem:[#allocation5 + $0x240] sm:$0xff]  ;;  %v4470_v38 = vcombine.low %v371_v32, %v375_v33  ;;  %v356_v33 = vld [vmem:[#allocation5 + $0x188] sm:$0xff] }
  0x7e   : > { %v383_v37 = vld [vmem:[#allocation5 + $0x260] sm:$0xff] }
  0x7f   : > { %1321 = vmatpush1.bf16.msra.mxu1 %v4438_v22  ;;  %v4479_v39 = vcombine.high %v379_v36, %v383_v37  ;;  %v387_v40 = vld [vmem:[#allocation5 + $0x280] sm:$0xff]  ;;  %v4478_v42 = vcombine.low %v379_v36, %v383_v37  ;;  %v4424_v22 = vcombine.low %v324_v9, %v328_v10  ;;  %v364_v37 = vld [vmem:[#allocation5 + $0x1c8] sm:$0xff]  ;;  %v5122_v10 = vld [vmem:[#allocation7 + $0x34] ss:$8 sps:$4 sm:$0xff]  }
  0x80   : > { %1322 = vmatprep.subr.bf16.mxu1 %v4447_v23  ;;  %v391_v41 = vld [vmem:[#allocation5 + $0x2a0] sm:$0xff]  ;;  %v340_v23 = vld [vmem:[#allocation5 + $0x108] sm:$0xff] }
  0x81   : > { %v4487_v43 = vcombine.high %v387_v40, %v391_v41  ;;  %v395_v44 = vld [vmem:[#allocation5 + $0x2c0] sm:$0xff]  ;;  %v4486_v46 = vcombine.low %v387_v40, %v391_v41  ;;  %v4440_v32 = vcombine.low %v340_v23, %v344_v24  ;;  %v5765_v40 = vld [vmem:[%s5720_s14 + $0x30] ss:$8 sps:$4 sm:$0xff]   ;;  %v408_v9 = vld [vmem:[#allocation5 + $0x328] sm:$0xff] }
  0x82   : > { %v399_v45 = vld [vmem:[#allocation5 + $0x2e0] sm:$0xff] }
  0x83   : > { %1323 = vmatpush1.bf16.msra.mxu1 %v4446_v26  ;;  %v403_v47 = vld [vmem:[#allocation5 + $0x300] sm:$0xff]  ;;  %v4495_v49 = vcombine.high %v395_v44, %v399_v45  ;;  %v4494_v50 = vcombine.low %v395_v44, %v399_v45  ;;  %v4432_v26 = vcombine.low %v332_v15, %v336_v16  ;;  %v372_v44 = vld [vmem:[#allocation5 + $0x208] sm:$0xff] }
  0x84   : > { %1324 = vmatprep.subr.bf16.mxu1 %v4455_v27  ;;  %v407_v48 = vld [vmem:[#allocation5 + $0x320] sm:$0xff]  ;;  %v348_v27 = vld [vmem:[#allocation5 + $0x148] sm:$0xff] }
  0x85   : > { %v411_v51 = vld [vmem:[#allocation5 + $0x340] sm:$0xff]  ;;  %v4503_v53 = vcombine.high %v403_v47, %v407_v48  ;;  %v4502_v54 = vcombine.low %v403_v47, %v407_v48  ;;  %v4448_v36 = vcombine.low %v348_v27, %v352_v28  ;;  %v376_v45 = vld [vmem:[#allocation5 + $0x228] sm:$0xff] }
  0x86   : > { %v415_v52 = vld [vmem:[#allocation5 + $0x360] sm:$0xff] }
  0x87   : > { %1325 = vmatpush1.bf16.msra.mxu1 %v4454_v30  ;;  %v419_v55 = vld [vmem:[#allocation5 + $0x380] sm:$0xff]  ;;  %v4511_v57 = vcombine.high %v411_v51, %v415_v52  ;;  %v4510_v58 = vcombine.low %v411_v51, %v415_v52  ;;  %v4441_v30 = vcombine.high %v340_v23, %v344_v24  ;;  %v384_v51 = vld [vmem:[#allocation5 + $0x268] sm:$0xff] }
  0x88   : > { %1326 = vmatprep.subr.bf16.mxu1 %v4463_v31  ;;  %v423_v56 = vld [vmem:[#allocation5 + $0x3a0] sm:$0xff]  ;;  %v5760_v31 = vld [vmem:[%s5720_s14 + $0x34] ss:$8 sps:$4 sm:$0xff]  }
  0x89   : > { %v427_v59 = vld [vmem:[#allocation5 + $0x3c0] sm:$0xff]  ;;  %v4519_v61 = vcombine.high %v419_v55, %v423_v56  ;;  %v4518_v62 = vcombine.low %v419_v55, %v423_v56  ;;  %v388_v56 = vld [vmem:[#allocation5 + $0x288] sm:$0xff] }
  0x8a   : > { %v431_v60 = vld [vmem:[#allocation5 + $0x3e0] sm:$0xff] }
  0x8b   : > { %1327 = vmatpush1.bf16.msra.mxu1 %v4462_v34  ;;  %v4527_v1 = vcombine.high %v427_v59, %v431_v60  ;;  %v4526_v2 = vcombine.low %v427_v59, %v431_v60  ;;  %v5752_v21 = vld [vmem:[%s5720_s14 + $0x24] ss:$8 sps:$4 sm:$0xff]   ;;  %v5757_v29 = vld [vmem:[%s5720_s14 + $0x20] ss:$8 sps:$4 sm:$0xff]   ;;  %v5118_v60 = vld [vmem:[#allocation7 + $0x10] ss:$8 sps:$4 sm:$0xff]  }
  0x8c   : > { %1328 = vmatprep.subr.bf16.mxu1 %v4471_v35  ;;  %v360_v34 = vld [vmem:[#allocation5 + $0x1a8] sm:$0xff]  ;;  %v4449_v35 = vcombine.high %v348_v27, %v352_v28 }
  0x8d   : > { %v5768_v41 = vld [vmem:[%s5720_s14 + $0x44] ss:$8 sps:$4 sm:$0xff]   ;;  %v5115_v48 = vld [vmem:[#allocation7] ss:$8 sps:$4 sm:$0xff]  }
  0x8e   : > { %v5773_v52 = vld [vmem:[%s5720_s14 + $0x40] ss:$8 sps:$4 sm:$0xff]   ;;  %v5784_v3 = vld [vmem:[%s5720_s14 + $0x64] ss:$8 sps:$4 sm:$0xff]  }
  0x8f   : > { %1329 = vmatpush1.bf16.msra.mxu1 %v4470_v38  ;;  %v368_v38 = vld [vmem:[#allocation5 + $0x1e8] sm:$0xff] }
  0x90   : > { %1330 = vmatprep.subr.bf16.mxu1 %v4479_v39  ;;  %v4457_v39 = vcombine.high %v356_v33, %v360_v34  ;;  %v4464_v47 = vcombine.low %v364_v37, %v368_v38  ;;  %v5125_v15 = vld [vmem:[#allocation7 + $0x44] ss:$8 sps:$4 sm:$0xff]   ;;  %v5127_v23 = vld [vmem:[#allocation7 + $0x40] ss:$8 sps:$4 sm:$0xff]  }
  0x91   : > { %v5789_v24 = vld [vmem:[%s5720_s14 + $0x60] ss:$8 sps:$4 sm:$0xff]  }
  0x92   : > { %v420_v28 = vld [vmem:[#allocation5 + $0x388] sm:$0xff] }
  0x93   : > { %1331 = vmatpush1.bf16.msra.mxu1 %v4478_v42  ;;  %v4456_v42 = vcombine.low %v356_v33, %v360_v34  ;;  %v5130_v34 = vld [vmem:[#allocation7 + $0x50] ss:$8 sps:$4 sm:$0xff]  }
  0x94   : > { %1332 = vmatprep.subr.bf16.mxu1 %v4487_v43  ;;  %v4465_v43 = vcombine.high %v364_v37, %v368_v38  ;;  %v428_v37 = vld [vmem:[#allocation5 + $0x3c8] sm:$0xff] }
  0x95   : > { %v432_v38 = vld [vmem:[#allocation5 + $0x3e8] sm:$0xff] }
  0x97   : > { %1333 = vmatpush1.bf16.msra.mxu1 %v4486_v46  ;;  %v5113_v46 = vld [vmem:[#allocation7 + $0x4] ss:$8 sps:$4 sm:$0xff]  }
  0x98   : > { %1334 = vmatprep.subr.bf16.mxu1 %v4495_v49  ;;  %v4473_v49 = vcombine.high %v372_v44, %v376_v45  ;;  %3257 = vmatprep.subr.bf16.mxu0 %v5113_v46  ;;  %v5134_v46 = vld [vmem:[#allocation7 + $0x74] ss:$8 sps:$4 sm:$0xff]  }
  0x99   : > { %3258 = vmatpush1.bf16.msra.mxu0 %v5115_v48  ;;  %v5136_v48 = vld [vmem:[#allocation7 + $0x70] ss:$8 sps:$4 sm:$0xff]  }
  0x9b   : > { %1335 = vmatpush1.bf16.msra.mxu1 %v4494_v50  ;;  %v380_v50 = vld [vmem:[#allocation5 + $0x248] sm:$0xff] }
  0x9c   : > { %1336 = vmatprep.subr.bf16.mxu1 %v4503_v53  ;;  %v5776_v53 = vld [vmem:[%s5720_s14 + $0x54] ss:$8 sps:$4 sm:$0xff]   ;;  %v4481_v55 = vcombine.high %v380_v50, %v384_v51  ;;  %v4480_v59 = vcombine.low %v380_v50, %v384_v51  ;;  %v4411_v50 = vcombine.high %v5741_v12, %v5743_v13  ;;  %v5139_v51 = vld [vmem:[#allocation7 + $0x80] ss:$8 sps:$4 sm:$0xff]  }
  0x9d   : > { %v341_v12 = vld [vmem:[#allocation5 + $0x110] sm:$0xff] }
  0x9e   : > { %v345_v13 = vld [vmem:[#allocation5 + $0x130] sm:$0xff] }
  0x9f   : > { %1337 = vmatpush1.bf16.msra.mxu1 %v4502_v54  ;;  %v4472_v54 = vcombine.low %v372_v44, %v376_v45  ;;  %v4529_v45 = vcombine.high %v428_v37, %v432_v38 }
  0xa0   : > { %1338 = vmatprep.subr.bf16.mxu1 %v4511_v57  ;;  %v392_v57 = vld [vmem:[#allocation5 + $0x2a8] sm:$0xff] }
  0xa1   : > { %v4488_v4 = vcombine.low %v388_v56, %v392_v57 }
  0xa3   : > { %1339 = vmatpush1.bf16.msra.mxu1 %v4510_v58  ;;  %v5116_v58 = vld [vmem:[#allocation7 + $0x14] ss:$8 sps:$4 sm:$0xff]  }
  0xa4   : > { %1340 = vmatprep.subr.bf16.mxu1 %v4519_v61  ;;  %v5119_v61 = vld [vmem:[#allocation7 + $0x24] ss:$8 sps:$4 sm:$0xff]   ;;  %3259 = vmatprep.subr.bf16.mxu0 %v5116_v58 }
  0xa5   : > { %3260 = vmatpush1.bf16.msra.mxu0 %v5118_v60  ;;  %v5143_v58 = vld [vmem:[#allocation7 + $0xa4] ss:$8 sps:$4 sm:$0xff]   ;;  %v5815_v60 = vld [vmem:[%s5720_s14 + $0x90] ss:$8 sps:$4 sm:$0xff]  }
  0xa6   : > { %3261 = vmatprep.subr.bf16.mxu0 %v5119_v61  ;;  %v5818_v61 = vld [vmem:[%s5720_s14 + $0xa4] ss:$8 sps:$4 sm:$0xff]  }
  0xa7   : > { %1341 = vmatpush1.bf16.msra.mxu1 %v4518_v62  ;;  %v4489_v62 = vcombine.high %v388_v56, %v392_v57  ;;  %v5140_v56 = vld [vmem:[#allocation7 + $0x94] ss:$8 sps:$4 sm:$0xff]   ;;  %v5142_v57 = vld [vmem:[#allocation7 + $0x90] ss:$8 sps:$4 sm:$0xff]  }
  0xa8   : > { %1342 = vmatprep.subr.bf16.mxu1 %v4527_v1  ;;  %v5121_v1 = vld [vmem:[#allocation7 + $0x20] ss:$8 sps:$4 sm:$0xff]  }
  0xa9   : > { %3262 = vmatpush1.bf16.msra.mxu0 %v5121_v1  ;;  %v5151_v1 = vld [vmem:[#allocation7 + $0xc0] ss:$8 sps:$4 sm:$0xff]  }
  0xaa   : > { %3263 = vmatprep.subr.bf16.mxu0 %v5122_v10  ;;  %v5831_v10 = vld [vmem:[%s5720_s14 + $0xb0] ss:$8 sps:$4 sm:$0xff]  }
  0xab   : > { %1343 = vmatpush1.bf16.msra.mxu1 %v4526_v2  ;;  %v5781_v2 = vld [vmem:[%s5720_s14 + $0x50] ss:$8 sps:$4 sm:$0xff]  }
  0xac   : > { %1505 = vmatprep.subr.bf16.mxu1 %v4409_v6  ;;  %v4497_v6 = vcombine.high %v396_v63, %v400_v0 }
  0xae   : > { %1345 = vmatmul.mubr.bf16.vlgmr.msra.gmra.mrb[0].mxu1 %v5735_v5 }
  0xaf   : > { %1506 = vmatpush1.bf16.msra.mxu1 %v4408_v8  ;;  %1354 = vmatprep.mubr.bf16.mxu1 %v5738_v7  ;;  %v404_v8 = vld [vmem:[#allocation5 + $0x308] sm:$0xff] }
  0xb0   : > { %1507 = vmatprep.subr.bf16.mxu1 %v4417_v11  ;;  %v4496_v11 = vcombine.low %v396_v63, %v400_v0  ;;  %v4505_v16 = vcombine.high %v404_v8, %v408_v9  ;;  %v5148_v63 = vld [vmem:[#allocation7 + $0xb0] ss:$8 sps:$4 sm:$0xff]   ;;  %v5149_v0 = vld [vmem:[#allocation7 + $0xc4] ss:$8 sps:$4 sm:$0xff]  }
  0xb3   : > { %1508 = vmatpush1.bf16.msra.mxu1 %v4416_v14  ;;  %v5124_v14 = vld [vmem:[#allocation7 + $0x30] ss:$8 sps:$4 sm:$0xff]  }
  0xb4   : > { %1509 = vmatprep.subr.bf16.mxu1 %v4425_v20  ;;  %v412_v20 = vld [vmem:[#allocation5 + $0x348] sm:$0xff]  ;;  %3264 = vmatpush1.bf16.msra.mxu0 %v5124_v14 }
  0xb5   : > { %3265 = vmatprep.subr.bf16.mxu0 %v5125_v15  ;;  %v5834_v14 = vld [vmem:[%s5720_s14 + $0xc4] ss:$8 sps:$4 sm:$0xff]   ;;  %v5157_v15 = vld [vmem:[#allocation7 + $0xe0] ss:$8 sps:$4 sm:$0xff]  }
  0xb6   : > { %1355 = vmatmul.mubr.bf16.gmra.mrb[4].mxu1 %v5749_v19 }
  0xb7   : > { %1364 = vmatprep.mubr.bf16.mxu1 %v5752_v21  ;;  %1510 = vmatpush1.bf16.msra.mxu1 %v4424_v22  ;;  %v416_v22 = vld [vmem:[#allocation5 + $0x368] sm:$0xff] }
  0xb8   : > { %1511 = vmatprep.subr.bf16.mxu1 %v4433_v25  ;;  %v5792_v25 = vld [vmem:[%s5720_s14 + $0x74] ss:$8 sps:$4 sm:$0xff]   ;;  %v4513_v27 = vcombine.high %v412_v20, %v416_v22  ;;  %3266 = vmatpush1.bf16.msra.mxu0 %v5127_v23  ;;  %v4512_v33 = vcombine.low %v412_v20, %v416_v22  ;;  %v5160_v20 = vld [vmem:[#allocation7 + $0xf0] ss:$8 sps:$4 sm:$0xff]   ;;  %v5839_v22 = vld [vmem:[%s5720_s14 + $0xc0] ss:$8 sps:$4 sm:$0xff]  }
  0xb9   : > { %v5842_v23 = vld [vmem:[%s5720_s14 + $0xd4] ss:$8 sps:$4 sm:$0xff]  }
  0xbb   : > { %1512 = vmatpush1.bf16.msra.mxu1 %v4432_v26  ;;  %v4504_v26 = vcombine.low %v404_v8, %v408_v9  ;;  %v5152_v8 = vld [vmem:[#allocation7 + $0xd4] ss:$8 sps:$4 sm:$0xff]   ;;  %v5154_v9 = vld [vmem:[#allocation7 + $0xd0] ss:$8 sps:$4 sm:$0xff]  }
  0xbc   : > { %1513 = vmatprep.subr.bf16.mxu1 %v4441_v30  ;;  %v424_v30 = vld [vmem:[#allocation5 + $0x3a8] sm:$0xff] }
  0xbd   : > { %v4520_v44 = vcombine.low %v420_v28, %v424_v30 }
  0xbe   : > { %1365 = vmatmul.mubr.bf16.gmra.mrb[8].mxu1 %v5757_v29 }
  0xbf   : > { %1374 = vmatprep.mubr.bf16.mxu1 %v5760_v31  ;;  %1514 = vmatpush1.bf16.msra.mxu1 %v4440_v32  ;;  %v5128_v32 = vld [vmem:[#allocation7 + $0x54] ss:$8 sps:$4 sm:$0xff]  }
  0xc0   : > { %1515 = vmatprep.subr.bf16.mxu1 %v4449_v35  ;;  %v5131_v35 = vld [vmem:[#allocation7 + $0x64] ss:$8 sps:$4 sm:$0xff]   ;;  %3267 = vmatprep.subr.bf16.mxu0 %v5128_v32  ;;  %v5858_v32 = vld [vmem:[%s5720_s14 + $0xf4] ss:$8 sps:$4 sm:$0xff]  }
  0xc1   : > { %3268 = vmatpush1.bf16.msra.mxu0 %v5130_v34  ;;  %v317_v34 = vld [vmem:[#allocation5 + $0x50] sm:$0xff] }
  0xc2   : > { %3269 = vmatprep.subr.bf16.mxu0 %v5131_v35  ;;  %v321_v35 = vld [vmem:[#allocation5 + $0x70] sm:$0xff] }
  0xc3   : > { %1516 = vmatpush1.bf16.msra.mxu1 %v4448_v36  ;;  %v4521_v36 = vcombine.high %v420_v28, %v424_v30  ;;  %v5850_v28 = vld [vmem:[%s5720_s14 + $0xe4] ss:$8 sps:$4 sm:$0xff]   ;;  %v5855_v30 = vld [vmem:[%s5720_s14 + $0xe0] ss:$8 sps:$4 sm:$0xff]  }
  0xc4   : > { %1517 = vmatprep.subr.bf16.mxu1 %v4457_v39  ;;  %v5133_v39 = vld [vmem:[#allocation7 + $0x60] ss:$8 sps:$4 sm:$0xff]  }
  0xc5   : > { %3270 = vmatpush1.bf16.msra.mxu0 %v5133_v39  ;;  %v4418_v39 = vcombine.low %v317_v34, %v321_v35 }
  0xc6   : > { %1375 = vmatmul.mubr.bf16.gmra.mrb[12].mxu1 %v5765_v40  ;;  %3271 = vmatprep.subr.bf16.mxu0 %v5134_v46  ;;  %v337_v46 = vld [vmem:[#allocation5 + $0xf0] sm:$0xff] }
  0xc7   : > { %1384 = vmatprep.mubr.bf16.mxu1 %v5768_v41  ;;  %1518 = vmatpush1.bf16.msra.mxu1 %v4456_v42  ;;  %v5797_v42 = vld [vmem:[%s5720_s14 + $0x70] ss:$8 sps:$4 sm:$0xff]  }
  0xc8   : > { %1519 = vmatprep.subr.bf16.mxu1 %v4465_v43  ;;  %v5800_v43 = vld [vmem:[%s5720_s14 + $0x84] ss:$8 sps:$4 sm:$0xff]  }
  0xc9   : > { %3272 = vmatpush1.bf16.msra.mxu0 %v5136_v48 }
  0xcb   : > { %1520 = vmatpush1.bf16.msra.mxu1 %v4464_v47  ;;  %v4528_v47 = vcombine.low %v428_v37, %v432_v38  ;;  %v325_v37 = vld [vmem:[#allocation5 + $0x90] sm:$0xff] }
  0xcc   : > { %1521 = vmatprep.subr.bf16.mxu1 %v4473_v49  ;;  %v5137_v49 = vld [vmem:[#allocation7 + $0x84] ss:$8 sps:$4 sm:$0xff]   ;;  %v329_v38 = vld [vmem:[#allocation5 + $0xb0] sm:$0xff] }
  0xcd   : > { %3273 = vmatprep.subr.bf16.mxu0 %v5137_v49  ;;  %v4426_v48 = vcombine.low %v325_v37, %v329_v38 }
  0xce   : > { %1385 = vmatmul.mubr.bf16.gmra.mrb[16].mxu1 %v5773_v52  ;;  %3274 = vmatpush1.bf16.msra.mxu0 %v5139_v51  ;;  %v353_v51 = vld [vmem:[#allocation5 + $0x170] sm:$0xff] }
  0xcf   : > { %1394 = vmatprep.mubr.bf16.mxu1 %v5776_v53  ;;  %1522 = vmatpush1.bf16.msra.mxu1 %v4472_v54  ;;  %v5807_v54 = vld [vmem:[%s5720_s14 + $0x80] ss:$8 sps:$4 sm:$0xff]  }
  0xd0   : > { %1523 = vmatprep.subr.bf16.mxu1 %v4481_v55  ;;  %v5810_v55 = vld [vmem:[%s5720_s14 + $0x94] ss:$8 sps:$4 sm:$0xff]   ;;  %3275 = vmatprep.subr.bf16.mxu0 %v5140_v56  ;;  %v4442_v56 = vcombine.low %v341_v12, %v345_v13 }
  0xd2   : > { %3276 = vmatpush1.bf16.msra.mxu0 %v5142_v57 }
  0xd3   : > { %1524 = vmatpush1.bf16.msra.mxu1 %v4480_v59  ;;  %v5145_v59 = vld [vmem:[#allocation7 + $0xa0] ss:$8 sps:$4 sm:$0xff]   ;;  %3277 = vmatprep.subr.bf16.mxu0 %v5143_v58  ;;  %v357_v58 = vld [vmem:[#allocation5 + $0x190] sm:$0xff] }
  0xd4   : > { %1525 = vmatprep.subr.bf16.mxu1 %v4489_v62  ;;  %v5146_v62 = vld [vmem:[#allocation7 + $0xb4] ss:$8 sps:$4 sm:$0xff]  }
  0xd6   : > { %1395 = vmatmul.mubr.bf16.gmra.mrb[20].mxu1 %v5781_v2  ;;  %3278 = vmatpush1.bf16.msra.mxu0 %v5145_v59  ;;  %v361_v59 = vld [vmem:[#allocation5 + $0x1b0] sm:$0xff] }
  0xd7   : > { %1404 = vmatprep.mubr.bf16.mxu1 %v5784_v3  ;;  %1526 = vmatpush1.bf16.msra.mxu1 %v4488_v4  ;;  %v5823_v4 = vld [vmem:[%s5720_s14 + $0xa0] ss:$8 sps:$4 sm:$0xff]  }
  0xd8   : > { %1527 = vmatprep.subr.bf16.mxu1 %v4497_v6  ;;  %3279 = vmatprep.subr.bf16.mxu0 %v5146_v62  ;;  %v5826_v6 = vld [vmem:[%s5720_s14 + $0xb4] ss:$8 sps:$4 sm:$0xff]  }
  0xd9   : > { %v365_v62 = vld [vmem:[#allocation5 + $0x1d0] sm:$0xff] }
  0xda   : > { %3280 = vmatpush1.bf16.msra.mxu0 %v5148_v63  ;;  %v369_v63 = vld [vmem:[#allocation5 + $0x1f0] sm:$0xff] }
  0xdb   : > { %1528 = vmatpush1.bf16.msra.mxu1 %v4496_v11  ;;  %3281 = vmatprep.subr.bf16.mxu0 %v5149_v0  ;;  %v5155_v11 = vld [vmem:[#allocation7 + $0xe4] ss:$8 sps:$4 sm:$0xff]   ;;  %v4458_v0 = vcombine.low %v357_v58, %v361_v59 }
  0xdc   : > { %1529 = vmatprep.subr.bf16.mxu1 %v4505_v16  ;;  %v5158_v16 = vld [vmem:[#allocation7 + $0xf4] ss:$8 sps:$4 sm:$0xff]  }
  0xde   : > { %1405 = vmatmul.mubr.bf16.gmra.mrb[24].mxu1 %v5789_v24  ;;  %3282 = vmatpush1.bf16.msra.mxu0 %v5151_v1  ;;  %v4467_v1 = vcombine.high %v365_v62, %v369_v63 }
  0xdf   : > { %1414 = vmatprep.mubr.bf16.mxu1 %v5792_v25  ;;  %1530 = vmatpush1.bf16.msra.mxu1 %v4504_v26  ;;  %v5163_v26 = vld [vmem:[#allocation7 + $0x104] ss:$8 sps:$4 sm:$0xff]  }
  0xe0   : > { %1531 = vmatprep.subr.bf16.mxu1 %v4513_v27  ;;  %3283 = vmatprep.subr.bf16.mxu0 %v5152_v8  ;;  %v5847_v27 = vld [vmem:[%s5720_s14 + $0xd0] ss:$8 sps:$4 sm:$0xff]  }
  0xe1   : > { %v373_v8 = vld [vmem:[#allocation5 + $0x210] sm:$0xff] }
  0xe2   : > { %3284 = vmatpush1.bf16.msra.mxu0 %v5154_v9  ;;  %v377_v9 = vld [vmem:[#allocation5 + $0x230] sm:$0xff] }
  0xe3   : > { %1532 = vmatpush1.bf16.msra.mxu1 %v4512_v33  ;;  %3285 = vmatprep.subr.bf16.mxu0 %v5155_v11  ;;  %v5863_v33 = vld [vmem:[%s5720_s14 + $0xf0] ss:$8 sps:$4 sm:$0xff]  }
  0xe4   : > { %1533 = vmatprep.subr.bf16.mxu1 %v4521_v36  ;;  %v4419_v36 = vcombine.high %v317_v34, %v321_v35  ;;  %v381_v11 = vld [vmem:[#allocation5 + $0x250] sm:$0xff] }
  0xe5   : > { %v393_v34 = vld [vmem:[#allocation5 + $0x2b0] sm:$0xff] }
  0xe6   : > { %1415 = vmatmul.mubr.bf16.gmra.mrb[28].mxu1 %v5797_v42  ;;  %3286 = vmatpush1.bf16.msra.mxu0 %v5157_v15  ;;  %v385_v15 = vld [vmem:[#allocation5 + $0x270] sm:$0xff] }
  0xe7   : > { %1424 = vmatprep.mubr.bf16.mxu1 %v5800_v43  ;;  %1534 = vmatpush1.bf16.msra.mxu1 %v4520_v44  ;;  %v4427_v44 = vcombine.high %v325_v37, %v329_v38  ;;  %v397_v35 = vld [vmem:[#allocation5 + $0x2d0] sm:$0xff] }
  0xe8   : > { %1535 = vmatprep.subr.bf16.mxu1 %v4529_v45  ;;  %3287 = vmatprep.subr.bf16.mxu0 %v5158_v16  ;;  %v333_v45 = vld [vmem:[#allocation5 + $0xd0] sm:$0xff]  ;;  %v4474_v16 = vcombine.low %v373_v8, %v377_v9 }
  0xe9   : > { %v4435_v49 = vcombine.high %v333_v45, %v337_v46 }
  0xea   : > { %3288 = vmatpush1.bf16.msra.mxu0 %v5160_v20  ;;  %v4483_v20 = vcombine.high %v381_v11, %v385_v15 }
  0xeb   : > { %1536 = vmatpush1.bf16.msra.mxu1 %v4528_v47  ;;  %3450 = vmatprep.subr.bf16.mxu0 %v5163_v26  ;;  %v5872_v47 = vld [vmem:[#allocation5 + $0x18] sm:$0xff]  ;;  %v389_v26 = vld [vmem:[#allocation5 + $0x290] sm:$0xff] }
  0xec   : > { %1698 = vmatprep.subr.bf16.mxu1 %v4411_v50  ;;  %v349_v50 = vld [vmem:[#allocation5 + $0x150] sm:$0xff]  ;;  %v4490_v37 = vcombine.low %v389_v26, %v393_v34 }
  0xed   : > { %v4451_v57 = vcombine.high %v349_v50, %v353_v51 }
  0xee   : > { %1425 = vmatmul.mubr.bf16.gmra.mrb[32].mxu1 %v5807_v54 }
  0xef   : > { %1434 = vmatprep.mubr.bf16.mxu1 %v5810_v55 }
  0xf6   : > { %1435 = vmatmul.mubr.bf16.gmra.mrb[36].mxu1 %v5815_v60 }
  0xf7   : > { %1444 = vmatprep.mubr.bf16.mxu1 %v5818_v61 }
  0xfe   : > { %1445 = vmatmul.mubr.bf16.gmra.mrb[40].mxu1 %v5823_v4 }
  0xff   : > { %1454 = vmatprep.mubr.bf16.mxu1 %v5826_v6 }
 0x106   : > { %1455 = vmatmul.mubr.bf16.gmra.mrb[44].mxu1 %v5831_v10 }
 0x107   : > { %1464 = vmatprep.mubr.bf16.mxu1 %v5834_v14 }
 0x10e   : > { %1465 = vmatmul.mubr.bf16.gmra.mrb[48].mxu1 %v5839_v22 }
 0x10f   : > { %1474 = vmatprep.mubr.bf16.mxu1 %v5842_v23 }
 0x116   : > { %1475 = vmatmul.mubr.bf16.gmra.mrb[52].mxu1 %v5847_v27 }
 0x117   : > { %1484 = vmatprep.mubr.bf16.mxu1 %v5850_v28 }
 0x11e   : > { %1485 = vmatmul.mubr.bf16.gmra.mrb[56].mxu1 %v5855_v30 }
 0x11f   : > { %1494 = vmatprep.mubr.bf16.mxu1 %v5858_v32 }
 0x126   : > { %1495 = vmatmul.mubr.bf16.gmra.mrb[60].mxu1 %v5863_v33 }
 0x127   : > { %1537 = vmatprep.mubr.bf16.mxu1 %v5731_v17  ;;  %v5874_v17 = vld [vmem:[#allocation5 + $0x38] sm:$0xff] }
 0x12e   : > { %1538 = vmatmul.mubr.bf16.vlgmr.msra.gmra.mrb[64].mxu1 %v5735_v5  ;;  %v4412_v5 = vcombine.low %v5872_v47, %v5874_v17 }
 0x12f   : > { %1699 = vmatpush1.bf16.msra.mxu1 %v4410_v18  ;;  %1547 = vmatprep.mubr.bf16.mxu1 %v5738_v7  ;;  %v4434_v7 = vcombine.low %v333_v45, %v337_v46  ;;  %v4443_v18 = vcombine.high %v341_v12, %v345_v13  ;;  %v413_v45 = vld [vmem:[#allocation5 + $0x350] sm:$0xff] }
 0x130   : > { %1700 = vmatprep.subr.bf16.mxu1 %v4419_v36  ;;  %v401_v36 = vld [vmem:[#allocation5 + $0x2f0] sm:$0xff] }
 0x131   : > { %v4499_v38 = vcombine.high %v397_v35, %v401_v36  ;;  %v417_v46 = vld [vmem:[#allocation5 + $0x370] sm:$0xff] }
 0x132   : > { %v421_v12 = vld [vmem:[#allocation5 + $0x390] sm:$0xff] }
 0x133   : > { %1701 = vmatpush1.bf16.msra.mxu1 %v4418_v39  ;;  %v405_v39 = vld [vmem:[#allocation5 + $0x310] sm:$0xff] }
 0x134   : > { %1702 = vmatprep.subr.bf16.mxu1 %v4427_v44  ;;  %v409_v44 = vld [vmem:[#allocation5 + $0x330] sm:$0xff] }
 0x135   : > { %v425_v13 = vld [vmem:[#allocation5 + $0x3b0] sm:$0xff] }
 0x136   : > { %1548 = vmatmul.mubr.bf16.gmra.mrb[68].mxu1 %v5749_v19  ;;  %v4450_v19 = vcombine.low %v349_v50, %v353_v51  ;;  %v4522_v50 = vcombine.low %v421_v12, %v425_v13 }
 0x137   : > { %1557 = vmatprep.mubr.bf16.mxu1 %v5752_v21  ;;  %1703 = vmatpush1.bf16.msra.mxu1 %v4426_v48  ;;  %v4459_v21 = vcombine.high %v357_v58, %v361_v59  ;;  %v4506_v48 = vcombine.low %v405_v39, %v409_v44 }
 0x138   : > { %1704 = vmatprep.subr.bf16.mxu1 %v4435_v49  ;;  %v4515_v49 = vcombine.high %v413_v45, %v417_v46 }
 0x13b   : > { %1705 = vmatpush1.bf16.msra.mxu1 %v4434_v7  ;;  %v429_v7 = vld [vmem:[#allocation5 + $0x3d0] sm:$0xff] }
 0x13c   : > { %1706 = vmatprep.subr.bf16.mxu1 %v4443_v18  ;;  %v433_v18 = vld [vmem:[#allocation5 + $0x3f0] sm:$0xff] }
 0x13d   : > { %v4531_v51 = vcombine.high %v429_v7, %v433_v18 }
 0x13e   : > { %1558 = vmatmul.mubr.bf16.gmra.mrb[72].mxu1 %v5757_v29  ;;  %v4466_v29 = vcombine.low %v365_v62, %v369_v63 }
 0x13f   : > { %1567 = vmatprep.mubr.bf16.mxu1 %v5760_v31  ;;  %1707 = vmatpush1.bf16.msra.mxu1 %v4442_v56  ;;  %v4475_v31 = vcombine.high %v373_v8, %v377_v9  ;;  %v4530_v56 = vcombine.low %v429_v7, %v433_v18 }
 0x140   : > { %1708 = vmatprep.subr.bf16.mxu1 %v4451_v57 }
 0x143   : > { %1709 = vmatpush1.bf16.msra.mxu1 %v4450_v19 }
 0x144   : > { %1710 = vmatprep.subr.bf16.mxu1 %v4459_v21 }
 0x146   : > { %1568 = vmatmul.mubr.bf16.gmra.mrb[76].mxu1 %v5765_v40  ;;  %v4482_v40 = vcombine.low %v381_v11, %v385_v15 }
 0x147   : > { %1577 = vmatprep.mubr.bf16.mxu1 %v5768_v41  ;;  %1711 = vmatpush1.bf16.msra.mxu1 %v4458_v0  ;;  %v4491_v41 = vcombine.high %v389_v26, %v393_v34 }
 0x148   : > { %1712 = vmatprep.subr.bf16.mxu1 %v4467_v1 }
 0x14b   : > { %1713 = vmatpush1.bf16.msra.mxu1 %v4466_v29 }
 0x14c   : > { %1714 = vmatprep.subr.bf16.mxu1 %v4475_v31 }
 0x14e   : > { %1578 = vmatmul.mubr.bf16.gmra.mrb[80].mxu1 %v5773_v52  ;;  %v4498_v52 = vcombine.low %v397_v35, %v401_v36 }
 0x14f   : > { %1587 = vmatprep.mubr.bf16.mxu1 %v5776_v53  ;;  %1715 = vmatpush1.bf16.msra.mxu1 %v4474_v16  ;;  %v4507_v53 = vcombine.high %v405_v39, %v409_v44  ;;  %v5169_v44 = vld [vmem:[#allocation7 + $0x124] ss:$8 sps:$4 sm:$0xff]  }
 0x150   : > { %1716 = vmatprep.subr.bf16.mxu1 %v4483_v20  ;;  %v5161_v20 = vld [vmem:[#allocation7 + $0x100] ss:$8 sps:$4 sm:$0xff]  }
 0x153   : > { %1717 = vmatpush1.bf16.msra.mxu1 %v4482_v40  ;;  %v5166_v40 = vld [vmem:[#allocation7 + $0x114] ss:$8 sps:$4 sm:$0xff]  }
 0x154   : > { %1718 = vmatprep.subr.bf16.mxu1 %v4491_v41 }
 0x156   : > { %1588 = vmatmul.mubr.bf16.gmra.mrb[84].mxu1 %v5781_v2  ;;  %v4514_v2 = vcombine.low %v413_v45, %v417_v46 }
 0x157   : > { %1597 = vmatprep.mubr.bf16.mxu1 %v5784_v3  ;;  %1719 = vmatpush1.bf16.msra.mxu1 %v4490_v37  ;;  %v4523_v3 = vcombine.high %v421_v12, %v425_v13 }
 0x158   : > { %1720 = vmatprep.subr.bf16.mxu1 %v4499_v38 }
 0x15b   : > { %1721 = vmatpush1.bf16.msra.mxu1 %v4498_v52 }
 0x15c   : > { %1722 = vmatprep.subr.bf16.mxu1 %v4507_v53 }
 0x15e   : > { %1598 = vmatmul.mubr.bf16.gmra.mrb[88].mxu1 %v5789_v24  ;;  %v4413_v24 = vcombine.high %v5872_v47, %v5874_v17  ;;  %v5196_v47 = vld [vmem:[#allocation7 + $0x1b4] ss:$8 sps:$4 sm:$0xff]  }
 0x15f   : > { %1607 = vmatprep.mubr.bf16.mxu1 %v5792_v25  ;;  %1723 = vmatpush1.bf16.msra.mxu1 %v4506_v48  ;;  %v440_v25 = vlaneseq }
 0x160   : > { %1724 = vmatprep.subr.bf16.mxu1 %v4515_v49  ;;  %v5167_v49 = vld [vmem:[#allocation7 + $0x120] ss:$8 sps:$4 sm:$0xff]  }
 0x161   : > { %v5896_v57 = vshrl.u32 %v440_v25, 7 }
 0x163   : > { %1725 = vmatpush1.bf16.msra.mxu1 %v4514_v2  ;;  %v5905_v58 = vsub.s32 0, %v5896_v57  ;;  %v5172_v2 = vld [vmem:[#allocation7 + $0x134] ss:$8 sps:$4 sm:$0xff]  }
 0x164   : > { %1726 = vmatprep.subr.bf16.mxu1 %v4523_v3 }
 0x166   : > { %1608 = vmatmul.mubr.bf16.gmra.mrb[92].mxu1 %v5797_v42  ;;  %v435_v42 = vld [vmem:[%s6556_s2] sm:$0xff] }
 0x167   : > { %1617 = vmatprep.mubr.bf16.mxu1 %v5800_v43  ;;  %1727 = vmatpush1.bf16.msra.mxu1 %v4522_v50  ;;  %v5902_v43 = vunpack.c.l.bf16 %v435_v42  ;;  %v5170_v50 = vld [vmem:[#allocation7 + $0x130] ss:$8 sps:$4 sm:$0xff]  }
 0x168   : > { %1728 = vmatprep.subr.bf16.mxu1 %v4531_v51 }
 0x16b   : > { %1729 = vmatpush1.bf16.msra.mxu1 %v4530_v56 }
 0x16c   : > { %1891 = vmatprep.subr.bf16.mxu1 %v4413_v24  ;;  %v5175_v24 = vld [vmem:[#allocation7 + $0x144] ss:$8 sps:$4 sm:$0xff]  }
 0x16e   : > { %1618 = vmatmul.mubr.bf16.gmra.mrb[96].mxu1 %v5807_v54  ;;  %v5909_v54 = vsub.s32 2, %v5896_v57 }
 0x16f   : > { %1627 = vmatprep.mubr.bf16.mxu1 %v5810_v55  ;;  %v443_v55 = vrot.slane %v5902_v43, %v5905_v58 }
 0x170   : > { %v447_v59 = vrot.slane %v5902_v43, %v5909_v54 }
 0x172   : > { %v5920_v19 = vrot.slane %v447_v59, %v5905_v58 }
 0x176   : > { %1628 = vmatmul.mubr.bf16.gmra.mrb[100].mxu1 %v5815_v60  ;;  %v5917_v60 = vrot.slane %v443_v55, %v5905_v58 }
 0x177   : > { %1637 = vmatprep.mubr.bf16.mxu1 %v5818_v61 }
 0x17e   : > { %1638 = vmatmul.mubr.bf16.gmra.mrb[104].mxu1 %v5823_v4 }
 0x17f   : > { %1647 = vmatprep.mubr.bf16.mxu1 %v5826_v6 }
 0x181   : > { %v1346_v61 = vpop.f32.mrb[0].mxu1 }
 0x182   : > { %v1347_v21 = vadd.f32 %v1346_v61, %v5917_v60  ;;  %v1348_v62 = vpop.f32.mrb[1].mxu1 }
 0x183   : > { %v1349_v63 = vadd.f32 %v1348_v62, %v5920_v19  ;;  %v1350_v0 = vpop.f32.mrb[2].mxu1 }
 0x184   : > { %v1351_v1 = vadd.f32 %v1350_v0, %v5917_v60  ;;  %v1352_v8 = vpop.f32.mrb[3].mxu1  ;;  %v2084_v9 = vmax.f32 %v1347_v21, 0.0  ;;  %v5173_v21 = vld [vmem:[#allocation7 + $0x140] ss:$8 sps:$4 sm:$0xff]   ;;  %v5178_v0 = vld [vmem:[#allocation7 + $0x154] ss:$8 sps:$4 sm:$0xff]  }
 0x185   : > { %v1353_v4 = vadd.f32 %v1352_v8, %v5920_v19  ;;  %v2085_v31 = vmax.f32 %v1349_v63, 0.0 }
 0x186   : > { %v2092_v29 = vmax.f32 %v1351_v1, 0.0  ;;  %1648 = vmatmul.mubr.bf16.gmra.mrb[108].mxu1 %v5831_v10 }
 0x187   : > { %v2093_v11 = vmax.f32 %v1353_v4, 0.0  ;;  %1657 = vmatprep.mubr.bf16.mxu1 %v5834_v14  ;;  %v5164_v14 = vld [vmem:[#allocation7 + $0x110] ss:$8 sps:$4 sm:$0xff]  }
 0x188   : > { %v2340_v6 = vpack.c.bf16 %v2092_v29, %v2084_v9  ;;  %v5176_v9 = vld [vmem:[#allocation7 + $0x150] ss:$8 sps:$4 sm:$0xff]  }
 0x189   : > { %v1356_v15 = vpop.f32.mrb[4].mxu1  ;;  %v2341_v16 = vpack.c.bf16 %v2093_v11, %v2085_v31  ;;  %v5181_v11 = vld [vmem:[#allocation7 + $0x164] ss:$8 sps:$4 sm:$0xff]  }
 0x18a   : > { %v1357_v26 = vadd.f32 %v1356_v15, %v5917_v60  ;;  %v1358_v34 = vpop.f32.mrb[5].mxu1 }
 0x18b   : > { %v1359_v41 = vadd.f32 %v1358_v34, %v5920_v19  ;;  %v1360_v35 = vpop.f32.mrb[6].mxu1  ;;  %3289 = vmatprep.mubr.bf16.mxu0 %v2341_v16  ;;  %v5179_v34 = vld [vmem:[#allocation7 + $0x160] ss:$8 sps:$4 sm:$0xff]  }
 0x18c   : > { %v1361_v36 = vadd.f32 %v1360_v35, %v5917_v60  ;;  %v1362_v37 = vpop.f32.mrb[7].mxu1  ;;  %3290 = vmatmul.mubr.bf16.vlgmr.msra.gmra.mrb[0].mxu0 %v2340_v6  ;;  %v2100_v38 = vmax.f32 %v1357_v26, 0.0  ;;  %v5184_v35 = vld [vmem:[#allocation7 + $0x174] ss:$8 sps:$4 sm:$0xff]  }
 0x18d   : > { %v1363_v10 = vadd.f32 %v1362_v37, %v5920_v19  ;;  %3451 = vmatpush1.bf16.msra.mxu0 %v5161_v20  ;;  %v2101_v52 = vmax.f32 %v1359_v41, 0.0 }
 0x18e   : > { %v2108_v39 = vmax.f32 %v1361_v36, 0.0  ;;  %1658 = vmatmul.mubr.bf16.gmra.mrb[112].mxu1 %v5839_v22  ;;  %3452 = vmatprep.subr.bf16.mxu0 %v5166_v40 }
 0x18f   : > { %v2109_v53 = vmax.f32 %v1363_v10, 0.0  ;;  %1667 = vmatprep.mubr.bf16.mxu1 %v5842_v23 }
 0x190   : > { %v2348_v45 = vpack.c.bf16 %v2108_v39, %v2100_v38 }
 0x191   : > { %v2349_v46 = vpack.c.bf16 %v2109_v53, %v2101_v52  ;;  %v1366_v48 = vpop.f32.mrb[8].mxu1  ;;  %3453 = vmatpush1.bf16.msra.mxu0 %v5164_v14  ;;  %v5182_v14 = vld [vmem:[#allocation7 + $0x170] ss:$8 sps:$4 sm:$0xff]  }
 0x192   : > { %v1367_v12 = vadd.f32 %v1366_v48, %v5917_v60  ;;  %v1368_v13 = vpop.f32.mrb[9].mxu1  ;;  %3454 = vmatprep.subr.bf16.mxu0 %v5169_v44  ;;  %v5187_v44 = vld [vmem:[#allocation7 + $0x184] ss:$8 sps:$4 sm:$0xff]  }
 0x193   : > { %v1369_v3 = vadd.f32 %v1368_v13, %v5920_v19  ;;  %v1370_v7 = vpop.f32.mrb[10].mxu1  ;;  %3299 = vmatprep.mubr.bf16.mxu0 %v2349_v46  ;;  %v322_v13 = vld [vmem:[#allocation5 + $0x78] sm:$0xff] }
 0x194   : > { %v1371_v22 = vadd.f32 %v1370_v7, %v5917_v60  ;;  %v1372_v18 = vpop.f32.mrb[11].mxu1  ;;  %3300 = vmatmul.mubr.bf16.gmra.mrb[4].mxu0 %v2348_v45  ;;  %v2116_v51 = vmax.f32 %v1367_v12, 0.0  ;;  %v5953_v45 = vld [vmem:[%s5720_s14 + $0x4] ss:$8 sps:$4 sm:$0xff]   ;;  %v318_v12 = vld [vmem:[#allocation5 + $0x58] sm:$0xff] }
 0x195   : > { %v1373_v23 = vadd.f32 %v1372_v18, %v5920_v19  ;;  %3455 = vmatpush1.bf16.msra.mxu0 %v5167_v49  ;;  %v2117_v25 = vmax.f32 %v1369_v3, 0.0 }
 0x196   : > { %v2124_v56 = vmax.f32 %v1371_v22, 0.0  ;;  %1668 = vmatmul.mubr.bf16.gmra.mrb[116].mxu1 %v5847_v27  ;;  %3456 = vmatprep.subr.bf16.mxu0 %v5172_v2  ;;  %v5185_v2 = vld [vmem:[#allocation7 + $0x180] ss:$8 sps:$4 sm:$0xff]  }
 0x197   : > { %v2125_v42 = vmax.f32 %v1373_v23, 0.0  ;;  %1677 = vmatprep.mubr.bf16.mxu1 %v5850_v28 }
 0x198   : > { %v2356_v55 = vpack.c.bf16 %v2124_v56, %v2116_v51  ;;  %v4421_v51 = vcombine.high %v318_v12, %v322_v13 }
 0x199   : > { %v2357_v59 = vpack.c.bf16 %v2125_v42, %v2117_v25  ;;  %v1376_v61 = vpop.f32.mrb[12].mxu1  ;;  %3457 = vmatpush1.bf16.msra.mxu0 %v5170_v50  ;;  %v330_v25 = vld [vmem:[#allocation5 + $0xb8] sm:$0xff] }
 0x19a   : > { %v1377_v62 = vadd.f32 %v1376_v61, %v5917_v60  ;;  %v1378_v63 = vpop.f32.mrb[13].mxu1  ;;  %3458 = vmatprep.subr.bf16.mxu0 %v5175_v24  ;;  %v326_v24 = vld [vmem:[#allocation5 + $0x98] sm:$0xff]  ;;  %v5961_v61 = vld [vmem:[%s5720_s14] ss:$8 sps:$4 sm:$0xff]  }
 0x19b   : > { %v1379_v1 = vadd.f32 %v1378_v63, %v5920_v19  ;;  %v1380_v8 = vpop.f32.mrb[14].mxu1  ;;  %3309 = vmatprep.mubr.bf16.mxu0 %v2357_v59  ;;  %v5188_v42 = vld [vmem:[#allocation7 + $0x190] ss:$8 sps:$4 sm:$0xff]  }
 0x19c   : > { %v1381_v27 = vadd.f32 %v1380_v8, %v5917_v60  ;;  %v1382_v4 = vpop.f32.mrb[15].mxu1  ;;  %3310 = vmatmul.mubr.bf16.gmra.mrb[8].mxu0 %v2356_v55  ;;  %v2132_v29 = vmax.f32 %v1377_v62, 0.0 }
 0x19d   : > { %v1383_v28 = vadd.f32 %v1382_v4, %v5920_v19  ;;  %3459 = vmatpush1.bf16.msra.mxu0 %v5173_v21  ;;  %v2133_v6 = vmax.f32 %v1379_v1, 0.0  ;;  %v5193_v21 = vld [vmem:[#allocation7 + $0x1a4] ss:$8 sps:$4 sm:$0xff]   ;;  %v4420_v1 = vcombine.low %v318_v12, %v322_v13  ;;  %v5197_v12 = vld [vmem:[#allocation7 + $0x1c0] ss:$8 sps:$4 sm:$0xff]  }
 0x19e   : > { %v2140_v31 = vmax.f32 %v1381_v27, 0.0  ;;  %1678 = vmatmul.mubr.bf16.gmra.mrb[120].mxu1 %v5855_v30  ;;  %3460 = vmatprep.subr.bf16.mxu0 %v5178_v0  ;;  %v5968_v0 = vld [vmem:[%s5720_s14 + $0x14] ss:$8 sps:$4 sm:$0xff]   ;;  %v4429_v27 = vcombine.high %v326_v24, %v330_v25 }
 0x19f   : > { %v2141_v15 = vmax.f32 %v1383_v28, 0.0  ;;  %1687 = vmatprep.mubr.bf16.mxu1 %v5858_v32 }
 0x1a0   : > { %v2364_v16 = vpack.c.bf16 %v2140_v31, %v2132_v29  ;;  %v338_v29 = vld [vmem:[#allocation5 + $0xf8] sm:$0xff]  ;;  %v5191_v31 = vld [vmem:[#allocation7 + $0x1a0] ss:$8 sps:$4 sm:$0xff]  }
 0x1a1   : > { %v2365_v20 = vpack.c.bf16 %v2141_v15, %v2133_v6  ;;  %v1386_v26 = vpop.f32.mrb[16].mxu1  ;;  %3461 = vmatpush1.bf16.msra.mxu0 %v5176_v9  ;;  %v334_v9 = vld [vmem:[#allocation5 + $0xd8] sm:$0xff]  ;;  %v4428_v15 = vcombine.low %v326_v24, %v330_v25 }
 0x1a2   : > { %v1387_v40 = vadd.f32 %v1386_v26, %v5917_v60  ;;  %v1388_v41 = vpop.f32.mrb[17].mxu1  ;;  %3462 = vmatprep.subr.bf16.mxu0 %v5181_v11  ;;  %v4437_v26 = vcombine.high %v334_v9, %v338_v29  ;;  %v362_v24 = vld [vmem:[#allocation5 + $0x1b8] sm:$0xff] }
 0x1a3   : > { %v1389_v36 = vadd.f32 %v1388_v41, %v5920_v19  ;;  %v1390_v30 = vpop.f32.mrb[18].mxu1  ;;  %3319 = vmatprep.mubr.bf16.mxu0 %v2365_v20  ;;  %v346_v41 = vld [vmem:[#allocation5 + $0x138] sm:$0xff] }
 0x1a4   : > { %v1391_v37 = vadd.f32 %v1390_v30, %v5917_v60  ;;  %v1392_v10 = vpop.f32.mrb[19].mxu1  ;;  %3320 = vmatmul.mubr.bf16.gmra.mrb[12].mxu0 %v2364_v16  ;;  %v2148_v38 = vmax.f32 %v1387_v40, 0.0  ;;  %v342_v40 = vld [vmem:[#allocation5 + $0x118] sm:$0xff] }
 0x1a5   : > { %v1393_v32 = vadd.f32 %v1392_v10, %v5920_v19  ;;  %3463 = vmatpush1.bf16.msra.mxu0 %v5179_v34  ;;  %v2149_v52 = vmax.f32 %v1389_v36, 0.0  ;;  %v5199_v10 = vld [vmem:[#allocation7 + $0x1c4] ss:$8 sps:$4 sm:$0xff]   ;;  %v5200_v25 = vld [vmem:[#allocation7 + $0x1d0] ss:$8 sps:$4 sm:$0xff]  }
 0x1a6   : > { %v2156_v39 = vmax.f32 %v1391_v37, 0.0  ;;  %1688 = vmatmul.mubr.bf16.gmra.mrb[124].mxu1 %v5863_v33  ;;  %3464 = vmatprep.subr.bf16.mxu0 %v5184_v35  ;;  %v5190_v33 = vld [vmem:[#allocation7 + $0x194] ss:$8 sps:$4 sm:$0xff]   ;;  %v5194_v35 = vld [vmem:[#allocation7 + $0x1b0] ss:$8 sps:$4 sm:$0xff]  }
 0x1a7   : > { %v2157_v53 = vmax.f32 %v1393_v32, 0.0  ;;  %1730 = vmatprep.mubr.bf16.mxu1 %v5953_v45  ;;  %v5976_v37 = vld [vmem:[%s5720_s14 + $0x10] ss:$8 sps:$4 sm:$0xff]  }
 0x1a8   : > { %v2372_v46 = vpack.c.bf16 %v2156_v39, %v2148_v38  ;;  %v5980_v38 = vld [vmem:[%s5720_s14 + $0x24] ss:$8 sps:$4 sm:$0xff]   ;;  %v4436_v39 = vcombine.low %v334_v9, %v338_v29  ;;  %v366_v29 = vld [vmem:[#allocation5 + $0x1d8] sm:$0xff] }
 0x1a9   : > { %v2373_v48 = vpack.c.bf16 %v2157_v53, %v2149_v52  ;;  %v1396_v49 = vpop.f32.mrb[20].mxu1  ;;  %3465 = vmatpush1.bf16.msra.mxu0 %v5182_v14  ;;  %v4445_v52 = vcombine.high %v342_v40, %v346_v41 }
 0x1aa   : > { %v1397_v3 = vadd.f32 %v1396_v49, %v5917_v60  ;;  %v1398_v7 = vpop.f32.mrb[21].mxu1  ;;  %3466 = vmatprep.subr.bf16.mxu0 %v5187_v44  ;;  %v354_v49 = vld [vmem:[#allocation5 + $0x178] sm:$0xff] }
 0x1ab   : > { %v1399_v22 = vadd.f32 %v1398_v7, %v5920_v19  ;;  %v1400_v18 = vpop.f32.mrb[22].mxu1  ;;  %3329 = vmatprep.mubr.bf16.mxu0 %v2373_v48  ;;  %v350_v48 = vld [vmem:[#allocation5 + $0x158] sm:$0xff] }
 0x1ac   : > { %v1401_v23 = vadd.f32 %v1400_v18, %v5917_v60  ;;  %v1402_v50 = vpop.f32.mrb[23].mxu1  ;;  %3330 = vmatmul.mubr.bf16.gmra.mrb[16].mxu0 %v2372_v46  ;;  %v2164_v55 = vmax.f32 %v1397_v3, 0.0  ;;  %v5202_v3 = vld [vmem:[#allocation7 + $0x1d4] ss:$8 sps:$4 sm:$0xff]  }
 0x1ad   : > { %v1403_v56 = vadd.f32 %v1402_v50, %v5920_v19  ;;  %3467 = vmatpush1.bf16.msra.mxu0 %v5185_v2  ;;  %v2165_v62 = vmax.f32 %v1399_v22, 0.0  ;;  %v4444_v22 = vcombine.low %v342_v40, %v346_v41  ;;  %v4453_v50 = vcombine.high %v350_v48, %v354_v49  ;;  %v374_v41 = vld [vmem:[#allocation5 + $0x218] sm:$0xff] }
 0x1ae   : > { %v2172_v59 = vmax.f32 %v1401_v23, 0.0  ;;  %1731 = vmatmul.mubr.bf16.vlgmr.msra.gmra.mrb[128].mxu1 %v5961_v61  ;;  %3468 = vmatprep.subr.bf16.mxu0 %v5190_v33 }
 0x1af   : > { %v2173_v63 = vmax.f32 %v1403_v56, 0.0  ;;  %1892 = vmatpush1.bf16.msra.mxu1 %v4412_v5  ;;  %1740 = vmatprep.mubr.bf16.mxu1 %v5968_v0  ;;  %v358_v56 = vld [vmem:[#allocation5 + $0x198] sm:$0xff] }
 0x1b0   : > { %v2380_v8 = vpack.c.bf16 %v2172_v59, %v2164_v55  ;;  %1893 = vmatprep.subr.bf16.mxu1 %v4421_v51  ;;  %v5988_v59 = vld [vmem:[%s5720_s14 + $0x20] ss:$8 sps:$4 sm:$0xff]  }
 0x1b1   : > { %v2381_v4 = vpack.c.bf16 %v2173_v63, %v2165_v62  ;;  %v1406_v28 = vpop.f32.mrb[24].mxu1  ;;  %3469 = vmatpush1.bf16.msra.mxu0 %v5188_v42 }
 0x1b2   : > { %v1407_v11 = vadd.f32 %v1406_v28, %v5917_v60  ;;  %v1408_v6 = vpop.f32.mrb[25].mxu1  ;;  %3470 = vmatprep.subr.bf16.mxu0 %v5193_v21  ;;  %v5205_v21 = vld [vmem:[#allocation7 + $0x1e4] ss:$8 sps:$4 sm:$0xff]  }
 0x1b3   : > { %v1409_v17 = vadd.f32 %v1408_v6, %v5920_v19  ;;  %v1410_v5 = vpop.f32.mrb[26].mxu1  ;;  %3339 = vmatprep.mubr.bf16.mxu0 %v2381_v4  ;;  %1894 = vmatpush1.bf16.msra.mxu1 %v4420_v1  ;;  %v5992_v1 = vld [vmem:[%s5720_s14 + $0x34] ss:$8 sps:$4 sm:$0xff]   ;;  %v4461_v4 = vcombine.high %v358_v56, %v362_v24 }
 0x1b4   : > { %v1411_v16 = vadd.f32 %v1410_v5, %v5917_v60  ;;  %v1412_v20 = vpop.f32.mrb[27].mxu1  ;;  %3340 = vmatmul.mubr.bf16.gmra.mrb[20].mxu0 %v2380_v8  ;;  %1895 = vmatprep.subr.bf16.mxu1 %v4429_v27  ;;  %v2180_v36 = vmax.f32 %v1407_v11, 0.0  ;;  %v4452_v8 = vcombine.low %v350_v48, %v354_v49  ;;  %v5203_v11 = vld [vmem:[#allocation7 + $0x1e0] ss:$8 sps:$4 sm:$0xff]  }
 0x1b5   : > { %v1413_v34 = vadd.f32 %v1412_v20, %v5920_v19  ;;  %3471 = vmatpush1.bf16.msra.mxu0 %v5191_v31  ;;  %v2181_v32 = vmax.f32 %v1409_v17, 0.0  ;;  %v370_v31 = vld [vmem:[#allocation5 + $0x1f8] sm:$0xff] }
 0x1b6   : > { %v2188_v30 = vmax.f32 %v1411_v16, 0.0  ;;  %1741 = vmatmul.mubr.bf16.gmra.mrb[132].mxu1 %v5976_v37  ;;  %3472 = vmatprep.subr.bf16.mxu0 %v5196_v47  ;;  %v5208_v17 = vld [vmem:[#allocation7 + $0x1f4] ss:$8 sps:$4 sm:$0xff]   ;;  %v4460_v16 = vcombine.low %v358_v56, %v362_v24 }
 0x1b7   : > { %v2189_v14 = vmax.f32 %v1413_v34, 0.0  ;;  %1750 = vmatprep.mubr.bf16.mxu1 %v5980_v38  ;;  %1896 = vmatpush1.bf16.msra.mxu1 %v4428_v15  ;;  %v4469_v34 = vcombine.high %v366_v29, %v370_v31  ;;  %v390_v24 = vld [vmem:[#allocation5 + $0x298] sm:$0xff] }
 0x1b8   : > { %v2388_v44 = vpack.c.bf16 %v2188_v30, %v2180_v36  ;;  %1897 = vmatprep.subr.bf16.mxu1 %v4437_v26  ;;  %v5206_v36 = vld [vmem:[#allocation7 + $0x1f0] ss:$8 sps:$4 sm:$0xff]  }
 0x1b9   : > { %v2389_v53 = vpack.c.bf16 %v2189_v14, %v2181_v32  ;;  %v1416_v46 = vpop.f32.mrb[28].mxu1  ;;  %3473 = vmatpush1.bf16.msra.mxu0 %v5194_v35  ;;  %v378_v35 = vld [vmem:[#allocation5 + $0x238] sm:$0xff]  ;;  %v5211_v14 = vld [vmem:[#allocation7 + $0x204] ss:$8 sps:$4 sm:$0xff]  }
 0x1ba   : > { %v1417_v13 = vadd.f32 %v1416_v46, %v5917_v60  ;;  %v1418_v2 = vpop.f32.mrb[29].mxu1  ;;  %3474 = vmatprep.subr.bf16.mxu0 %v5199_v10  ;;  %v6000_v32 = vld [vmem:[%s5720_s14 + $0x30] ss:$8 sps:$4 sm:$0xff]   ;;  %v4477_v48 = vcombine.high %v374_v41, %v378_v35 }
 0x1bb   : > { %v1419_v7 = vadd.f32 %v1418_v2, %v5920_v19  ;;  %v1420_v33 = vpop.f32.mrb[30].mxu1  ;;  %3349 = vmatprep.mubr.bf16.mxu0 %v2389_v53  ;;  %1898 = vmatpush1.bf16.msra.mxu1 %v4436_v39  ;;  %v4468_v53 = vcombine.low %v366_v29, %v370_v31  ;;  %v386_v2 = vld [vmem:[#allocation5 + $0x278] sm:$0xff] }
 0x1bc   : > { %v1421_v18 = vadd.f32 %v1420_v33, %v5917_v60  ;;  %v1422_v23 = vpop.f32.mrb[31].mxu1  ;;  %3350 = vmatmul.mubr.bf16.gmra.mrb[24].mxu0 %v2388_v44  ;;  %1899 = vmatprep.subr.bf16.mxu1 %v4445_v52  ;;  %v2196_v42 = vmax.f32 %v1417_v13, 0.0  ;;  %v6004_v52 = vld [vmem:[%s5720_s14 + $0x44] ss:$8 sps:$4 sm:$0xff]   ;;  %v382_v13 = vld [vmem:[#allocation5 + $0x258] sm:$0xff] }
 0x1bd   : > { %v1423_v51 = vadd.f32 %v1422_v23, %v5920_v19  ;;  %3475 = vmatpush1.bf16.msra.mxu0 %v5197_v12  ;;  %v2197_v62 = vmax.f32 %v1419_v7, 0.0  ;;  %v398_v31 = vld [vmem:[#allocation5 + $0x2d8] sm:$0xff] }
 0x1be   : > { %v2204_v55 = vmax.f32 %v1421_v18, 0.0  ;;  %1751 = vmatmul.mubr.bf16.gmra.mrb[136].mxu1 %v5988_v59  ;;  %3476 = vmatprep.subr.bf16.mxu0 %v5202_v3  ;;  %v4476_v18 = vcombine.low %v374_v41, %v378_v35  ;;  %v410_v41 = vld [vmem:[#allocation5 + $0x338] sm:$0xff] }
 0x1bf   : > { %v2205_v63 = vmax.f32 %v1423_v51, 0.0  ;;  %1760 = vmatprep.mubr.bf16.mxu1 %v5992_v1  ;;  %1900 = vmatpush1.bf16.msra.mxu1 %v4444_v22  ;;  %v4485_v51 = vcombine.high %v382_v13, %v386_v2 }
 0x1c0   : > { %v2396_v27 = vpack.c.bf16 %v2204_v55, %v2196_v42  ;;  %1901 = vmatprep.subr.bf16.mxu1 %v4453_v50 }
 0x1c1   : > { %v2397_v28 = vpack.c.bf16 %v2205_v63, %v2197_v62  ;;  %v1426_v9 = vpop.f32.mrb[32].mxu1  ;;  %3477 = vmatpush1.bf16.msra.mxu0 %v5200_v25  ;;  %v394_v25 = vld [vmem:[#allocation5 + $0x2b8] sm:$0xff] }
 0x1c2   : > { %v1427_v6 = vadd.f32 %v1426_v9, %v5917_v60  ;;  %v1428_v47 = vpop.f32.mrb[33].mxu1  ;;  %3478 = vmatprep.subr.bf16.mxu0 %v5205_v21  ;;  %v6012_v21 = vld [vmem:[%s5720_s14 + $0x40] ss:$8 sps:$4 sm:$0xff]  }
 0x1c3   : > { %v1429_v5 = vadd.f32 %v1428_v47, %v5920_v19  ;;  %v1430_v15 = vpop.f32.mrb[34].mxu1  ;;  %3359 = vmatprep.mubr.bf16.mxu0 %v2397_v28  ;;  %1902 = vmatpush1.bf16.msra.mxu1 %v4452_v8  ;;  %v6016_v8 = vld [vmem:[%s5720_s14 + $0x54] ss:$8 sps:$4 sm:$0xff]   ;;  %v4493_v28 = vcombine.high %v390_v24, %v394_v25 }
 0x1c4   : > { %v1431_v20 = vadd.f32 %v1430_v15, %v5917_v60  ;;  %v1432_v26 = vpop.f32.mrb[35].mxu1  ;;  %3360 = vmatmul.mubr.bf16.gmra.mrb[28].mxu0 %v2396_v27  ;;  %1903 = vmatprep.subr.bf16.mxu1 %v4461_v4  ;;  %v2212_v30 = vmax.f32 %v1427_v6, 0.0  ;;  %v4484_v27 = vcombine.low %v382_v13, %v386_v2  ;;  %v4492_v15 = vcombine.low %v390_v24, %v394_v25  ;;  %v418_v13 = vld [vmem:[#allocation5 + $0x378] sm:$0xff] }
 0x1c5   : > { %v1433_v40 = vadd.f32 %v1432_v26, %v5920_v19  ;;  %3479 = vmatpush1.bf16.msra.mxu0 %v5203_v11  ;;  %v2213_v39 = vmax.f32 %v1429_v5, 0.0  ;;  %v402_v11 = vld [vmem:[#allocation5 + $0x2f8] sm:$0xff] }
 0x1c6   : > { %v2220_v10 = vmax.f32 %v1431_v20, 0.0  ;;  %1761 = vmatmul.mubr.bf16.gmra.mrb[140].mxu1 %v6000_v32  ;;  %3480 = vmatprep.subr.bf16.mxu0 %v5208_v17  ;;  %v4501_v26 = vcombine.high %v398_v31, %v402_v11  ;;  %v426_v24 = vld [vmem:[#allocation5 + $0x3b8] sm:$0xff] }
 0x1c7   : > { %v2221_v44 = vmax.f32 %v1433_v40, 0.0  ;;  %1770 = vmatprep.mubr.bf16.mxu1 %v6004_v52  ;;  %1904 = vmatpush1.bf16.msra.mxu1 %v4460_v16  ;;  %v406_v40 = vld [vmem:[#allocation5 + $0x318] sm:$0xff] }
 0x1c8   : > { %v2404_v46 = vpack.c.bf16 %v2220_v10, %v2212_v30  ;;  %1905 = vmatprep.subr.bf16.mxu1 %v4469_v34  ;;  %v6024_v30 = vld [vmem:[%s5720_s14 + $0x50] ss:$8 sps:$4 sm:$0xff]  }
 0x1c9   : > { %v2405_v49 = vpack.c.bf16 %v2221_v44, %v2213_v39  ;;  %v1436_v12 = vpop.f32.mrb[36].mxu1  ;;  %3481 = vmatpush1.bf16.msra.mxu0 %v5206_v36  ;;  %v6028_v39 = vld [vmem:[%s5720_s14 + $0x64] ss:$8 sps:$4 sm:$0xff]   ;;  %v4500_v44 = vcombine.low %v398_v31, %v402_v11  ;;  %v430_v11 = vld [vmem:[#allocation5 + $0x3d8] sm:$0xff] }
 0x1ca   : > { %v1437_v3 = vadd.f32 %v1436_v12, %v5917_v60  ;;  %v1438_v7 = vpop.f32.mrb[37].mxu1  ;;  %3643 = vmatprep.subr.bf16.mxu0 %v5211_v14  ;;  %v414_v12 = vld [vmem:[#allocation5 + $0x358] sm:$0xff] }
 0x1cb   : > { %v1439_v33 = vadd.f32 %v1438_v7, %v5920_v19  ;;  %v1440_v22 = vpop.f32.mrb[38].mxu1  ;;  %3369 = vmatprep.mubr.bf16.mxu0 %v2405_v49  ;;  %1906 = vmatpush1.bf16.msra.mxu1 %v4468_v53 }
 0x1cc   : > { %v1441_v23 = vadd.f32 %v1440_v22, %v5917_v60  ;;  %v1442_v50 = vpop.f32.mrb[39].mxu1  ;;  %3370 = vmatmul.mubr.bf16.gmra.mrb[32].mxu0 %v2404_v46  ;;  %1907 = vmatprep.subr.bf16.mxu1 %v4477_v48  ;;  %v2228_v42 = vmax.f32 %v1437_v3, 0.0  ;;  %v4509_v46 = vcombine.high %v406_v40, %v410_v41  ;;  %v4508_v22 = vcombine.low %v406_v40, %v410_v41 }
 0x1cd   : > { %v1443_v56 = vadd.f32 %v1442_v50, %v5920_v19  ;;  %v2229_v62 = vmax.f32 %v1439_v33, 0.0  ;;  %v4517_v50 = vcombine.high %v414_v12, %v418_v13 }
 0x1ce   : > { %v2236_v55 = vmax.f32 %v1441_v23, 0.0  ;;  %1771 = vmatmul.mubr.bf16.gmra.mrb[144].mxu1 %v6012_v21 }
 0x1cf   : > { %v2237_v63 = vmax.f32 %v1443_v56, 0.0  ;;  %1780 = vmatprep.mubr.bf16.mxu1 %v6016_v8  ;;  %1908 = vmatpush1.bf16.msra.mxu1 %v4476_v18  ;;  %v422_v56 = vld [vmem:[#allocation5 + $0x398] sm:$0xff] }
 0x1d0   : > { %v2412_v4 = vpack.c.bf16 %v2236_v55, %v2228_v42  ;;  %1909 = vmatprep.subr.bf16.mxu1 %v4485_v51  ;;  %v6036_v55 = vld [vmem:[%s5720_s14 + $0x60] ss:$8 sps:$4 sm:$0xff]  }
 0x1d1   : > { %v2413_v9 = vpack.c.bf16 %v2237_v63, %v2229_v62  ;;  %v1446_v29 = vpop.f32.mrb[40].mxu1 }
 0x1d2   : > { %v1447_v6 = vadd.f32 %v1446_v29, %v5917_v60  ;;  %v1448_v47 = vpop.f32.mrb[41].mxu1 }
 0x1d3   : > { %v1449_v17 = vadd.f32 %v1448_v47, %v5920_v19  ;;  %v1450_v5 = vpop.f32.mrb[42].mxu1  ;;  %3379 = vmatprep.mubr.bf16.mxu0 %v2413_v9  ;;  %1910 = vmatpush1.bf16.msra.mxu1 %v4484_v27  ;;  %v6040_v27 = vld [vmem:[%s5720_s14 + $0x74] ss:$8 sps:$4 sm:$0xff]   ;;  %v4525_v9 = vcombine.high %v422_v56, %v426_v24 }
 0x1d4   : > { %v1451_v16 = vadd.f32 %v1450_v5, %v5917_v60  ;;  %v1452_v20 = vpop.f32.mrb[43].mxu1  ;;  %3380 = vmatmul.mubr.bf16.gmra.mrb[36].mxu0 %v2412_v4  ;;  %1911 = vmatprep.subr.bf16.mxu1 %v4493_v28  ;;  %v2244_v35 = vmax.f32 %v1447_v6, 0.0  ;;  %v4516_v4 = vcombine.low %v414_v12, %v418_v13  ;;  %v434_v6 = vld [vmem:[#allocation5 + $0x3f8] sm:$0xff] }
 0x1d5   : > { %v1453_v34 = vadd.f32 %v1452_v20, %v5920_v19  ;;  %v2245_v10 = vmax.f32 %v1449_v17, 0.0 }
 0x1d6   : > { %v2252_v36 = vmax.f32 %v1451_v16, 0.0  ;;  %1781 = vmatmul.mubr.bf16.gmra.mrb[148].mxu1 %v6024_v30  ;;  %v4524_v16 = vcombine.low %v422_v56, %v426_v24  ;;  %v6064_v24 = vld [vmem:[%s5720_s14 + $0x94] ss:$8 sps:$4 sm:$0xff]  }
 0x1d7   : > { %v2253_v14 = vmax.f32 %v1453_v34, 0.0  ;;  %1790 = vmatprep.mubr.bf16.mxu1 %v6028_v39  ;;  %1912 = vmatpush1.bf16.msra.mxu1 %v4492_v15  ;;  %v4533_v34 = vcombine.high %v430_v11, %v434_v6 }
 0x1d8   : > { %v2420_v53 = vpack.c.bf16 %v2252_v36, %v2244_v35  ;;  %1913 = vmatprep.subr.bf16.mxu1 %v4501_v26  ;;  %v6048_v36 = vld [vmem:[%s5720_s14 + $0x70] ss:$8 sps:$4 sm:$0xff]  }
 0x1d9   : > { %v2421_v48 = vpack.c.bf16 %v2253_v14, %v2245_v10  ;;  %v1456_v49 = vpop.f32.mrb[44].mxu1 }
 0x1da   : > { %v1457_v2 = vadd.f32 %v1456_v49, %v5917_v60  ;;  %v1458_v3 = vpop.f32.mrb[45].mxu1 }
 0x1db   : > { %v1459_v7 = vadd.f32 %v1458_v3, %v5920_v19  ;;  %v1460_v33 = vpop.f32.mrb[46].mxu1  ;;  %3389 = vmatprep.mubr.bf16.mxu0 %v2421_v48  ;;  %1914 = vmatpush1.bf16.msra.mxu1 %v4500_v44  ;;  %v6052_v44 = vld [vmem:[%s5720_s14 + $0x84] ss:$8 sps:$4 sm:$0xff]  }
 0x1dc   : > { %v1461_v18 = vadd.f32 %v1460_v33, %v5917_v60  ;;  %v1462_v23 = vpop.f32.mrb[47].mxu1  ;;  %3390 = vmatmul.mubr.bf16.gmra.mrb[40].mxu0 %v2420_v53  ;;  %1915 = vmatprep.subr.bf16.mxu1 %v4509_v46  ;;  %v2260_v25 = vmax.f32 %v1457_v2, 0.0  ;;  %v4532_v53 = vcombine.low %v430_v11, %v434_v6 }
 0x1dd   : > { %v1463_v51 = vadd.f32 %v1462_v23, %v5920_v19  ;;  %v2261_v62 = vmax.f32 %v1459_v7, 0.0 }
 0x1de   : > { %v2268_v42 = vmax.f32 %v1461_v18, 0.0  ;;  %1791 = vmatmul.mubr.bf16.gmra.mrb[152].mxu1 %v6036_v55 }
 0x1df   : > { %v2269_v63 = vmax.f32 %v1463_v51, 0.0  ;;  %1800 = vmatprep.mubr.bf16.mxu1 %v6040_v27  ;;  %1916 = vmatpush1.bf16.msra.mxu1 %v4508_v22 }
 0x1e0   : > { %v2428_v28 = vpack.c.bf16 %v2268_v42, %v2260_v25  ;;  %1917 = vmatprep.subr.bf16.mxu1 %v4517_v50  ;;  %v6060_v50 = vld [vmem:[%s5720_s14 + $0x80] ss:$8 sps:$4 sm:$0xff]  }
 0x1e1   : > { %v2429_v29 = vpack.c.bf16 %v2269_v63, %v2261_v62  ;;  %v1466_v31 = vpop.f32.mrb[48].mxu1 }
 0x1e2   : > { %v1467_v47 = vadd.f32 %v1466_v31, %v5917_v60  ;;  %v1468_v17 = vpop.f32.mrb[49].mxu1 }
 0x1e3   : > { %v1469_v5 = vadd.f32 %v1468_v17, %v5920_v19  ;;  %v1470_v15 = vpop.f32.mrb[50].mxu1  ;;  %3399 = vmatprep.mubr.bf16.mxu0 %v2429_v29  ;;  %1918 = vmatpush1.bf16.msra.mxu1 %v4516_v4  ;;  %v6072_v17 = vld [vmem:[%s5720_s14 + $0x90] ss:$8 sps:$4 sm:$0xff]  }
 0x1e4   : > { %v1471_v20 = vadd.f32 %v1470_v15, %v5917_v60  ;;  %v1472_v26 = vpop.f32.mrb[51].mxu1  ;;  %3400 = vmatmul.mubr.bf16.gmra.mrb[44].mxu0 %v2428_v28  ;;  %1919 = vmatprep.subr.bf16.mxu1 %v4525_v9  ;;  %v2276_v41 = vmax.f32 %v1467_v47, 0.0 }
 0x1e5   : > { %v1473_v40 = vadd.f32 %v1472_v26, %v5920_v19  ;;  %v2277_v10 = vmax.f32 %v1469_v5, 0.0  ;;  %v450_v5 = vsub.s32 4, %v5896_v57  ;;  %v454_v26 = vsub.s32 6, %v5896_v57 }
 0x1e6   : > { %v2284_v35 = vmax.f32 %v1471_v20, 0.0  ;;  %1801 = vmatmul.mubr.bf16.gmra.mrb[156].mxu1 %v6048_v36  ;;  %v6077_v20 = vld [vmem:[%s5720_s14 + $0xa4] ss:$8 sps:$4 sm:$0xff]  }
 0x1e7   : > { %v2285_v14 = vmax.f32 %v1473_v40, 0.0  ;;  %1810 = vmatprep.mubr.bf16.mxu1 %v6052_v44  ;;  %1920 = vmatpush1.bf16.msra.mxu1 %v4524_v16 }
 0x1e8   : > { %v2436_v46 = vpack.c.bf16 %v2284_v35, %v2276_v41  ;;  %1921 = vmatprep.subr.bf16.mxu1 %v4533_v34 }
 0x1e9   : > { %v2437_v48 = vpack.c.bf16 %v2285_v14, %v2277_v10  ;;  %v1476_v49 = vpop.f32.mrb[52].mxu1  ;;  %v451_v14 = vrot.slane %v5902_v43, %v450_v5 }
 0x1ea   : > { %v1477_v12 = vadd.f32 %v1476_v49, %v5917_v60  ;;  %v1478_v13 = vpop.f32.mrb[53].mxu1 }
 0x1eb   : > { %v1479_v2 = vadd.f32 %v1478_v13, %v5920_v19  ;;  %v1480_v3 = vpop.f32.mrb[54].mxu1  ;;  %3409 = vmatprep.mubr.bf16.mxu0 %v2437_v48  ;;  %1922 = vmatpush1.bf16.msra.mxu1 %v4532_v53  ;;  %v455_v48 = vrot.slane %v5902_v43, %v454_v26  ;;  %v6102_v43 = vld [vmem:[%s5720_s14 + $0xb4] ss:$8 sps:$4 sm:$0xff]  }
 0x1ec   : > { %v1481_v7 = vadd.f32 %v1480_v3, %v5917_v60  ;;  %v1482_v33 = vpop.f32.mrb[55].mxu1  ;;  %3410 = vmatmul.mubr.bf16.gmra.mrb[48].mxu0 %v2436_v46  ;;  %v2292_v18 = vmax.f32 %v1477_v12, 0.0 }
 0x1ed   : > { %v1483_v22 = vadd.f32 %v1482_v33, %v5920_v19  ;;  %v2293_v51 = vmax.f32 %v1479_v2, 0.0  ;;  %v6096_v33 = vrot.slane %v451_v14, %v5905_v58 }
 0x1ee   : > { %v2300_v23 = vmax.f32 %v1481_v7, 0.0  ;;  %1811 = vmatmul.mubr.bf16.gmra.mrb[160].mxu1 %v6060_v50  ;;  %v6092_v7 = vld [vmem:[%s5720_s14 + $0xa0] ss:$8 sps:$4 sm:$0xff]  }
 0x1ef   : > { %v2301_v56 = vmax.f32 %v1483_v22, 0.0  ;;  %1820 = vmatprep.mubr.bf16.mxu1 %v6064_v24 }
 0x1f0   : > { %v2444_v25 = vpack.c.bf16 %v2300_v23, %v2292_v18  ;;  %v6099_v23 = vrot.slane %v455_v48, %v5905_v58 }
 0x1f1   : > { %v2445_v42 = vpack.c.bf16 %v2301_v56, %v2293_v51  ;;  %v1486_v62 = vpop.f32.mrb[56].mxu1 }
 0x1f2   : > { %v1487_v63 = vadd.f32 %v1486_v62, %v5917_v60  ;;  %v1488_v4 = vpop.f32.mrb[57].mxu1 }
 0x1f3   : > { %v1489_v28 = vadd.f32 %v1488_v4, %v5920_v19  ;;  %v1490_v9 = vpop.f32.mrb[58].mxu1  ;;  %3419 = vmatprep.mubr.bf16.mxu0 %v2445_v42 }
 0x1f4   : > { %v1491_v29 = vadd.f32 %v1490_v9, %v5917_v60  ;;  %v1492_v31 = vpop.f32.mrb[59].mxu1  ;;  %3420 = vmatmul.mubr.bf16.gmra.mrb[52].mxu0 %v2444_v25  ;;  %v2308_v6 = vmax.f32 %v1487_v63, 0.0 }
 0x1f5   : > { %v1493_v11 = vadd.f32 %v1492_v31, %v5920_v19  ;;  %v2309_v15 = vmax.f32 %v1489_v28, 0.0  ;;  %v6110_v31 = vld [vmem:[%s5720_s14 + $0xb0] ss:$8 sps:$4 sm:$0xff]  }
 0x1f6   : > { %v2316_v47 = vmax.f32 %v1491_v29, 0.0  ;;  %1821 = vmatmul.mubr.bf16.gmra.mrb[164].mxu1 %v6072_v17 }
 0x1f7   : > { %v2317_v16 = vmax.f32 %v1493_v11, 0.0  ;;  %1830 = vmatprep.mubr.bf16.mxu1 %v6077_v20 }
 0x1f8   : > { %v2452_v34 = vpack.c.bf16 %v2316_v47, %v2308_v6  ;;  %v6114_v47 = vld [vmem:[%s5720_s14 + $0xc4] ss:$8 sps:$4 sm:$0xff]  }
 0x1f9   : > { %v2453_v40 = vpack.c.bf16 %v2317_v16, %v2309_v15  ;;  %v1496_v41 = vpop.f32.mrb[60].mxu1 }
 0x1fa   : > { %v1497_v35 = vadd.f32 %v1496_v41, %v5917_v60  ;;  %v1498_v10 = vpop.f32.mrb[61].mxu1 }
 0x1fb   : > { %v1499_v53 = vadd.f32 %v1498_v10, %v5920_v19  ;;  %v1500_v46 = vpop.f32.mrb[62].mxu1  ;;  %3429 = vmatprep.mubr.bf16.mxu0 %v2453_v40  ;;  %v5209_v40 = vld [vmem:[#allocation7 + $0x200] ss:$8 sps:$4 sm:$0xff]   ;;  %v5214_v10 = vld [vmem:[#allocation7 + $0x214] ss:$8 sps:$4 sm:$0xff]  }
 0x1fc   : > { %v1501_v49 = vadd.f32 %v1500_v46, %v5917_v60  ;;  %v1502_v12 = vpop.f32.mrb[63].mxu1  ;;  %3430 = vmatmul.mubr.bf16.gmra.mrb[56].mxu0 %v2452_v34  ;;  %v2324_v2 = vmax.f32 %v1497_v35, 0.0 }
 0x1fd   : > { %v1503_v13 = vadd.f32 %v1502_v12, %v5920_v19  ;;  %v2325_v22 = vmax.f32 %v1499_v53, 0.0  ;;  %v5212_v12 = vld [vmem:[#allocation7 + $0x210] ss:$8 sps:$4 sm:$0xff]  }
 0x1fe   : > { %v2332_v3 = vmax.f32 %v1501_v49, 0.0  ;;  %1831 = vmatmul.mubr.bf16.gmra.mrb[168].mxu1 %v6092_v7 }
 0x1ff   : > { %v2333_v18 = vmax.f32 %v1503_v13, 0.0  ;;  %1840 = vmatprep.mubr.bf16.mxu1 %v6102_v43 }
 0x200   : > { %v2460_v60 = vpack.c.bf16 %v2332_v3, %v2324_v2  ;;  %v6122_v3 = vld [vmem:[%s5720_s14 + $0xc0] ss:$8 sps:$4 sm:$0xff]  }
 0x201   : > { %v2461_v19 = vpack.c.bf16 %v2333_v18, %v2325_v22  ;;  %v1539_v51 = vpop.f32.mrb[64].mxu1  ;;  %v5217_v22 = vld [vmem:[#allocation7 + $0x224] ss:$8 sps:$4 sm:$0xff]  }
 0x202   : > { %v1540_v56 = vadd.f32 %v1539_v51, %v6096_v33  ;;  %v1541_v25 = vpop.f32.mrb[65].mxu1 }
 0x203   : > { %v1542_v42 = vadd.f32 %v1541_v25, %v6099_v23  ;;  %v1543_v62 = vpop.f32.mrb[66].mxu1  ;;  %3439 = vmatprep.mubr.bf16.mxu0 %v2461_v19  ;;  %v6126_v19 = vld [vmem:[%s5720_s14 + $0xd4] ss:$8 sps:$4 sm:$0xff]  }
 0x204   : > { %v1544_v63 = vadd.f32 %v1543_v62, %v6096_v33  ;;  %v1545_v4 = vpop.f32.mrb[67].mxu1  ;;  %3440 = vmatmul.mubr.bf16.gmra.mrb[60].mxu0 %v2460_v60  ;;  %v2086_v9 = vmax.f32 %v1540_v56, 0.0 }
 0x205   : > { %v1546_v28 = vadd.f32 %v1545_v4, %v6099_v23  ;;  %v2087_v11 = vmax.f32 %v1542_v42, 0.0  ;;  %v5215_v42 = vld [vmem:[#allocation7 + $0x220] ss:$8 sps:$4 sm:$0xff]   ;;  %v5220_v4 = vld [vmem:[#allocation7 + $0x234] ss:$8 sps:$4 sm:$0xff]  }
 0x206   : > { %v2094_v29 = vmax.f32 %v1544_v63, 0.0  ;;  %1841 = vmatmul.mubr.bf16.gmra.mrb[172].mxu1 %v6110_v31 }
 0x207   : > { %v2095_v6 = vmax.f32 %v1546_v28, 0.0  ;;  %1850 = vmatprep.mubr.bf16.mxu1 %v6114_v47 }
 0x208   : > { %v2342_v15 = vpack.c.bf16 %v2094_v29, %v2086_v9 }
 0x209   : > { %v2343_v16 = vpack.c.bf16 %v2095_v6, %v2087_v11  ;;  %v1549_v34 = vpop.f32.mrb[68].mxu1 }
 0x20a   : > { %v1550_v41 = vadd.f32 %v1549_v34, %v6096_v33  ;;  %v1551_v35 = vpop.f32.mrb[69].mxu1 }
 0x20b   : > { %v1552_v14 = vadd.f32 %v1551_v35, %v6099_v23  ;;  %v1553_v53 = vpop.f32.mrb[70].mxu1  ;;  %3482 = vmatprep.mubr.bf16.mxu0 %v2343_v16 }
 0x20c   : > { %v1554_v46 = vadd.f32 %v1553_v53, %v6096_v33  ;;  %v1555_v48 = vpop.f32.mrb[71].mxu1  ;;  %3483 = vmatmul.mubr.bf16.vlgmr.msra.gmra.mrb[0].mxu0 %v2342_v15  ;;  %v2102_v13 = vmax.f32 %v1550_v41, 0.0  ;;  %v5218_v15 = vld [vmem:[#allocation7 + $0x230] ss:$8 sps:$4 sm:$0xff]   ;;  %v5223_v41 = vld [vmem:[#allocation7 + $0x244] ss:$8 sps:$4 sm:$0xff]  }
 0x20d   : > { %v1556_v49 = vadd.f32 %v1555_v48, %v6099_v23  ;;  %3644 = vmatpush1.bf16.msra.mxu0 %v5209_v40  ;;  %v2103_v18 = vmax.f32 %v1552_v14, 0.0  ;;  %v6134_v40 = vld [vmem:[%s5720_s14 + $0xd0] ss:$8 sps:$4 sm:$0xff]   ;;  %v6138_v14 = vld [vmem:[%s5720_s14 + $0xe4] ss:$8 sps:$4 sm:$0xff]  }
 0x20e   : > { %v2110_v2 = vmax.f32 %v1554_v46, 0.0  ;;  %1851 = vmatmul.mubr.bf16.gmra.mrb[176].mxu1 %v6122_v3  ;;  %3645 = vmatprep.subr.bf16.mxu0 %v5214_v10 }
 0x20f   : > { %v2111_v60 = vmax.f32 %v1556_v49, 0.0  ;;  %1860 = vmatprep.mubr.bf16.mxu1 %v6126_v19  ;;  %v5221_v49 = vld [vmem:[#allocation7 + $0x240] ss:$8 sps:$4 sm:$0xff]  }
 0x210   : > { %v2350_v51 = vpack.c.bf16 %v2110_v2, %v2102_v13  ;;  %v5226_v2 = vld [vmem:[#allocation7 + $0x254] ss:$8 sps:$4 sm:$0xff]  }
 0x211   : > { %v2351_v56 = vpack.c.bf16 %v2111_v60, %v2103_v18  ;;  %v1559_v25 = vpop.f32.mrb[72].mxu1  ;;  %3646 = vmatpush1.bf16.msra.mxu0 %v5212_v12 }
 0x212   : > { %v1560_v62 = vadd.f32 %v1559_v25, %v6096_v33  ;;  %v1561_v63 = vpop.f32.mrb[73].mxu1  ;;  %3647 = vmatprep.subr.bf16.mxu0 %v5217_v22  ;;  %v5224_v25 = vld [vmem:[#allocation7 + $0x250] ss:$8 sps:$4 sm:$0xff]  }
 0x213   : > { %v1562_v28 = vadd.f32 %v1561_v63, %v6099_v23  ;;  %v1563_v9 = vpop.f32.mrb[74].mxu1  ;;  %3492 = vmatprep.mubr.bf16.mxu0 %v2351_v56  ;;  %v6146_v63 = vld [vmem:[%s5720_s14 + $0xe0] ss:$8 sps:$4 sm:$0xff]  }
 0x214   : > { %v1564_v29 = vadd.f32 %v1563_v9, %v6096_v33  ;;  %v1565_v11 = vpop.f32.mrb[75].mxu1  ;;  %3493 = vmatmul.mubr.bf16.gmra.mrb[4].mxu0 %v2350_v51  ;;  %v2118_v16 = vmax.f32 %v1560_v62, 0.0 }
 0x215   : > { %v1566_v6 = vadd.f32 %v1565_v11, %v6099_v23  ;;  %3648 = vmatpush1.bf16.msra.mxu0 %v5215_v42  ;;  %v2119_v35 = vmax.f32 %v1562_v28, 0.0 }
 0x216   : > { %v2126_v34 = vmax.f32 %v1564_v29, 0.0  ;;  %1861 = vmatmul.mubr.bf16.gmra.mrb[180].mxu1 %v6134_v40  ;;  %3649 = vmatprep.subr.bf16.mxu0 %v5220_v4  ;;  %v5229_v4 = vld [vmem:[#allocation7 + $0x264] ss:$8 sps:$4 sm:$0xff]   ;;  %v6150_v29 = vld [vmem:[%s5720_s14 + $0xf4] ss:$8 sps:$4 sm:$0xff]  }
 0x217   : > { %v2127_v10 = vmax.f32 %v1566_v6, 0.0  ;;  %1870 = vmatprep.mubr.bf16.mxu1 %v6138_v14 }
 0x218   : > { %v2358_v53 = vpack.c.bf16 %v2126_v34, %v2118_v16  ;;  %v5227_v16 = vld [vmem:[#allocation7 + $0x260] ss:$8 sps:$4 sm:$0xff]  }
 0x219   : > { %v2359_v46 = vpack.c.bf16 %v2127_v10, %v2119_v35  ;;  %v1569_v48 = vpop.f32.mrb[76].mxu1  ;;  %3650 = vmatpush1.bf16.msra.mxu0 %v5218_v15  ;;  %v5232_v35 = vld [vmem:[#allocation7 + $0x274] ss:$8 sps:$4 sm:$0xff]  }
 0x21a   : > { %v1570_v12 = vadd.f32 %v1569_v48, %v6096_v33  ;;  %v1571_v13 = vpop.f32.mrb[77].mxu1  ;;  %3651 = vmatprep.subr.bf16.mxu0 %v5223_v41 }
 0x21b   : > { %v1572_v22 = vadd.f32 %v1571_v13, %v6099_v23  ;;  %v1573_v18 = vpop.f32.mrb[78].mxu1  ;;  %3502 = vmatprep.mubr.bf16.mxu0 %v2359_v46 }
 0x21c   : > { %v1574_v60 = vadd.f32 %v1573_v18, %v6096_v33  ;;  %v1575_v51 = vpop.f32.mrb[79].mxu1  ;;  %3503 = vmatmul.mubr.bf16.gmra.mrb[8].mxu0 %v2358_v53  ;;  %v2134_v42 = vmax.f32 %v1570_v12, 0.0  ;;  %v5230_v12 = vld [vmem:[#allocation7 + $0x270] ss:$8 sps:$4 sm:$0xff]   ;;  %v5235_v18 = vld [vmem:[#allocation7 + $0x284] ss:$8 sps:$4 sm:$0xff]  }
 0x21d   : > { %v1576_v56 = vadd.f32 %v1575_v51, %v6099_v23  ;;  %3652 = vmatpush1.bf16.msra.mxu0 %v5221_v49  ;;  %v2135_v28 = vmax.f32 %v1572_v22, 0.0  ;;  %v6158_v22 = vld [vmem:[%s5720_s14 + $0xf0] ss:$8 sps:$4 sm:$0xff]   ;;  %s5428_s14 = sshll.u32 %s5503_s8, 4  ;;  %s5429_s14 = int_to_ptr.vmem [resolvable:$false] %s5428_s14 }
 0x21e   : > { %v2142_v62 = vmax.f32 %v1574_v60, 0.0  ;;  %1871 = vmatmul.mubr.bf16.gmra.mrb[184].mxu1 %v6146_v63  ;;  %3653 = vmatprep.subr.bf16.mxu0 %v5226_v2  ;;  %s5430_s24 = scalar_lea.vmem %s5429_s14, 8192  ;;  %p5431_p5 = scmp.lt.s32.totalorder %s6508_s30, %s5429_s14 }
 0x21f   : > { %v2143_v9 = vmax.f32 %v1576_v56, 0.0  ;;  %1880 = vmatprep.mubr.bf16.mxu1 %v6150_v29  ;;  %p5432_p9 = scmp.lt.s32.totalorder %s5430_s24, %s5424_s6 }
 0x220   : > { %v2366_v11 = vpack.c.bf16 %v2142_v62, %v2134_v42  ;;  %v5233_v62 = vld [vmem:[#allocation7 + $0x280] ss:$8 sps:$4 sm:$0xff]  }
 0x221   : > { %v2367_v6 = vpack.c.bf16 %v2143_v9, %v2135_v28  ;;  %v1579_v15 = vpop.f32.mrb[80].mxu1  ;;  %3654 = vmatpush1.bf16.msra.mxu0 %v5224_v25  ;;  %v5238_v9 = vld [vmem:[#allocation7 + $0x294] ss:$8 sps:$4 sm:$0xff]   ;;  %p5433_p12 = por %p5432_p9, %p5431_p5 }
 0x222   : > { %v1580_v34 = vadd.f32 %v1579_v15, %v6096_v33  ;;  %v1581_v41 = vpop.f32.mrb[81].mxu1  ;;  %3655 = vmatprep.subr.bf16.mxu0 %v5229_v4 }
 0x223   : > { %v1582_v10 = vadd.f32 %v1581_v41, %v6099_v23  ;;  %v1583_v53 = vpop.f32.mrb[82].mxu1  ;;  %3512 = vmatprep.mubr.bf16.mxu0 %v2367_v6  ;;  %p5434_p2 = pnand %p5433_p12, %p5427_p3 }
 0x224   : > { %v1584_v46 = vadd.f32 %v1583_v53, %v6096_v33  ;;  %v1585_v48 = vpop.f32.mrb[83].mxu1  ;;  %3513 = vmatmul.mubr.bf16.gmra.mrb[12].mxu0 %v2366_v11  ;;  %v2150_v13 = vmax.f32 %v1580_v34, 0.0  ;;  %v5236_v34 = vld [vmem:[#allocation7 + $0x290] ss:$8 sps:$4 sm:$0xff]  }
 0x225   : > { %v1586_v49 = vadd.f32 %v1585_v48, %v6099_v23  ;;  %3656 = vmatpush1.bf16.msra.mxu0 %v5227_v16  ;;  %v2151_v60 = vmax.f32 %v1582_v10, 0.0  ;;  %v5241_v10 = vld [vmem:[#allocation7 + $0x2a4] ss:$8 sps:$4 sm:$0xff]  }
 0x226   : > { %v2158_v2 = vmax.f32 %v1584_v46, 0.0  ;;  %1881 = vmatmul.mubr.bf16.gmra.mrb[188].mxu1 %v6158_v22  ;;  %3657 = vmatprep.subr.bf16.mxu0 %v5232_v35 }
 0x227   : > { %v2159_v51 = vmax.f32 %v1586_v49, 0.0  ;;  %1923 = vmatprep.mubr.bf16.mxu1 %v5953_v45 }
 0x228   : > { %v2374_v56 = vpack.c.bf16 %v2158_v2, %v2150_v13  ;;  %v5239_v13 = vld [vmem:[#allocation7 + $0x2a0] ss:$8 sps:$4 sm:$0xff]  }
 0x229   : > { %v2375_v25 = vpack.c.bf16 %v2159_v51, %v2151_v60  ;;  %v1589_v42 = vpop.f32.mrb[84].mxu1  ;;  %3658 = vmatpush1.bf16.msra.mxu0 %v5230_v12  ;;  %v5244_v60 = vld [vmem:[#allocation7 + $0x2b4] ss:$8 sps:$4 sm:$0xff]  }
 0x22a   : > { %v1590_v4 = vadd.f32 %v1589_v42, %v6096_v33  ;;  %v1591_v28 = vpop.f32.mrb[85].mxu1  ;;  %3659 = vmatprep.subr.bf16.mxu0 %v5235_v18  ;;  %v5242_v42 = vld [vmem:[#allocation7 + $0x2b0] ss:$8 sps:$4 sm:$0xff]  }
 0x22b   : > { %v1592_v11 = vadd.f32 %v1591_v28, %v6099_v23  ;;  %v1593_v6 = vpop.f32.mrb[86].mxu1  ;;  %3522 = vmatprep.mubr.bf16.mxu0 %v2375_v25  ;;  %v5247_v28 = vld [vmem:[#allocation7 + $0x2c4] ss:$8 sps:$4 sm:$0xff]  }
 0x22c   : > { %v1594_v15 = vadd.f32 %v1593_v6, %v6096_v33  ;;  %v1595_v16 = vpop.f32.mrb[87].mxu1  ;;  %3523 = vmatmul.mubr.bf16.gmra.mrb[16].mxu0 %v2374_v56  ;;  %v2166_v41 = vmax.f32 %v1590_v4, 0.0 }
 0x22d   : > { %v1596_v45 = vadd.f32 %v1595_v16, %v6099_v23  ;;  %3660 = vmatpush1.bf16.msra.mxu0 %v5233_v62  ;;  %v2167_v53 = vmax.f32 %v1592_v11, 0.0 }
 0x22e   : > { %v2174_v35 = vmax.f32 %v1594_v15, 0.0  ;;  %1924 = vmatmul.mubr.bf16.vlgmr.msra.gmra.mrb[192].mxu1 %v5961_v61  ;;  %3661 = vmatprep.subr.bf16.mxu0 %v5238_v9 }
 0x22f   : > { %v2175_v46 = vmax.f32 %v1596_v45, 0.0  ;;  %1933 = vmatprep.mubr.bf16.mxu1 %v5968_v0  ;;  %v5245_v45 = vld [vmem:[#allocation7 + $0x2c0] ss:$8 sps:$4 sm:$0xff]  }
 0x230   : > { %v2382_v48 = vpack.c.bf16 %v2174_v35, %v2166_v41  ;;  %v5250_v35 = vld [vmem:[#allocation7 + $0x2d4] ss:$8 sps:$4 sm:$0xff]  }
 0x231   : > { %v2383_v49 = vpack.c.bf16 %v2175_v46, %v2167_v53  ;;  %v1599_v12 = vpop.f32.mrb[88].mxu1  ;;  %3662 = vmatpush1.bf16.msra.mxu0 %v5236_v34 }
 0x232   : > { %v1600_v2 = vadd.f32 %v1599_v12, %v6096_v33  ;;  %v1601_v18 = vpop.f32.mrb[89].mxu1  ;;  %3663 = vmatprep.subr.bf16.mxu0 %v5241_v10 }
 0x233   : > { %v1602_v51 = vadd.f32 %v1601_v18, %v6099_v23  ;;  %v1603_v56 = vpop.f32.mrb[90].mxu1  ;;  %3532 = vmatprep.mubr.bf16.mxu0 %v2383_v49 }
 0x234   : > { %v1604_v61 = vadd.f32 %v1603_v56, %v6096_v33  ;;  %v1605_v25 = vpop.f32.mrb[91].mxu1  ;;  %3533 = vmatmul.mubr.bf16.gmra.mrb[20].mxu0 %v2382_v48  ;;  %v2182_v62 = vmax.f32 %v1600_v2, 0.0  ;;  %v5248_v48 = vld [vmem:[#allocation7 + $0x2d0] ss:$8 sps:$4 sm:$0xff]  }
 0x235   : > { %v1606_v0 = vadd.f32 %v1605_v25, %v6099_v23  ;;  %3664 = vmatpush1.bf16.msra.mxu0 %v5239_v13  ;;  %v2183_v9 = vmax.f32 %v1602_v51, 0.0  ;;  %v5253_v13 = vld [vmem:[#allocation7 + $0x2e4] ss:$8 sps:$4 sm:$0xff]  }
 0x236   : > { %v2190_v4 = vmax.f32 %v1604_v61, 0.0  ;;  %1934 = vmatmul.mubr.bf16.gmra.mrb[196].mxu1 %v5976_v37  ;;  %3665 = vmatprep.subr.bf16.mxu0 %v5244_v60  ;;  %v5251_v61 = vld [vmem:[#allocation7 + $0x2e0] ss:$8 sps:$4 sm:$0xff]  }
 0x237   : > { %v2191_v11 = vmax.f32 %v1606_v0, 0.0  ;;  %1943 = vmatprep.mubr.bf16.mxu1 %v5980_v38 }
 0x238   : > { %v2390_v6 = vpack.c.bf16 %v2190_v4, %v2182_v62 }
 0x239   : > { %v2391_v15 = vpack.c.bf16 %v2191_v11, %v2183_v9  ;;  %v1609_v16 = vpop.f32.mrb[92].mxu1  ;;  %3666 = vmatpush1.bf16.msra.mxu0 %v5242_v42  ;;  %v5256_v42 = vld [vmem:[#allocation7 + $0x2f4] ss:$8 sps:$4 sm:$0xff]   ;;  %v5254_v9 = vld [vmem:[#allocation7 + $0x2f0] ss:$8 sps:$4 sm:$0xff]  }
 0x23a   : > { %v1610_v34 = vadd.f32 %v1609_v16, %v6096_v33  ;;  %v1611_v41 = vpop.f32.mrb[93].mxu1  ;;  %3667 = vmatprep.subr.bf16.mxu0 %v5247_v28 }
 0x23b   : > { %v1612_v10 = vadd.f32 %v1611_v41, %v6099_v23  ;;  %v1613_v53 = vpop.f32.mrb[94].mxu1  ;;  %3542 = vmatprep.mubr.bf16.mxu0 %v2391_v15  ;;  %v5259_v15 = vld [vmem:[#allocation7 + $0x304] ss:$8 sps:$4 sm:$0xff]  }
 0x23c   : > { %v1614_v37 = vadd.f32 %v1613_v53, %v6096_v33  ;;  %v1615_v46 = vpop.f32.mrb[95].mxu1  ;;  %3543 = vmatmul.mubr.bf16.gmra.mrb[24].mxu0 %v2390_v6  ;;  %v2198_v49 = vmax.f32 %v1610_v34, 0.0 }
 0x23d   : > { %v1616_v38 = vadd.f32 %v1615_v46, %v6099_v23  ;;  %3668 = vmatpush1.bf16.msra.mxu0 %v5245_v45  ;;  %v2199_v2 = vmax.f32 %v1612_v10, 0.0 }
 0x23e   : > { %v2206_v12 = vmax.f32 %v1614_v37, 0.0  ;;  %1944 = vmatmul.mubr.bf16.gmra.mrb[200].mxu1 %v5988_v59  ;;  %3669 = vmatprep.subr.bf16.mxu0 %v5250_v35 }
 0x23f   : > { %v2207_v18 = vmax.f32 %v1616_v38, 0.0  ;;  %1953 = vmatprep.mubr.bf16.mxu1 %v5992_v1 }
 0x240   : > { %v2398_v60 = vpack.c.bf16 %v2206_v12, %v2198_v49 }
 0x241   : > { %v2399_v51 = vpack.c.bf16 %v2207_v18, %v2199_v2  ;;  %v1619_v56 = vpop.f32.mrb[96].mxu1  ;;  %3670 = vmatpush1.bf16.msra.mxu0 %v5248_v48 }
 0x242   : > { %v1620_v25 = vadd.f32 %v1619_v56, %v6096_v33  ;;  %v1621_v0 = vpop.f32.mrb[97].mxu1  ;;  %3671 = vmatprep.subr.bf16.mxu0 %v5253_v13 }
 0x243   : > { %v1622_v62 = vadd.f32 %v1621_v0, %v6099_v23  ;;  %v1623_v4 = vpop.f32.mrb[98].mxu1  ;;  %3552 = vmatprep.mubr.bf16.mxu0 %v2399_v51 }
 0x244   : > { %v1624_v59 = vadd.f32 %v1623_v4, %v6096_v33  ;;  %v1625_v28 = vpop.f32.mrb[99].mxu1  ;;  %3553 = vmatmul.mubr.bf16.gmra.mrb[28].mxu0 %v2398_v60  ;;  %v2214_v11 = vmax.f32 %v1620_v25, 0.0 }
 0x245   : > { %v1626_v1 = vadd.f32 %v1625_v28, %v6099_v23  ;;  %3672 = vmatpush1.bf16.msra.mxu0 %v5251_v61  ;;  %v2215_v16 = vmax.f32 %v1622_v62, 0.0 }
 0x246   : > { %v2222_v6 = vmax.f32 %v1624_v59, 0.0  ;;  %1954 = vmatmul.mubr.bf16.gmra.mrb[204].mxu1 %v6000_v32  ;;  %3673 = vmatprep.subr.bf16.mxu0 %v5256_v42 }
 0x247   : > { %v2223_v45 = vmax.f32 %v1626_v1, 0.0  ;;  %1963 = vmatprep.mubr.bf16.mxu1 %v6004_v52 }
 0x248   : > { %v2406_v34 = vpack.c.bf16 %v2222_v6, %v2214_v11 }
 0x249   : > { %v2407_v41 = vpack.c.bf16 %v2223_v45, %v2215_v16  ;;  %v1629_v35 = vpop.f32.mrb[100].mxu1  ;;  %3674 = vmatpush1.bf16.msra.mxu0 %v5254_v9 }
 0x24a   : > { %v1630_v10 = vadd.f32 %v1629_v35, %v6096_v33  ;;  %v1631_v53 = vpop.f32.mrb[101].mxu1  ;;  %3836 = vmatprep.subr.bf16.mxu0 %v5259_v15 }
 0x24b   : > { %v1632_v37 = vadd.f32 %v1631_v53, %v6099_v23  ;;  %v1633_v46 = vpop.f32.mrb[102].mxu1  ;;  %3562 = vmatprep.mubr.bf16.mxu0 %v2407_v41 }
 0x24c   : > { %v1634_v32 = vadd.f32 %v1633_v46, %v6096_v33  ;;  %v1635_v38 = vpop.f32.mrb[103].mxu1  ;;  %3563 = vmatmul.mubr.bf16.gmra.mrb[32].mxu0 %v2406_v34  ;;  %v2230_v49 = vmax.f32 %v1630_v10, 0.0 }
 0x24d   : > { %v1636_v48 = vadd.f32 %v1635_v38, %v6099_v23  ;;  %v2231_v12 = vmax.f32 %v1632_v37, 0.0 }
 0x24e   : > { %v2238_v52 = vmax.f32 %v1634_v32, 0.0  ;;  %1964 = vmatmul.mubr.bf16.gmra.mrb[208].mxu1 %v6012_v21 }
 0x24f   : > { %v2239_v13 = vmax.f32 %v1636_v48, 0.0  ;;  %1973 = vmatprep.mubr.bf16.mxu1 %v6016_v8 }
 0x250   : > { %v2414_v2 = vpack.c.bf16 %v2238_v52, %v2230_v49 }
 0x251   : > { %v2415_v18 = vpack.c.bf16 %v2239_v13, %v2231_v12  ;;  %v1639_v60 = vpop.f32.mrb[104].mxu1 }
 0x252   : > { %v1640_v51 = vadd.f32 %v1639_v60, %v6096_v33  ;;  %v1641_v56 = vpop.f32.mrb[105].mxu1 }
 0x253   : > { %v1642_v61 = vadd.f32 %v1641_v56, %v6099_v23  ;;  %v1643_v25 = vpop.f32.mrb[106].mxu1  ;;  %3572 = vmatprep.mubr.bf16.mxu0 %v2415_v18 }
 0x254   : > { %v1644_v0 = vadd.f32 %v1643_v25, %v6096_v33  ;;  %v1645_v42 = vpop.f32.mrb[107].mxu1  ;;  %3573 = vmatmul.mubr.bf16.gmra.mrb[36].mxu0 %v2414_v2  ;;  %v2246_v62 = vmax.f32 %v1640_v51, 0.0 }
 0x255   : > { %v1646_v21 = vadd.f32 %v1645_v42, %v6099_v23  ;;  %v2247_v8 = vmax.f32 %v1642_v61, 0.0 }
 0x256   : > { %v2254_v4 = vmax.f32 %v1644_v0, 0.0  ;;  %1974 = vmatmul.mubr.bf16.gmra.mrb[212].mxu1 %v6024_v30 }
 0x257   : > { %v2255_v59 = vmax.f32 %v1646_v21, 0.0  ;;  %1983 = vmatprep.mubr.bf16.mxu1 %v6028_v39 }
 0x258   : > { %v2422_v28 = vpack.c.bf16 %v2254_v4, %v2246_v62 }
 0x259   : > { %v2423_v1 = vpack.c.bf16 %v2255_v59, %v2247_v8  ;;  %v1649_v9 = vpop.f32.mrb[108].mxu1 }
 0x25a   : > { %v1650_v11 = vadd.f32 %v1649_v9, %v6096_v33  ;;  %v1651_v6 = vpop.f32.mrb[109].mxu1 }
 0x25b   : > { %v1652_v15 = vadd.f32 %v1651_v6, %v6099_v23  ;;  %v1653_v16 = vpop.f32.mrb[110].mxu1  ;;  %3582 = vmatprep.mubr.bf16.mxu0 %v2423_v1 }
 0x25c   : > { %v1654_v45 = vadd.f32 %v1653_v16, %v6096_v33  ;;  %v1655_v34 = vpop.f32.mrb[111].mxu1  ;;  %3583 = vmatmul.mubr.bf16.gmra.mrb[40].mxu0 %v2422_v28  ;;  %v2262_v41 = vmax.f32 %v1650_v11, 0.0 }
 0x25d   : > { %v1656_v30 = vadd.f32 %v1655_v34, %v6099_v23  ;;  %v2263_v39 = vmax.f32 %v1652_v15, 0.0 }
 0x25e   : > { %v2270_v35 = vmax.f32 %v1654_v45, 0.0  ;;  %1984 = vmatmul.mubr.bf16.gmra.mrb[216].mxu1 %v6036_v55 }
 0x25f   : > { %v2271_v10 = vmax.f32 %v1656_v30, 0.0  ;;  %1993 = vmatprep.mubr.bf16.mxu1 %v6040_v27 }
 0x260   : > { %v2430_v53 = vpack.c.bf16 %v2270_v35, %v2262_v41 }
 0x261   : > { %v2431_v37 = vpack.c.bf16 %v2271_v10, %v2263_v39  ;;  %v1659_v46 = vpop.f32.mrb[112].mxu1 }
 0x262   : > { %v1660_v32 = vadd.f32 %v1659_v46, %v6096_v33  ;;  %v1661_v38 = vpop.f32.mrb[113].mxu1 }
 0x263   : > { %v1662_v48 = vadd.f32 %v1661_v38, %v6099_v23  ;;  %v1663_v49 = vpop.f32.mrb[114].mxu1  ;;  %3592 = vmatprep.mubr.bf16.mxu0 %v2431_v37 }
 0x264   : > { %v1664_v52 = vadd.f32 %v1663_v49, %v6096_v33  ;;  %v1665_v12 = vpop.f32.mrb[115].mxu1  ;;  %3593 = vmatmul.mubr.bf16.gmra.mrb[44].mxu0 %v2430_v53  ;;  %v2278_v13 = vmax.f32 %v1660_v32, 0.0 }
 0x265   : > { %v1666_v55 = vadd.f32 %v1665_v12, %v6099_v23  ;;  %v2279_v27 = vmax.f32 %v1662_v48, 0.0 }
 0x266   : > { %v2286_v2 = vmax.f32 %v1664_v52, 0.0  ;;  %1994 = vmatmul.mubr.bf16.gmra.mrb[220].mxu1 %v6048_v36 }
 0x267   : > { %v2287_v18 = vmax.f32 %v1666_v55, 0.0  ;;  %2003 = vmatprep.mubr.bf16.mxu1 %v6052_v44 }
 0x268   : > { %v2438_v60 = vpack.c.bf16 %v2286_v2, %v2278_v13 }
 0x269   : > { %v2439_v51 = vpack.c.bf16 %v2287_v18, %v2279_v27  ;;  %v1669_v56 = vpop.f32.mrb[116].mxu1 }
 0x26a   : > { %v1670_v61 = vadd.f32 %v1669_v56, %v6096_v33  ;;  %v1671_v25 = vpop.f32.mrb[117].mxu1 }
 0x26b   : > { %v1672_v0 = vadd.f32 %v1671_v25, %v6099_v23  ;;  %v1673_v42 = vpop.f32.mrb[118].mxu1  ;;  %3602 = vmatprep.mubr.bf16.mxu0 %v2439_v51 }
 0x26c   : > { %v1674_v21 = vadd.f32 %v1673_v42, %v6096_v33  ;;  %v1675_v62 = vpop.f32.mrb[119].mxu1  ;;  %3603 = vmatmul.mubr.bf16.gmra.mrb[48].mxu0 %v2438_v60  ;;  %v2294_v4 = vmax.f32 %v1670_v61, 0.0 }
 0x26d   : > { %v1676_v36 = vadd.f32 %v1675_v62, %v6099_v23  ;;  %v2295_v44 = vmax.f32 %v1672_v0, 0.0 }
 0x26e   : > { %v2302_v8 = vmax.f32 %v1674_v21, 0.0  ;;  %2004 = vmatmul.mubr.bf16.gmra.mrb[224].mxu1 %v6060_v50 }
 0x26f   : > { %v2303_v59 = vmax.f32 %v1676_v36, 0.0  ;;  %2013 = vmatprep.mubr.bf16.mxu1 %v6064_v24  ;;  %v5337_v24 = vld [vmem:[%s6556_s2] sm:$0xff] }
 0x270   : > { %v2446_v28 = vpack.c.bf16 %v2302_v8, %v2294_v4  ;;  %v6223_v30 = vunpack.c.h.bf16 %v5337_v24 }
 0x271   : > { %v2447_v1 = vpack.c.bf16 %v2303_v59, %v2295_v44  ;;  %v1679_v9 = vpop.f32.mrb[120].mxu1 }
 0x272   : > { %v1680_v11 = vadd.f32 %v1679_v9, %v6096_v33  ;;  %v1681_v6 = vpop.f32.mrb[121].mxu1  ;;  %v459_v48 = vrot.slane %v6223_v30, %v5905_v58 }
 0x273   : > { %v1682_v15 = vadd.f32 %v1681_v6, %v6099_v23  ;;  %v1683_v16 = vpop.f32.mrb[122].mxu1  ;;  %3612 = vmatprep.mubr.bf16.mxu0 %v2447_v1  ;;  %v5257_v1 = vld [vmem:[#allocation7 + $0x300] ss:$8 sps:$4 sm:$0xff]   ;;  %v5262_v6 = vld [vmem:[#allocation7 + $0x314] ss:$8 sps:$4 sm:$0xff]  }
 0x274   : > { %v1684_v45 = vadd.f32 %v1683_v16, %v6096_v33  ;;  %v1685_v34 = vpop.f32.mrb[123].mxu1  ;;  %3613 = vmatmul.mubr.bf16.gmra.mrb[52].mxu0 %v2446_v28  ;;  %v2310_v41 = vmax.f32 %v1680_v11, 0.0  ;;  %v6237_v27 = vrot.slane %v459_v48, %v5905_v58  ;;  %v5268_v48 = vld [vmem:[#allocation7 + $0x334] ss:$8 sps:$4 sm:$0xff]  }
 0x275   : > { %v1686_v50 = vadd.f32 %v1685_v34, %v6099_v23  ;;  %v2311_v39 = vmax.f32 %v1682_v15, 0.0 }
 0x276   : > { %v2318_v35 = vmax.f32 %v1684_v45, 0.0  ;;  %2014 = vmatmul.mubr.bf16.gmra.mrb[228].mxu1 %v6072_v17  ;;  %v463_v17 = vrot.slane %v6223_v30, %v5909_v54 }
 0x277   : > { %v2319_v10 = vmax.f32 %v1686_v50, 0.0  ;;  %2023 = vmatprep.mubr.bf16.mxu1 %v6077_v20 }
 0x278   : > { %v2454_v53 = vpack.c.bf16 %v2318_v35, %v2310_v41  ;;  %v6240_v51 = vrot.slane %v463_v17, %v5905_v58  ;;  %v5265_v41 = vld [vmem:[#allocation7 + $0x324] ss:$8 sps:$4 sm:$0xff]  }
 0x279   : > { %v2455_v37 = vpack.c.bf16 %v2319_v10, %v2311_v39  ;;  %v1689_v46 = vpop.f32.mrb[124].mxu1 }
 0x27a   : > { %v1690_v32 = vadd.f32 %v1689_v46, %v6096_v33  ;;  %v1691_v38 = vpop.f32.mrb[125].mxu1  ;;  %v5263_v46 = vld [vmem:[#allocation7 + $0x320] ss:$8 sps:$4 sm:$0xff]  }
 0x27b   : > { %v1692_v49 = vadd.f32 %v1691_v38, %v6099_v23  ;;  %v1693_v52 = vpop.f32.mrb[126].mxu1  ;;  %3622 = vmatprep.mubr.bf16.mxu0 %v2455_v37 }
 0x27c   : > { %v1694_v12 = vadd.f32 %v1693_v52, %v6096_v33  ;;  %v1695_v55 = vpop.f32.mrb[127].mxu1  ;;  %3623 = vmatmul.mubr.bf16.gmra.mrb[56].mxu0 %v2454_v53  ;;  %v2326_v13 = vmax.f32 %v1690_v32, 0.0 }
 0x27d   : > { %v1696_v20 = vadd.f32 %v1695_v55, %v6099_v23  ;;  %v2327_v18 = vmax.f32 %v1692_v49, 0.0 }
 0x27e   : > { %v2334_v2 = vmax.f32 %v1694_v12, 0.0  ;;  %2024 = vmatmul.mubr.bf16.gmra.mrb[232].mxu1 %v6092_v7  ;;  %v5266_v12 = vld [vmem:[#allocation7 + $0x330] ss:$8 sps:$4 sm:$0xff]  }
 0x27f   : > { %v2335_v60 = vmax.f32 %v1696_v20, 0.0  ;;  %2033 = vmatprep.mubr.bf16.mxu1 %v6102_v43 }
 0x280   : > { %v2462_v56 = vpack.c.bf16 %v2334_v2, %v2326_v13  ;;  %v5271_v13 = vld [vmem:[#allocation7 + $0x344] ss:$8 sps:$4 sm:$0xff]  }
 0x281   : > { %v2463_v33 = vpack.c.bf16 %v2335_v60, %v2327_v18  ;;  %v1732_v61 = vpop.f32.mrb[128].mxu1 }
 0x282   : > { %v1733_v25 = vadd.f32 %v1732_v61, %v6237_v27  ;;  %v1734_v23 = vpop.f32.mrb[129].mxu1  ;;  %v5269_v61 = vld [vmem:[#allocation7 + $0x340] ss:$8 sps:$4 sm:$0xff]  }
 0x283   : > { %v1735_v0 = vadd.f32 %v1734_v23, %v6240_v51  ;;  %v1736_v42 = vpop.f32.mrb[130].mxu1  ;;  %3632 = vmatprep.mubr.bf16.mxu0 %v2463_v33 }
 0x284   : > { %v1737_v7 = vadd.f32 %v1736_v42, %v6237_v27  ;;  %v1738_v21 = vpop.f32.mrb[131].mxu1  ;;  %3633 = vmatmul.mubr.bf16.gmra.mrb[60].mxu0 %v2462_v56  ;;  %v2088_v36 = vmax.f32 %v1733_v25, 0.0 }
 0x285   : > { %v1739_v62 = vadd.f32 %v1738_v21, %v6240_v51  ;;  %v2089_v43 = vmax.f32 %v1735_v0, 0.0  ;;  %v5274_v0 = vld [vmem:[#allocation7 + $0x354] ss:$8 sps:$4 sm:$0xff]  }
 0x286   : > { %v2096_v4 = vmax.f32 %v1737_v7, 0.0  ;;  %2034 = vmatmul.mubr.bf16.gmra.mrb[236].mxu1 %v6110_v31 }
 0x287   : > { %v2097_v8 = vmax.f32 %v1739_v62, 0.0  ;;  %2043 = vmatprep.mubr.bf16.mxu1 %v6114_v47  ;;  %v5260_v47 = vld [vmem:[#allocation7 + $0x310] ss:$8 sps:$4 sm:$0xff]  }
 0x288   : > { %v2344_v44 = vpack.c.bf16 %v2096_v4, %v2088_v36  ;;  %v5272_v62 = vld [vmem:[#allocation7 + $0x350] ss:$8 sps:$4 sm:$0xff]  }
 0x289   : > { %v2345_v59 = vpack.c.bf16 %v2097_v8, %v2089_v43  ;;  %v1742_v28 = vpop.f32.mrb[132].mxu1  ;;  %v5277_v43 = vld [vmem:[#allocation7 + $0x364] ss:$8 sps:$4 sm:$0xff]  }
 0x28a   : > { %v1743_v9 = vadd.f32 %v1742_v28, %v6237_v27  ;;  %v1744_v11 = vpop.f32.mrb[133].mxu1 }
 0x28b   : > { %v1745_v15 = vadd.f32 %v1744_v11, %v6240_v51  ;;  %v1746_v16 = vpop.f32.mrb[134].mxu1  ;;  %3675 = vmatprep.mubr.bf16.mxu0 %v2345_v59 }
 0x28c   : > { %v1747_v45 = vadd.f32 %v1746_v16, %v6237_v27  ;;  %v1748_v34 = vpop.f32.mrb[135].mxu1  ;;  %3676 = vmatmul.mubr.bf16.vlgmr.msra.gmra.mrb[0].mxu0 %v2344_v44  ;;  %v2104_v50 = vmax.f32 %v1743_v9, 0.0  ;;  %v5275_v9 = vld [vmem:[#allocation7 + $0x360] ss:$8 sps:$4 sm:$0xff]  }
 0x28d   : > { %v1749_v31 = vadd.f32 %v1748_v34, %v6240_v51  ;;  %3837 = vmatpush1.bf16.msra.mxu0 %v5257_v1  ;;  %v2105_v35 = vmax.f32 %v1745_v15, 0.0  ;;  %v5280_v15 = vld [vmem:[#allocation7 + $0x374] ss:$8 sps:$4 sm:$0xff]  }
 0x28e   : > { %v2112_v24 = vmax.f32 %v1747_v45, 0.0  ;;  %2044 = vmatmul.mubr.bf16.gmra.mrb[240].mxu1 %v6122_v3  ;;  %3838 = vmatprep.subr.bf16.mxu0 %v5262_v6 }
 0x28f   : > { %v2113_v39 = vmax.f32 %v1749_v31, 0.0  ;;  %2053 = vmatprep.mubr.bf16.mxu1 %v6126_v19  ;;  %v5278_v31 = vld [vmem:[#allocation7 + $0x370] ss:$8 sps:$4 sm:$0xff]  }
 0x290   : > { %v2352_v10 = vpack.c.bf16 %v2112_v24, %v2104_v50  ;;  %v5283_v24 = vld [vmem:[#allocation7 + $0x384] ss:$8 sps:$4 sm:$0xff]  }
 0x291   : > { %v2353_v53 = vpack.c.bf16 %v2113_v39, %v2105_v35  ;;  %v1752_v37 = vpop.f32.mrb[136].mxu1  ;;  %3839 = vmatpush1.bf16.msra.mxu0 %v5260_v47 }
 0x292   : > { %v1753_v32 = vadd.f32 %v1752_v37, %v6237_v27  ;;  %v1754_v38 = vpop.f32.mrb[137].mxu1  ;;  %3840 = vmatprep.subr.bf16.mxu0 %v5265_v41  ;;  %v5281_v37 = vld [vmem:[#allocation7 + $0x380] ss:$8 sps:$4 sm:$0xff]  }
 0x293   : > { %v1755_v49 = vadd.f32 %v1754_v38, %v6240_v51  ;;  %v1756_v52 = vpop.f32.mrb[138].mxu1  ;;  %3685 = vmatprep.mubr.bf16.mxu0 %v2353_v53  ;;  %v5286_v38 = vld [vmem:[#allocation7 + $0x394] ss:$8 sps:$4 sm:$0xff]  }
 0x294   : > { %v1757_v3 = vadd.f32 %v1756_v52, %v6237_v27  ;;  %v1758_v17 = vpop.f32.mrb[139].mxu1  ;;  %3686 = vmatmul.mubr.bf16.gmra.mrb[4].mxu0 %v2352_v10  ;;  %v2120_v55 = vmax.f32 %v1753_v32, 0.0 }
 0x295   : > { %v1759_v19 = vadd.f32 %v1758_v17, %v6240_v51  ;;  %3841 = vmatpush1.bf16.msra.mxu0 %v5263_v46  ;;  %v2121_v2 = vmax.f32 %v1755_v49, 0.0  ;;  %v5284_v17 = vld [vmem:[#allocation7 + $0x390] ss:$8 sps:$4 sm:$0xff]  }
 0x296   : > { %v2128_v20 = vmax.f32 %v1757_v3, 0.0  ;;  %2054 = vmatmul.mubr.bf16.gmra.mrb[244].mxu1 %v6134_v40  ;;  %3842 = vmatprep.subr.bf16.mxu0 %v5268_v48 }
 0x297   : > { %v2129_v18 = vmax.f32 %v1759_v19, 0.0  ;;  %2063 = vmatprep.mubr.bf16.mxu1 %v6138_v14 }
 0x298   : > { %v2360_v60 = vpack.c.bf16 %v2128_v20, %v2120_v55  ;;  %v5289_v55 = vld [vmem:[#allocation7 + $0x3a4] ss:$8 sps:$4 sm:$0xff]  }
 0x299   : > { %v2361_v56 = vpack.c.bf16 %v2129_v18, %v2121_v2  ;;  %v1762_v33 = vpop.f32.mrb[140].mxu1  ;;  %3843 = vmatpush1.bf16.msra.mxu0 %v5266_v12 }
 0x29a   : > { %v1763_v25 = vadd.f32 %v1762_v33, %v6237_v27  ;;  %v1764_v23 = vpop.f32.mrb[141].mxu1  ;;  %3844 = vmatprep.subr.bf16.mxu0 %v5271_v13 }
 0x29b   : > { %v1765_v42 = vadd.f32 %v1764_v23, %v6240_v51  ;;  %v1766_v7 = vpop.f32.mrb[142].mxu1  ;;  %3695 = vmatprep.mubr.bf16.mxu0 %v2361_v56  ;;  %v5287_v56 = vld [vmem:[#allocation7 + $0x3a0] ss:$8 sps:$4 sm:$0xff]  }
 0x29c   : > { %v1767_v40 = vadd.f32 %v1766_v7, %v6237_v27  ;;  %v1768_v21 = vpop.f32.mrb[143].mxu1  ;;  %3696 = vmatmul.mubr.bf16.gmra.mrb[8].mxu0 %v2360_v60  ;;  %v2136_v36 = vmax.f32 %v1763_v25, 0.0  ;;  %v5292_v25 = vld [vmem:[#allocation7 + $0x3b4] ss:$8 sps:$4 sm:$0xff]  }
 0x29d   : > { %v1769_v14 = vadd.f32 %v1768_v21, %v6240_v51  ;;  %3845 = vmatpush1.bf16.msra.mxu0 %v5269_v61  ;;  %v2137_v8 = vmax.f32 %v1765_v42, 0.0  ;;  %v5290_v21 = vld [vmem:[#allocation7 + $0x3b0] ss:$8 sps:$4 sm:$0xff]  }
 0x29e   : > { %v2144_v4 = vmax.f32 %v1767_v40, 0.0  ;;  %2064 = vmatmul.mubr.bf16.gmra.mrb[248].mxu1 %v6146_v63  ;;  %3846 = vmatprep.subr.bf16.mxu0 %v5274_v0 }
 0x29f   : > { %v2145_v44 = vmax.f32 %v1769_v14, 0.0  ;;  %2073 = vmatprep.mubr.bf16.mxu1 %v6150_v29 }
 0x2a0   : > { %v2368_v59 = vpack.c.bf16 %v2144_v4, %v2136_v36  ;;  %v5295_v36 = vld [vmem:[#allocation7 + $0x3c4] ss:$8 sps:$4 sm:$0xff]  }
 0x2a1   : > { %v2369_v28 = vpack.c.bf16 %v2145_v44, %v2137_v8  ;;  %v1772_v1 = vpop.f32.mrb[144].mxu1  ;;  %3847 = vmatpush1.bf16.msra.mxu0 %v5272_v62 }
 0x2a2   : > { %v1773_v11 = vadd.f32 %v1772_v1, %v6237_v27  ;;  %v1774_v6 = vpop.f32.mrb[145].mxu1  ;;  %3848 = vmatprep.subr.bf16.mxu0 %v5277_v43 }
 0x2a3   : > { %v1775_v16 = vadd.f32 %v1774_v6, %v6240_v51  ;;  %v1776_v45 = vpop.f32.mrb[146].mxu1  ;;  %3705 = vmatprep.mubr.bf16.mxu0 %v2369_v28  ;;  %v5293_v28 = vld [vmem:[#allocation7 + $0x3c0] ss:$8 sps:$4 sm:$0xff]  }
 0x2a4   : > { %v1777_v63 = vadd.f32 %v1776_v45, %v6237_v27  ;;  %v1778_v34 = vpop.f32.mrb[147].mxu1  ;;  %3706 = vmatmul.mubr.bf16.gmra.mrb[12].mxu0 %v2368_v59  ;;  %v2152_v47 = vmax.f32 %v1773_v11, 0.0  ;;  %v5298_v11 = vld [vmem:[#allocation7 + $0x3d4] ss:$8 sps:$4 sm:$0xff]  }
 0x2a5   : > { %v1779_v29 = vadd.f32 %v1778_v34, %v6240_v51  ;;  %3849 = vmatpush1.bf16.msra.mxu0 %v5275_v9  ;;  %v2153_v41 = vmax.f32 %v1775_v16, 0.0  ;;  %v5296_v34 = vld [vmem:[#allocation7 + $0x3d0] ss:$8 sps:$4 sm:$0xff]  }
 0x2a6   : > { %v2160_v50 = vmax.f32 %v1777_v63, 0.0  ;;  %2074 = vmatmul.mubr.bf16.gmra.mrb[252].mxu1 %v6158_v22  ;;  %3850 = vmatprep.subr.bf16.mxu0 %v5280_v15 }
 0x2a7   : > { %v2161_v35 = vmax.f32 %v1779_v29, 0.0 }
 0x2a8   : > { %v2376_v39 = vpack.c.bf16 %v2160_v50, %v2152_v47  ;;  %v5301_v47 = vld [vmem:[#allocation7 + $0x3e4] ss:$8 sps:$4 sm:$0xff]  }
 0x2a9   : > { %v2377_v10 = vpack.c.bf16 %v2161_v35, %v2153_v41  ;;  %v1782_v53 = vpop.f32.mrb[148].mxu1  ;;  %3851 = vmatpush1.bf16.msra.mxu0 %v5278_v31 }
 0x2aa   : > { %v1783_v46 = vadd.f32 %v1782_v53, %v6237_v27  ;;  %v1784_v32 = vpop.f32.mrb[149].mxu1  ;;  %3852 = vmatprep.subr.bf16.mxu0 %v5283_v24 }
 0x2ab   : > { %v1785_v48 = vadd.f32 %v1784_v32, %v6240_v51  ;;  %v1786_v49 = vpop.f32.mrb[150].mxu1  ;;  %3715 = vmatprep.mubr.bf16.mxu0 %v2377_v10  ;;  %v5299_v10 = vld [vmem:[#allocation7 + $0x3e0] ss:$8 sps:$4 sm:$0xff]  }
 0x2ac   : > { %v1787_v22 = vadd.f32 %v1786_v49, %v6237_v27  ;;  %v1788_v52 = vpop.f32.mrb[151].mxu1  ;;  %3716 = vmatmul.mubr.bf16.gmra.mrb[16].mxu0 %v2376_v39  ;;  %v2168_v19 = vmax.f32 %v1783_v46, 0.0  ;;  %v5304_v46 = vld [vmem:[#allocation7 + $0x3f4] ss:$8 sps:$4 sm:$0xff]  }
 0x2ad   : > { %v1789_v3 = vadd.f32 %v1788_v52, %v6240_v51  ;;  %3853 = vmatpush1.bf16.msra.mxu0 %v5281_v37  ;;  %v2169_v20 = vmax.f32 %v1785_v48, 0.0  ;;  %v5302_v52 = vld [vmem:[#allocation7 + $0x3f0] ss:$8 sps:$4 sm:$0xff]  }
 0x2ae   : > { %v2176_v12 = vmax.f32 %v1787_v22, 0.0  ;;  %3854 = vmatprep.subr.bf16.mxu0 %v5286_v38 }
 0x2af   : > { %v2177_v13 = vmax.f32 %v1789_v3, 0.0 }
 0x2b0   : > { %v2384_v2 = vpack.c.bf16 %v2176_v12, %v2168_v19 }
 0x2b1   : > { %v2385_v18 = vpack.c.bf16 %v2177_v13, %v2169_v20  ;;  %v1792_v60 = vpop.f32.mrb[152].mxu1  ;;  %3855 = vmatpush1.bf16.msra.mxu0 %v5284_v17 }
 0x2b2   : > { %v1793_v33 = vadd.f32 %v1792_v60, %v6237_v27  ;;  %v1794_v61 = vpop.f32.mrb[153].mxu1  ;;  %3856 = vmatprep.subr.bf16.mxu0 %v5289_v55 }
 0x2b3   : > { %v1795_v23 = vadd.f32 %v1794_v61, %v6240_v51  ;;  %v1796_v0 = vpop.f32.mrb[154].mxu1  ;;  %3725 = vmatprep.mubr.bf16.mxu0 %v2385_v18 }
 0x2b4   : > { %v1797_v42 = vadd.f32 %v1796_v0, %v6237_v27  ;;  %v1798_v7 = vpop.f32.mrb[155].mxu1  ;;  %3726 = vmatmul.mubr.bf16.gmra.mrb[20].mxu0 %v2384_v2  ;;  %v2184_v14 = vmax.f32 %v1793_v33, 0.0 }
 0x2b5   : > { %v1799_v40 = vadd.f32 %v1798_v7, %v6240_v51  ;;  %3857 = vmatpush1.bf16.msra.mxu0 %v5287_v56  ;;  %v2185_v4 = vmax.f32 %v1795_v23, 0.0 }
 0x2b6   : > { %v2192_v62 = vmax.f32 %v1797_v42, 0.0  ;;  %3858 = vmatprep.subr.bf16.mxu0 %v5292_v25 }
 0x2b7   : > { %v2193_v43 = vmax.f32 %v1799_v40, 0.0 }
 0x2b8   : > { %v2392_v8 = vpack.c.bf16 %v2192_v62, %v2184_v14 }
 0x2b9   : > { %v2393_v44 = vpack.c.bf16 %v2193_v43, %v2185_v4  ;;  %v1802_v59 = vpop.f32.mrb[156].mxu1  ;;  %3859 = vmatpush1.bf16.msra.mxu0 %v5290_v21 }
 0x2ba   : > { %v1803_v1 = vadd.f32 %v1802_v59, %v6237_v27  ;;  %v1804_v9 = vpop.f32.mrb[157].mxu1  ;;  %3860 = vmatprep.subr.bf16.mxu0 %v5295_v36 }
 0x2bb   : > { %v1805_v6 = vadd.f32 %v1804_v9, %v6240_v51  ;;  %v1806_v15 = vpop.f32.mrb[158].mxu1  ;;  %3735 = vmatprep.mubr.bf16.mxu0 %v2393_v44 }
 0x2bc   : > { %v1807_v16 = vadd.f32 %v1806_v15, %v6237_v27  ;;  %v1808_v45 = vpop.f32.mrb[159].mxu1  ;;  %3736 = vmatmul.mubr.bf16.gmra.mrb[24].mxu0 %v2392_v8  ;;  %v2200_v29 = vmax.f32 %v1803_v1, 0.0 }
 0x2bd   : > { %v1809_v63 = vadd.f32 %v1808_v45, %v6240_v51  ;;  %3861 = vmatpush1.bf16.msra.mxu0 %v5293_v28  ;;  %v2201_v50 = vmax.f32 %v1805_v6, 0.0 }
 0x2be   : > { %v2208_v31 = vmax.f32 %v1807_v16, 0.0  ;;  %3862 = vmatprep.subr.bf16.mxu0 %v5298_v11 }
 0x2bf   : > { %v2209_v24 = vmax.f32 %v1809_v63, 0.0 }
 0x2c0   : > { %v2400_v41 = vpack.c.bf16 %v2208_v31, %v2200_v29 }
 0x2c1   : > { %v2401_v35 = vpack.c.bf16 %v2209_v24, %v2201_v50  ;;  %v1812_v39 = vpop.f32.mrb[160].mxu1  ;;  %3863 = vmatpush1.bf16.msra.mxu0 %v5296_v34 }
 0x2c2   : > { %v1813_v53 = vadd.f32 %v1812_v39, %v6237_v27  ;;  %v1814_v37 = vpop.f32.mrb[161].mxu1  ;;  %3864 = vmatprep.subr.bf16.mxu0 %v5301_v47 }
 0x2c3   : > { %v1815_v32 = vadd.f32 %v1814_v37, %v6240_v51  ;;  %v1816_v38 = vpop.f32.mrb[162].mxu1  ;;  %3745 = vmatprep.mubr.bf16.mxu0 %v2401_v35 }
 0x2c4   : > { %v1817_v48 = vadd.f32 %v1816_v38, %v6237_v27  ;;  %v1818_v49 = vpop.f32.mrb[163].mxu1  ;;  %3746 = vmatmul.mubr.bf16.gmra.mrb[28].mxu0 %v2400_v41  ;;  %v2216_v3 = vmax.f32 %v1813_v53, 0.0 }
 0x2c5   : > { %v1819_v22 = vadd.f32 %v1818_v49, %v6240_v51  ;;  %3865 = vmatpush1.bf16.msra.mxu0 %v5299_v10  ;;  %v2217_v19 = vmax.f32 %v1815_v32, 0.0 }
 0x2c6   : > { %v2224_v17 = vmax.f32 %v1817_v48, 0.0  ;;  %3866 = vmatprep.subr.bf16.mxu0 %v5304_v46 }
 0x2c7   : > { %v2225_v12 = vmax.f32 %v1819_v22, 0.0 }
 0x2c8   : > { %v2408_v55 = vpack.c.bf16 %v2224_v17, %v2216_v3 }
 0x2c9   : > { %v2409_v20 = vpack.c.bf16 %v2225_v12, %v2217_v19  ;;  %v1822_v13 = vpop.f32.mrb[164].mxu1  ;;  %3867 = vmatpush1.bf16.msra.mxu0 %v5302_v52 }
 0x2ca   : > { %v1823_v2 = vadd.f32 %v1822_v13, %v6237_v27  ;;  %v1824_v18 = vpop.f32.mrb[165].mxu1 }
 0x2cb   : > { %v1825_v60 = vadd.f32 %v1824_v18, %v6240_v51  ;;  %v1826_v56 = vpop.f32.mrb[166].mxu1  ;;  %3755 = vmatprep.mubr.bf16.mxu0 %v2409_v20 }
 0x2cc   : > { %v1827_v33 = vadd.f32 %v1826_v56, %v6237_v27  ;;  %v1828_v61 = vpop.f32.mrb[167].mxu1  ;;  %3756 = vmatmul.mubr.bf16.gmra.mrb[32].mxu0 %v2408_v55  ;;  %v2232_v23 = vmax.f32 %v1823_v2, 0.0 }
 0x2cd   : > { %v1829_v25 = vadd.f32 %v1828_v61, %v6240_v51  ;;  %v2233_v42 = vmax.f32 %v1825_v60, 0.0 }
 0x2ce   : > { %v2240_v0 = vmax.f32 %v1827_v33, 0.0 }
 0x2cf   : > { %v2241_v7 = vmax.f32 %v1829_v25, 0.0 }
 0x2d0   : > { %v2416_v40 = vpack.c.bf16 %v2240_v0, %v2232_v23 }
 0x2d1   : > { %v2417_v21 = vpack.c.bf16 %v2241_v7, %v2233_v42  ;;  %v1832_v14 = vpop.f32.mrb[168].mxu1 }
 0x2d2   : > { %v1833_v62 = vadd.f32 %v1832_v14, %v6237_v27  ;;  %v1834_v36 = vpop.f32.mrb[169].mxu1 }
 0x2d3   : > { %v1835_v4 = vadd.f32 %v1834_v36, %v6240_v51  ;;  %v1836_v43 = vpop.f32.mrb[170].mxu1  ;;  %3765 = vmatprep.mubr.bf16.mxu0 %v2417_v21 }
 0x2d4   : > { %v1837_v8 = vadd.f32 %v1836_v43, %v6237_v27  ;;  %v1838_v44 = vpop.f32.mrb[171].mxu1  ;;  %3766 = vmatmul.mubr.bf16.gmra.mrb[36].mxu0 %v2416_v40  ;;  %v2248_v28 = vmax.f32 %v1833_v62, 0.0 }
 0x2d5   : > { %v1839_v59 = vadd.f32 %v1838_v44, %v6240_v51  ;;  %v2249_v9 = vmax.f32 %v1835_v4, 0.0 }
 0x2d6   : > { %v2256_v1 = vmax.f32 %v1837_v8, 0.0 }
 0x2d7   : > { %v2257_v11 = vmax.f32 %v1839_v59, 0.0 }
 0x2d8   : > { %v2424_v6 = vpack.c.bf16 %v2256_v1, %v2248_v28 }
 0x2d9   : > { %v2425_v15 = vpack.c.bf16 %v2257_v11, %v2249_v9  ;;  %v1842_v16 = vpop.f32.mrb[172].mxu1 }
 0x2da   : > { %v1843_v45 = vadd.f32 %v1842_v16, %v6237_v27  ;;  %v1844_v63 = vpop.f32.mrb[173].mxu1 }
 0x2db   : > { %v1845_v34 = vadd.f32 %v1844_v63, %v6240_v51  ;;  %v1846_v29 = vpop.f32.mrb[174].mxu1  ;;  %3775 = vmatprep.mubr.bf16.mxu0 %v2425_v15 }
 0x2dc   : > { %v1847_v31 = vadd.f32 %v1846_v29, %v6237_v27  ;;  %v1848_v47 = vpop.f32.mrb[175].mxu1  ;;  %3776 = vmatmul.mubr.bf16.gmra.mrb[40].mxu0 %v2424_v6  ;;  %v2264_v24 = vmax.f32 %v1843_v45, 0.0 }
 0x2dd   : > { %v1849_v50 = vadd.f32 %v1848_v47, %v6240_v51  ;;  %v2265_v35 = vmax.f32 %v1845_v34, 0.0  ;;  %v467_v34 = vrot.slane %v6223_v30, %v450_v5  ;;  %v471_v47 = vrot.slane %v6223_v30, %v454_v26 }
 0x2de   : > { %v2272_v41 = vmax.f32 %v1847_v31, 0.0 }
 0x2df   : > { %v2273_v39 = vmax.f32 %v1849_v50, 0.0 }
 0x2e0   : > { %v2432_v10 = vpack.c.bf16 %v2272_v41, %v2264_v24 }
 0x2e1   : > { %v2433_v53 = vpack.c.bf16 %v2273_v39, %v2265_v35  ;;  %v1852_v37 = vpop.f32.mrb[176].mxu1 }
 0x2e2   : > { %v1853_v46 = vadd.f32 %v1852_v37, %v6237_v27  ;;  %v1854_v32 = vpop.f32.mrb[177].mxu1  ;;  %v6326_v37 = vrot.slane %v471_v47, %v5905_v58 }
 0x2e3   : > { %v1855_v38 = vadd.f32 %v1854_v32, %v6240_v51  ;;  %v1856_v48 = vpop.f32.mrb[178].mxu1  ;;  %3785 = vmatprep.mubr.bf16.mxu0 %v2433_v53 }
 0x2e4   : > { %v1857_v49 = vadd.f32 %v1856_v48, %v6237_v27  ;;  %v1858_v22 = vpop.f32.mrb[179].mxu1  ;;  %3786 = vmatmul.mubr.bf16.gmra.mrb[44].mxu0 %v2432_v10  ;;  %v2280_v3 = vmax.f32 %v1853_v46, 0.0  ;;  %v6323_v10 = vrot.slane %v467_v34, %v5905_v58 }
 0x2e5   : > { %v1859_v52 = vadd.f32 %v1858_v22, %v6240_v51  ;;  %v2281_v19 = vmax.f32 %v1855_v38, 0.0 }
 0x2e6   : > { %v2288_v17 = vmax.f32 %v1857_v49, 0.0 }
 0x2e7   : > { %v2289_v12 = vmax.f32 %v1859_v52, 0.0 }
 0x2e8   : > { %v2440_v55 = vpack.c.bf16 %v2288_v17, %v2280_v3 }
 0x2e9   : > { %v2441_v20 = vpack.c.bf16 %v2289_v12, %v2281_v19  ;;  %v1862_v13 = vpop.f32.mrb[180].mxu1 }
 0x2ea   : > { %v1863_v2 = vadd.f32 %v1862_v13, %v6237_v27  ;;  %v1864_v18 = vpop.f32.mrb[181].mxu1 }
 0x2eb   : > { %v1865_v60 = vadd.f32 %v1864_v18, %v6240_v51  ;;  %v1866_v56 = vpop.f32.mrb[182].mxu1  ;;  %3795 = vmatprep.mubr.bf16.mxu0 %v2441_v20 }
 0x2ec   : > { %v1867_v33 = vadd.f32 %v1866_v56, %v6237_v27  ;;  %v1868_v61 = vpop.f32.mrb[183].mxu1  ;;  %3796 = vmatmul.mubr.bf16.gmra.mrb[48].mxu0 %v2440_v55  ;;  %v2296_v23 = vmax.f32 %v1863_v2, 0.0 }
 0x2ed   : > { %v1869_v25 = vadd.f32 %v1868_v61, %v6240_v51  ;;  %v2297_v42 = vmax.f32 %v1865_v60, 0.0 }
 0x2ee   : > { %v2304_v0 = vmax.f32 %v1867_v33, 0.0 }
 0x2ef   : > { %v2305_v7 = vmax.f32 %v1869_v25, 0.0 }
 0x2f0   : > { %v2448_v40 = vpack.c.bf16 %v2304_v0, %v2296_v23 }
 0x2f1   : > { %v2449_v21 = vpack.c.bf16 %v2305_v7, %v2297_v42  ;;  %v1872_v14 = vpop.f32.mrb[184].mxu1 }
 0x2f2   : > { %v1873_v62 = vadd.f32 %v1872_v14, %v6237_v27  ;;  %v1874_v36 = vpop.f32.mrb[185].mxu1 }
 0x2f3   : > { %v1875_v4 = vadd.f32 %v1874_v36, %v6240_v51  ;;  %v1876_v43 = vpop.f32.mrb[186].mxu1  ;;  %3805 = vmatprep.mubr.bf16.mxu0 %v2449_v21 }
 0x2f4   : > { %v1877_v8 = vadd.f32 %v1876_v43, %v6237_v27  ;;  %v1878_v44 = vpop.f32.mrb[187].mxu1  ;;  %3806 = vmatmul.mubr.bf16.gmra.mrb[52].mxu0 %v2448_v40  ;;  %v2312_v28 = vmax.f32 %v1873_v62, 0.0 }
 0x2f5   : > { %v1879_v59 = vadd.f32 %v1878_v44, %v6240_v51  ;;  %v2313_v9 = vmax.f32 %v1875_v4, 0.0 }
 0x2f6   : > { %v2320_v1 = vmax.f32 %v1877_v8, 0.0 }
 0x2f7   : > { %v2321_v11 = vmax.f32 %v1879_v59, 0.0 }
 0x2f8   : > { %v2456_v6 = vpack.c.bf16 %v2320_v1, %v2312_v28 }
 0x2f9   : > { %v2457_v15 = vpack.c.bf16 %v2321_v11, %v2313_v9  ;;  %v1882_v16 = vpop.f32.mrb[188].mxu1 }
 0x2fa   : > { %v1883_v45 = vadd.f32 %v1882_v16, %v6237_v27  ;;  %v1884_v63 = vpop.f32.mrb[189].mxu1 }
 0x2fb   : > { %v1885_v29 = vadd.f32 %v1884_v63, %v6240_v51  ;;  %v1886_v31 = vpop.f32.mrb[190].mxu1  ;;  %3815 = vmatprep.mubr.bf16.mxu0 %v2457_v15 }
 0x2fc   : > { %v1887_v50 = vadd.f32 %v1886_v31, %v6237_v27  ;;  %v1888_v24 = vpop.f32.mrb[191].mxu1  ;;  %3816 = vmatmul.mubr.bf16.gmra.mrb[56].mxu0 %v2456_v6  ;;  %v2328_v35 = vmax.f32 %v1883_v45, 0.0 }
 0x2fd   : > { %v1889_v41 = vadd.f32 %v1888_v24, %v6240_v51  ;;  %v2329_v5 = vmax.f32 %v1885_v29, 0.0 }
 0x2fe   : > { %v2336_v39 = vmax.f32 %v1887_v50, 0.0 }
 0x2ff   : > { %v2337_v53 = vmax.f32 %v1889_v41, 0.0 }
 0x300   : > { %v2464_v46 = vpack.c.bf16 %v2336_v39, %v2328_v35 }
 0x301   : > { %v2465_v57 = vpack.c.bf16 %v2337_v53, %v2329_v5  ;;  %v1925_v32 = vpop.f32.mrb[192].mxu1 }
 0x302   : > { %v1926_v26 = vadd.f32 %v1925_v32, %v6323_v10  ;;  %v1927_v30 = vpop.f32.mrb[193].mxu1 }
 0x303   : > { %v1928_v27 = vadd.f32 %v1927_v30, %v6326_v37  ;;  %v1929_v38 = vpop.f32.mrb[194].mxu1  ;;  %3825 = vmatprep.mubr.bf16.mxu0 %v2465_v57 }
 0x304   : > { %v1930_v51 = vadd.f32 %v1929_v38, %v6323_v10  ;;  %v1931_v48 = vpop.f32.mrb[195].mxu1  ;;  %3826 = vmatmul.mubr.bf16.gmra.mrb[60].mxu0 %v2464_v46  ;;  %v2090_v22 = vmax.f32 %v1926_v26, 0.0 }
 0x305   : > { %v1932_v49 = vadd.f32 %v1931_v48, %v6326_v37  ;;  %v2091_v3 = vmax.f32 %v1928_v27, 0.0 }
 0x306   : > { %v2098_v52 = vmax.f32 %v1930_v51, 0.0 }
 0x307   : > { %v2099_v17 = vmax.f32 %v1932_v49, 0.0 }
 0x308   : > { %v2346_v19 = vpack.c.bf16 %v2098_v52, %v2090_v22 }
 0x309   : > { %v2347_v12 = vpack.c.bf16 %v2099_v17, %v2091_v3  ;;  %v1935_v55 = vpop.f32.mrb[196].mxu1 }
 0x30a   : > { %v1936_v20 = vadd.f32 %v1935_v55, %v6323_v10  ;;  %v1937_v13 = vpop.f32.mrb[197].mxu1 }
 0x30b   : > { %v1938_v2 = vadd.f32 %v1937_v13, %v6326_v37  ;;  %v1939_v18 = vpop.f32.mrb[198].mxu1  ;;  %3868 = vmatprep.mubr.bf16.mxu0 %v2347_v12 }
 0x30c   : > { %v1940_v60 = vadd.f32 %v1939_v18, %v6323_v10  ;;  %v1941_v56 = vpop.f32.mrb[199].mxu1  ;;  %3869 = vmatmul.mubr.bf16.vlgmr.msra.gmra.mrb[0].mxu0 %v2346_v19  ;;  %v2106_v61 = vmax.f32 %v1936_v20, 0.0 }
 0x30d   : > { %v1942_v33 = vadd.f32 %v1941_v56, %v6326_v37  ;;  %v2107_v23 = vmax.f32 %v1938_v2, 0.0 }
 0x30e   : > { %v2114_v25 = vmax.f32 %v1940_v60, 0.0 }
 0x30f   : > { %v2115_v0 = vmax.f32 %v1942_v33, 0.0 }
 0x310   : > { %v2354_v42 = vpack.c.bf16 %v2114_v25, %v2106_v61 }
 0x311   : > { %v2355_v7 = vpack.c.bf16 %v2115_v0, %v2107_v23  ;;  %v1945_v40 = vpop.f32.mrb[200].mxu1 }
 0x312   : > { %v1946_v21 = vadd.f32 %v1945_v40, %v6323_v10  ;;  %v1947_v14 = vpop.f32.mrb[201].mxu1 }
 0x313   : > { %v1948_v62 = vadd.f32 %v1947_v14, %v6326_v37  ;;  %v1949_v36 = vpop.f32.mrb[202].mxu1  ;;  %3878 = vmatprep.mubr.bf16.mxu0 %v2355_v7 }
 0x314   : > { %v1950_v4 = vadd.f32 %v1949_v36, %v6323_v10  ;;  %v1951_v43 = vpop.f32.mrb[203].mxu1  ;;  %3879 = vmatmul.mubr.bf16.gmra.mrb[4].mxu0 %v2354_v42  ;;  %v2122_v44 = vmax.f32 %v1946_v21, 0.0 }
 0x315   : > { %v1952_v8 = vadd.f32 %v1951_v43, %v6326_v37  ;;  %v2123_v28 = vmax.f32 %v1948_v62, 0.0 }
 0x316   : > { %v2130_v59 = vmax.f32 %v1950_v4, 0.0 }
 0x317   : > { %v2131_v1 = vmax.f32 %v1952_v8, 0.0 }
 0x318   : > { %v2362_v9 = vpack.c.bf16 %v2130_v59, %v2122_v44 }
 0x319   : > { %v2363_v11 = vpack.c.bf16 %v2131_v1, %v2123_v28  ;;  %v1955_v6 = vpop.f32.mrb[204].mxu1 }
 0x31a   : > { %v1956_v15 = vadd.f32 %v1955_v6, %v6323_v10  ;;  %v1957_v16 = vpop.f32.mrb[205].mxu1 }
 0x31b   : > { %v1958_v45 = vadd.f32 %v1957_v16, %v6326_v37  ;;  %v1959_v63 = vpop.f32.mrb[206].mxu1  ;;  %3888 = vmatprep.mubr.bf16.mxu0 %v2363_v11 }
 0x31c   : > { %v1960_v34 = vadd.f32 %v1959_v63, %v6323_v10  ;;  %v1961_v29 = vpop.f32.mrb[207].mxu1  ;;  %3889 = vmatmul.mubr.bf16.gmra.mrb[8].mxu0 %v2362_v9  ;;  %v2138_v47 = vmax.f32 %v1956_v15, 0.0 }
 0x31d   : > { %v1962_v31 = vadd.f32 %v1961_v29, %v6326_v37  ;;  %v2139_v24 = vmax.f32 %v1958_v45, 0.0 }
 0x31e   : > { %v2146_v50 = vmax.f32 %v1960_v34, 0.0 }
 0x31f   : > { %v2147_v41 = vmax.f32 %v1962_v31, 0.0 }
 0x320   : > { %v2370_v35 = vpack.c.bf16 %v2146_v50, %v2138_v47 }
 0x321   : > { %v2371_v39 = vpack.c.bf16 %v2147_v41, %v2139_v24  ;;  %v1965_v5 = vpop.f32.mrb[208].mxu1 }
 0x322   : > { %v1966_v53 = vadd.f32 %v1965_v5, %v6323_v10  ;;  %v1967_v46 = vpop.f32.mrb[209].mxu1 }
 0x323   : > { %v1968_v57 = vadd.f32 %v1967_v46, %v6326_v37  ;;  %v1969_v32 = vpop.f32.mrb[210].mxu1  ;;  %3898 = vmatprep.mubr.bf16.mxu0 %v2371_v39 }
 0x324   : > { %v1970_v26 = vadd.f32 %v1969_v32, %v6323_v10  ;;  %v1971_v30 = vpop.f32.mrb[211].mxu1  ;;  %3899 = vmatmul.mubr.bf16.gmra.mrb[12].mxu0 %v2370_v35  ;;  %v2154_v38 = vmax.f32 %v1966_v53, 0.0 }
 0x325   : > { %v1972_v27 = vadd.f32 %v1971_v30, %v6326_v37  ;;  %v2155_v48 = vmax.f32 %v1968_v57, 0.0 }
 0x326   : > { %v2162_v51 = vmax.f32 %v1970_v26, 0.0 }
 0x327   : > { %v2163_v49 = vmax.f32 %v1972_v27, 0.0 }
 0x328   : > { %v2378_v22 = vpack.c.bf16 %v2162_v51, %v2154_v38 }
 0x329   : > { %v2379_v52 = vpack.c.bf16 %v2163_v49, %v2155_v48  ;;  %v1975_v3 = vpop.f32.mrb[212].mxu1 }
 0x32a   : > { %v1976_v17 = vadd.f32 %v1975_v3, %v6323_v10  ;;  %v1977_v19 = vpop.f32.mrb[213].mxu1 }
 0x32b   : > { %v1978_v12 = vadd.f32 %v1977_v19, %v6326_v37  ;;  %v1979_v55 = vpop.f32.mrb[214].mxu1  ;;  %3908 = vmatprep.mubr.bf16.mxu0 %v2379_v52 }
 0x32c   : > { %v1980_v20 = vadd.f32 %v1979_v55, %v6323_v10  ;;  %v1981_v13 = vpop.f32.mrb[215].mxu1  ;;  %3909 = vmatmul.mubr.bf16.gmra.mrb[16].mxu0 %v2378_v22  ;;  %v2170_v18 = vmax.f32 %v1976_v17, 0.0 }
 0x32d   : > { %v1982_v2 = vadd.f32 %v1981_v13, %v6326_v37  ;;  %v2171_v56 = vmax.f32 %v1978_v12, 0.0 }
 0x32e   : > { %v2178_v60 = vmax.f32 %v1980_v20, 0.0 }
 0x32f   : > { %v2179_v33 = vmax.f32 %v1982_v2, 0.0 }
 0x330   : > { %v2386_v61 = vpack.c.bf16 %v2178_v60, %v2170_v18 }
 0x331   : > { %v2387_v25 = vpack.c.bf16 %v2179_v33, %v2171_v56  ;;  %v1985_v23 = vpop.f32.mrb[216].mxu1 }
 0x332   : > { %v1986_v0 = vadd.f32 %v1985_v23, %v6323_v10  ;;  %v1987_v42 = vpop.f32.mrb[217].mxu1 }
 0x333   : > { %v1988_v7 = vadd.f32 %v1987_v42, %v6326_v37  ;;  %v1989_v40 = vpop.f32.mrb[218].mxu1  ;;  %3918 = vmatprep.mubr.bf16.mxu0 %v2387_v25 }
 0x334   : > { %v1990_v21 = vadd.f32 %v1989_v40, %v6323_v10  ;;  %v1991_v14 = vpop.f32.mrb[219].mxu1  ;;  %3919 = vmatmul.mubr.bf16.gmra.mrb[20].mxu0 %v2386_v61  ;;  %v2186_v36 = vmax.f32 %v1986_v0, 0.0 }
 0x335   : > { %v1992_v62 = vadd.f32 %v1991_v14, %v6326_v37  ;;  %v2187_v43 = vmax.f32 %v1988_v7, 0.0 }
 0x336   : > { %v2194_v4 = vmax.f32 %v1990_v21, 0.0 }
 0x337   : > { %v2195_v8 = vmax.f32 %v1992_v62, 0.0 }
 0x338   : > { %v2394_v44 = vpack.c.bf16 %v2194_v4, %v2186_v36 }
 0x339   : > { %v2395_v59 = vpack.c.bf16 %v2195_v8, %v2187_v43  ;;  %v1995_v28 = vpop.f32.mrb[220].mxu1 }
 0x33a   : > { %v1996_v1 = vadd.f32 %v1995_v28, %v6323_v10  ;;  %v1997_v9 = vpop.f32.mrb[221].mxu1 }
 0x33b   : > { %v1998_v11 = vadd.f32 %v1997_v9, %v6326_v37  ;;  %v1999_v6 = vpop.f32.mrb[222].mxu1  ;;  %3928 = vmatprep.mubr.bf16.mxu0 %v2395_v59 }
 0x33c   : > { %v2000_v15 = vadd.f32 %v1999_v6, %v6323_v10  ;;  %v2001_v16 = vpop.f32.mrb[223].mxu1  ;;  %3929 = vmatmul.mubr.bf16.gmra.mrb[24].mxu0 %v2394_v44  ;;  %v2202_v63 = vmax.f32 %v1996_v1, 0.0 }
 0x33d   : > { %v2002_v45 = vadd.f32 %v2001_v16, %v6326_v37  ;;  %v2203_v29 = vmax.f32 %v1998_v11, 0.0 }
 0x33e   : > { %v2210_v34 = vmax.f32 %v2000_v15, 0.0 }
 0x33f   : > { %v2211_v31 = vmax.f32 %v2002_v45, 0.0 }
 0x340   : > { %v2402_v47 = vpack.c.bf16 %v2210_v34, %v2202_v63 }
 0x341   : > { %v2403_v50 = vpack.c.bf16 %v2211_v31, %v2203_v29  ;;  %v2005_v24 = vpop.f32.mrb[224].mxu1 }
 0x342   : > { %v2006_v41 = vadd.f32 %v2005_v24, %v6323_v10  ;;  %v2007_v35 = vpop.f32.mrb[225].mxu1 }
 0x343   : > { %v2008_v39 = vadd.f32 %v2007_v35, %v6326_v37  ;;  %v2009_v5 = vpop.f32.mrb[226].mxu1  ;;  %3938 = vmatprep.mubr.bf16.mxu0 %v2403_v50 }
 0x344   : > { %v2010_v53 = vadd.f32 %v2009_v5, %v6323_v10  ;;  %v2011_v46 = vpop.f32.mrb[227].mxu1  ;;  %3939 = vmatmul.mubr.bf16.gmra.mrb[28].mxu0 %v2402_v47  ;;  %v2218_v32 = vmax.f32 %v2006_v41, 0.0 }
 0x345   : > { %v2012_v57 = vadd.f32 %v2011_v46, %v6326_v37  ;;  %v2219_v30 = vmax.f32 %v2008_v39, 0.0 }
 0x346   : > { %v2226_v26 = vmax.f32 %v2010_v53, 0.0 }
 0x347   : > { %v2227_v27 = vmax.f32 %v2012_v57, 0.0 }
 0x348   : > { %v2410_v38 = vpack.c.bf16 %v2226_v26, %v2218_v32 }
 0x349   : > { %v2411_v51 = vpack.c.bf16 %v2227_v27, %v2219_v30  ;;  %v2015_v48 = vpop.f32.mrb[228].mxu1 }
 0x34a   : > { %v2016_v49 = vadd.f32 %v2015_v48, %v6323_v10  ;;  %v2017_v22 = vpop.f32.mrb[229].mxu1 }
 0x34b   : > { %v2018_v52 = vadd.f32 %v2017_v22, %v6326_v37  ;;  %v2019_v3 = vpop.f32.mrb[230].mxu1  ;;  %3948 = vmatprep.mubr.bf16.mxu0 %v2411_v51 }
 0x34c   : > { %v2020_v17 = vadd.f32 %v2019_v3, %v6323_v10  ;;  %v2021_v19 = vpop.f32.mrb[231].mxu1  ;;  %3949 = vmatmul.mubr.bf16.gmra.mrb[32].mxu0 %v2410_v38  ;;  %v2234_v55 = vmax.f32 %v2016_v49, 0.0 }
 0x34d   : > { %v2022_v12 = vadd.f32 %v2021_v19, %v6326_v37  ;;  %v2235_v13 = vmax.f32 %v2018_v52, 0.0 }
 0x34e   : > { %v2242_v20 = vmax.f32 %v2020_v17, 0.0 }
 0x34f   : > { %v2243_v2 = vmax.f32 %v2022_v12, 0.0 }
 0x350   : > { %v2418_v18 = vpack.c.bf16 %v2242_v20, %v2234_v55 }
 0x351   : > { %v2419_v60 = vpack.c.bf16 %v2243_v2, %v2235_v13  ;;  %v2025_v56 = vpop.f32.mrb[232].mxu1 }
 0x352   : > { %v2026_v33 = vadd.f32 %v2025_v56, %v6323_v10  ;;  %v2027_v61 = vpop.f32.mrb[233].mxu1 }
 0x353   : > { %v2028_v25 = vadd.f32 %v2027_v61, %v6326_v37  ;;  %v2029_v23 = vpop.f32.mrb[234].mxu1  ;;  %3958 = vmatprep.mubr.bf16.mxu0 %v2419_v60 }
 0x354   : > { %v2030_v0 = vadd.f32 %v2029_v23, %v6323_v10  ;;  %v2031_v42 = vpop.f32.mrb[235].mxu1  ;;  %3959 = vmatmul.mubr.bf16.gmra.mrb[36].mxu0 %v2418_v18  ;;  %v2250_v40 = vmax.f32 %v2026_v33, 0.0 }
 0x355   : > { %v2032_v7 = vadd.f32 %v2031_v42, %v6326_v37  ;;  %v2251_v14 = vmax.f32 %v2028_v25, 0.0 }
 0x356   : > { %v2258_v21 = vmax.f32 %v2030_v0, 0.0 }
 0x357   : > { %v2259_v62 = vmax.f32 %v2032_v7, 0.0 }
 0x358   : > { %v2426_v36 = vpack.c.bf16 %v2258_v21, %v2250_v40 }
 0x359   : > { %v2427_v4 = vpack.c.bf16 %v2259_v62, %v2251_v14  ;;  %v2035_v43 = vpop.f32.mrb[236].mxu1 }
 0x35a   : > { %v2036_v8 = vadd.f32 %v2035_v43, %v6323_v10  ;;  %v2037_v44 = vpop.f32.mrb[237].mxu1 }
 0x35b   : > { %v2038_v59 = vadd.f32 %v2037_v44, %v6326_v37  ;;  %v2039_v28 = vpop.f32.mrb[238].mxu1  ;;  %3968 = vmatprep.mubr.bf16.mxu0 %v2427_v4 }
 0x35c   : > { %v2040_v1 = vadd.f32 %v2039_v28, %v6323_v10  ;;  %v2041_v9 = vpop.f32.mrb[239].mxu1  ;;  %3969 = vmatmul.mubr.bf16.gmra.mrb[40].mxu0 %v2426_v36  ;;  %v2266_v6 = vmax.f32 %v2036_v8, 0.0 }
 0x35d   : > { %v2042_v11 = vadd.f32 %v2041_v9, %v6326_v37  ;;  %v2267_v16 = vmax.f32 %v2038_v59, 0.0 }
 0x35e   : > { %v2274_v15 = vmax.f32 %v2040_v1, 0.0 }
 0x35f   : > { %v2275_v45 = vmax.f32 %v2042_v11, 0.0 }
 0x360   : > { %v2434_v63 = vpack.c.bf16 %v2274_v15, %v2266_v6 }
 0x361   : > { %v2435_v34 = vpack.c.bf16 %v2275_v45, %v2267_v16  ;;  %v2045_v29 = vpop.f32.mrb[240].mxu1  ;;  %v2596_v16 = vld [vmem:[%s6558_s4] sm:$0x3] }
 0x362   : > { %v2046_v31 = vadd.f32 %v2045_v29, %v6323_v10  ;;  %v2047_v47 = vpop.f32.mrb[241].mxu1  ;;  %v2597_v45 = vunpack.c.l.bf16 %v2596_v16 }
 0x363   : > { %v2048_v50 = vadd.f32 %v2047_v47, %v6326_v37  ;;  %v2049_v24 = vpop.f32.mrb[242].mxu1  ;;  %3978 = vmatprep.mubr.bf16.mxu0 %v2435_v34 }
 0x364   : > { %v2050_v41 = vadd.f32 %v2049_v24, %v6323_v10  ;;  %v2051_v35 = vpop.f32.mrb[243].mxu1  ;;  %3979 = vmatmul.mubr.bf16.gmra.mrb[44].mxu0 %v2434_v63  ;;  %v2282_v5 = vmax.f32 %v2046_v31, 0.0  ;;  %v2606_v63 = vrot.slane %v2597_v45, %v5909_v54 }
 0x365   : > { %v2052_v39 = vadd.f32 %v2051_v35, %v6326_v37  ;;  %v2283_v46 = vmax.f32 %v2048_v50, 0.0 }
 0x366   : > { %v2290_v53 = vmax.f32 %v2050_v41, 0.0  ;;  %v6401_v34 = vrot.slane %v2606_v63, %v5905_v58 }
 0x367   : > { %v2291_v57 = vmax.f32 %v2052_v39, 0.0 }
 0x368   : > { %v2442_v32 = vpack.c.bf16 %v2290_v53, %v2282_v5 }
 0x369   : > { %v2443_v26 = vpack.c.bf16 %v2291_v57, %v2283_v46  ;;  %v2055_v30 = vpop.f32.mrb[244].mxu1 }
 0x36a   : > { %v2056_v27 = vadd.f32 %v2055_v30, %v6323_v10  ;;  %v2057_v38 = vpop.f32.mrb[245].mxu1 }
 0x36b   : > { %v2058_v51 = vadd.f32 %v2057_v38, %v6326_v37  ;;  %v2059_v48 = vpop.f32.mrb[246].mxu1  ;;  %3988 = vmatprep.mubr.bf16.mxu0 %v2443_v26 }
 0x36c   : > { %v2060_v49 = vadd.f32 %v2059_v48, %v6323_v10  ;;  %v2061_v22 = vpop.f32.mrb[247].mxu1  ;;  %3989 = vmatmul.mubr.bf16.gmra.mrb[48].mxu0 %v2442_v32  ;;  %v2298_v3 = vmax.f32 %v2056_v27, 0.0 }
 0x36d   : > { %v2062_v52 = vadd.f32 %v2061_v22, %v6326_v37  ;;  %v2299_v19 = vmax.f32 %v2058_v51, 0.0 }
 0x36e   : > { %v2306_v17 = vmax.f32 %v2060_v49, 0.0 }
 0x36f   : > { %v2307_v12 = vmax.f32 %v2062_v52, 0.0 }
 0x370   : > { %v2450_v55 = vpack.c.bf16 %v2306_v17, %v2298_v3 }
 0x371   : > { %v2451_v20 = vpack.c.bf16 %v2307_v12, %v2299_v19  ;;  %v2065_v13 = vpop.f32.mrb[248].mxu1 }
 0x372   : > { %v2066_v2 = vadd.f32 %v2065_v13, %v6323_v10  ;;  %v2067_v18 = vpop.f32.mrb[249].mxu1 }
 0x373   : > { %v2068_v60 = vadd.f32 %v2067_v18, %v6326_v37  ;;  %v2069_v56 = vpop.f32.mrb[250].mxu1  ;;  %3998 = vmatprep.mubr.bf16.mxu0 %v2451_v20 }
 0x374   : > { %v2070_v33 = vadd.f32 %v2069_v56, %v6323_v10  ;;  %v2071_v61 = vpop.f32.mrb[251].mxu1  ;;  %3999 = vmatmul.mubr.bf16.gmra.mrb[52].mxu0 %v2450_v55  ;;  %v2314_v23 = vmax.f32 %v2066_v2, 0.0 }
 0x375   : > { %v2072_v25 = vadd.f32 %v2071_v61, %v6326_v37  ;;  %v2315_v42 = vmax.f32 %v2068_v60, 0.0 }
 0x376   : > { %v2322_v0 = vmax.f32 %v2070_v33, 0.0 }
 0x377   : > { %v2323_v7 = vmax.f32 %v2072_v25, 0.0 }
 0x378   : > { %v2458_v40 = vpack.c.bf16 %v2322_v0, %v2314_v23 }
 0x379   : > { %v2459_v21 = vpack.c.bf16 %v2323_v7, %v2315_v42  ;;  %v2075_v14 = vpop.f32.mrb[252].mxu1 }
 0x37a   : > { %v2076_v62 = vadd.f32 %v2075_v14, %v6323_v10  ;;  %v2077_v36 = vpop.f32.mrb[253].mxu1 }
 0x37b   : > { %v2078_v4 = vadd.f32 %v2077_v36, %v6326_v37  ;;  %v2079_v43 = vpop.f32.mrb[254].mxu1  ;;  %4008 = vmatprep.mubr.bf16.mxu0 %v2459_v21 }
 0x37c   : > { %v2080_v8 = vadd.f32 %v2079_v43, %v6323_v10  ;;  %v2081_v44 = vpop.f32.mrb[255].mxu1  ;;  %4009 = vmatmul.mubr.bf16.gmra.mrb[56].mxu0 %v2458_v40  ;;  %v2330_v28 = vmax.f32 %v2076_v62, 0.0  ;;  %v2602_v10 = vrot.slane %v2597_v45, %v5905_v58 }
 0x37d   : > { %v2082_v59 = vadd.f32 %v2081_v44, %v6326_v37  ;;  %v2331_v9 = vmax.f32 %v2078_v4, 0.0 }
 0x37e   : > { %v2338_v1 = vmax.f32 %v2080_v8, 0.0  ;;  %v6398_v37 = vrot.slane %v2602_v10, %v5905_v58 }
 0x37f   : > { %v2339_v11 = vmax.f32 %v2082_v59, 0.0 }
 0x380   : > { %v2466_v6 = vpack.c.bf16 %v2338_v1, %v2330_v28 }
 0x381   : > { %v2467_v15 = vpack.c.bf16 %v2339_v11, %v2331_v9 }
 0x383   : > { %4018 = vmatprep.mubr.bf16.mxu0 %v2467_v15 }
 0x384   : > { %4019 = vmatmul.mubr.bf16.gmra.mrb[60].mxu0 %v2466_v6 }
 0x3df   : > { %v3870_v29 = vpop.f32.mrb[0].mxu0 }
 0x3e0   : > { %v4736_v31 = vadd.f32 %v3870_v29, %v6398_v37  ;;  %v3872_v47 = vpop.f32.mrb[1].mxu0 }
 0x3e1   : > { %v4737_v50 = vadd.f32 %v3872_v47, %v6401_v34  ;;  %v3874_v24 = vpop.f32.mrb[2].mxu0 }
 0x3e2   : > { %v4738_v41 = vadd.f32 %v3874_v24, %v6398_v37  ;;  %v3876_v35 = vpop.f32.mrb[3].mxu0 }
 0x3e3   : > { %v4702_v39 = vpack.c.bf16 %v4737_v50, %v4736_v31  ;;  %v4739_v5 = vadd.f32 %v3876_v35, %v6401_v34 }
 0x3e5   : > { %4221 = vst [vmem:[%s6409_s15] sm:$0xff] %v4702_v39  ;;  %v4703_v58 = vpack.c.bf16 %v4739_v5, %v4738_v41 }
 0x3e7   : > { %4222 = vst [vmem:[%s6409_s15 + $0x8] sm:$0xff] %v4703_v58  ;;  %v3880_v54 = vpop.f32.mrb[4].mxu0 }
 0x3e8   : > { %v4740_v53 = vadd.f32 %v3880_v54, %v6398_v37  ;;  %v3882_v46 = vpop.f32.mrb[5].mxu0 }
 0x3e9   : > { %v4741_v57 = vadd.f32 %v3882_v46, %v6401_v34  ;;  %v3884_v32 = vpop.f32.mrb[6].mxu0 }
 0x3ea   : > { %v4742_v26 = vadd.f32 %v3884_v32, %v6398_v37  ;;  %v3886_v30 = vpop.f32.mrb[7].mxu0 }
 0x3eb   : > { %v4704_v27 = vpack.c.bf16 %v4741_v57, %v4740_v53  ;;  %v4743_v38 = vadd.f32 %v3886_v30, %v6401_v34 }
 0x3ed   : > { %4223 = vst [vmem:[%s6409_s15 + $0x10] sm:$0xff] %v4704_v27  ;;  %v4705_v51 = vpack.c.bf16 %v4743_v38, %v4742_v26 }
 0x3ef   : > { %4224 = vst [vmem:[%s6409_s15 + $0x18] sm:$0xff] %v4705_v51  ;;  %v3890_v48 = vpop.f32.mrb[8].mxu0 }
 0x3f0   : > { %v4744_v49 = vadd.f32 %v3890_v48, %v6398_v37  ;;  %v3892_v22 = vpop.f32.mrb[9].mxu0 }
 0x3f1   : > { %v4745_v52 = vadd.f32 %v3892_v22, %v6401_v34  ;;  %v3894_v3 = vpop.f32.mrb[10].mxu0 }
 0x3f2   : > { %v4746_v17 = vadd.f32 %v3894_v3, %v6398_v37  ;;  %v3896_v19 = vpop.f32.mrb[11].mxu0 }
 0x3f3   : > { %v4706_v12 = vpack.c.bf16 %v4745_v52, %v4744_v49  ;;  %v4747_v55 = vadd.f32 %v3896_v19, %v6401_v34 }
 0x3f5   : > { %4225 = vst [vmem:[%s6409_s15 + $0x20] sm:$0xff] %v4706_v12  ;;  %v4707_v20 = vpack.c.bf16 %v4747_v55, %v4746_v17 }
 0x3f7   : > { %4226 = vst [vmem:[%s6409_s15 + $0x28] sm:$0xff] %v4707_v20  ;;  %v3900_v13 = vpop.f32.mrb[12].mxu0 }
 0x3f8   : > { %v4748_v2 = vadd.f32 %v3900_v13, %v6398_v37  ;;  %v3902_v18 = vpop.f32.mrb[13].mxu0 }
 0x3f9   : > { %v4749_v60 = vadd.f32 %v3902_v18, %v6401_v34  ;;  %v3904_v56 = vpop.f32.mrb[14].mxu0 }
 0x3fa   : > { %v4750_v33 = vadd.f32 %v3904_v56, %v6398_v37  ;;  %v3906_v61 = vpop.f32.mrb[15].mxu0 }
 0x3fb   : > { %v4708_v25 = vpack.c.bf16 %v4749_v60, %v4748_v2  ;;  %v4751_v23 = vadd.f32 %v3906_v61, %v6401_v34 }
 0x3fd   : > { %4227 = vst [vmem:[%s6409_s15 + $0x30] sm:$0xff] %v4708_v25  ;;  %v4709_v0 = vpack.c.bf16 %v4751_v23, %v4750_v33 }
 0x3ff   : > { %4228 = vst [vmem:[%s6409_s15 + $0x38] sm:$0xff] %v4709_v0  ;;  %v3910_v42 = vpop.f32.mrb[16].mxu0 }
 0x400   : > { %v4752_v7 = vadd.f32 %v3910_v42, %v6398_v37  ;;  %v3912_v40 = vpop.f32.mrb[17].mxu0 }
 0x401   : > { %v4753_v21 = vadd.f32 %v3912_v40, %v6401_v34  ;;  %v3914_v14 = vpop.f32.mrb[18].mxu0 }
 0x402   : > { %v4754_v62 = vadd.f32 %v3914_v14, %v6398_v37  ;;  %v3916_v36 = vpop.f32.mrb[19].mxu0 }
 0x403   : > { %v4710_v4 = vpack.c.bf16 %v4753_v21, %v4752_v7  ;;  %v4755_v43 = vadd.f32 %v3916_v36, %v6401_v34 }
 0x405   : > { %4229 = vst [vmem:[%s6409_s15 + $0x40] sm:$0xff] %v4710_v4  ;;  %v4711_v8 = vpack.c.bf16 %v4755_v43, %v4754_v62 }
 0x407   : > { %4230 = vst [vmem:[%s6409_s15 + $0x48] sm:$0xff] %v4711_v8  ;;  %v3920_v44 = vpop.f32.mrb[20].mxu0 }
 0x408   : > { %v4756_v59 = vadd.f32 %v3920_v44, %v6398_v37  ;;  %v3922_v28 = vpop.f32.mrb[21].mxu0 }
 0x409   : > { %v4757_v1 = vadd.f32 %v3922_v28, %v6401_v34  ;;  %v3924_v9 = vpop.f32.mrb[22].mxu0 }
 0x40a   : > { %v4758_v11 = vadd.f32 %v3924_v9, %v6398_v37  ;;  %v3926_v6 = vpop.f32.mrb[23].mxu0 }
 0x40b   : > { %v4712_v15 = vpack.c.bf16 %v4757_v1, %v4756_v59  ;;  %v4759_v16 = vadd.f32 %v3926_v6, %v6401_v34 }
 0x40d   : > { %4231 = vst [vmem:[%s6409_s15 + $0x50] sm:$0xff] %v4712_v15  ;;  %v4713_v45 = vpack.c.bf16 %v4759_v16, %v4758_v11 }
 0x40f   : > { %4232 = vst [vmem:[%s6409_s15 + $0x58] sm:$0xff] %v4713_v45  ;;  %v3930_v10 = vpop.f32.mrb[24].mxu0 }
 0x410   : > { %v4760_v63 = vadd.f32 %v3930_v10, %v6398_v37  ;;  %v3932_v29 = vpop.f32.mrb[25].mxu0 }
 0x411   : > { %v4761_v31 = vadd.f32 %v3932_v29, %v6401_v34  ;;  %v3934_v47 = vpop.f32.mrb[26].mxu0 }
 0x412   : > { %v4762_v50 = vadd.f32 %v3934_v47, %v6398_v37  ;;  %v3936_v24 = vpop.f32.mrb[27].mxu0 }
 0x413   : > { %v4714_v41 = vpack.c.bf16 %v4761_v31, %v4760_v63  ;;  %v4763_v35 = vadd.f32 %v3936_v24, %v6401_v34 }
 0x415   : > { %4233 = vst [vmem:[%s6409_s15 + $0x60] sm:$0xff] %v4714_v41  ;;  %v4715_v39 = vpack.c.bf16 %v4763_v35, %v4762_v50 }
 0x417   : > { %4234 = vst [vmem:[%s6409_s15 + $0x68] sm:$0xff] %v4715_v39  ;;  %v3940_v5 = vpop.f32.mrb[28].mxu0 }
 0x418   : > { %v4764_v58 = vadd.f32 %v3940_v5, %v6398_v37  ;;  %v3942_v54 = vpop.f32.mrb[29].mxu0 }
 0x419   : > { %v4765_v53 = vadd.f32 %v3942_v54, %v6401_v34  ;;  %v3944_v46 = vpop.f32.mrb[30].mxu0 }
 0x41a   : > { %v4766_v57 = vadd.f32 %v3944_v46, %v6398_v37  ;;  %v3946_v32 = vpop.f32.mrb[31].mxu0 }
 0x41b   : > { %v4716_v26 = vpack.c.bf16 %v4765_v53, %v4764_v58  ;;  %v4767_v30 = vadd.f32 %v3946_v32, %v6401_v34 }
 0x41d   : > { %4235 = vst [vmem:[%s6409_s15 + $0x70] sm:$0xff] %v4716_v26  ;;  %v4717_v27 = vpack.c.bf16 %v4767_v30, %v4766_v57 }
 0x41f   : > { %4236 = vst [vmem:[%s6409_s15 + $0x78] sm:$0xff] %v4717_v27  ;;  %v3950_v38 = vpop.f32.mrb[32].mxu0 }
 0x420   : > { %v4768_v51 = vadd.f32 %v3950_v38, %v6398_v37  ;;  %v3952_v48 = vpop.f32.mrb[33].mxu0 }
 0x421   : > { %v4769_v49 = vadd.f32 %v3952_v48, %v6401_v34  ;;  %v3954_v22 = vpop.f32.mrb[34].mxu0 }
 0x422   : > { %v4770_v52 = vadd.f32 %v3954_v22, %v6398_v37  ;;  %v3956_v3 = vpop.f32.mrb[35].mxu0 }
 0x423   : > { %v4718_v17 = vpack.c.bf16 %v4769_v49, %v4768_v51  ;;  %v4771_v19 = vadd.f32 %v3956_v3, %v6401_v34 }
 0x425   : > { %4237 = vst [vmem:[%s6409_s15 + $0x80] sm:$0xff] %v4718_v17  ;;  %v4719_v12 = vpack.c.bf16 %v4771_v19, %v4770_v52 }
 0x427   : > { %4238 = vst [vmem:[%s6409_s15 + $0x88] sm:$0xff] %v4719_v12  ;;  %v3960_v55 = vpop.f32.mrb[36].mxu0 }
 0x428   : > { %v4772_v20 = vadd.f32 %v3960_v55, %v6398_v37  ;;  %v3962_v13 = vpop.f32.mrb[37].mxu0 }
 0x429   : > { %v4773_v2 = vadd.f32 %v3962_v13, %v6401_v34  ;;  %v3964_v18 = vpop.f32.mrb[38].mxu0 }
 0x42a   : > { %v4774_v60 = vadd.f32 %v3964_v18, %v6398_v37  ;;  %v3966_v56 = vpop.f32.mrb[39].mxu0 }
 0x42b   : > { %v4720_v33 = vpack.c.bf16 %v4773_v2, %v4772_v20  ;;  %v4775_v61 = vadd.f32 %v3966_v56, %v6401_v34 }
 0x42d   : > { %4239 = vst [vmem:[%s6409_s15 + $0x90] sm:$0xff] %v4720_v33  ;;  %v4721_v25 = vpack.c.bf16 %v4775_v61, %v4774_v60 }
 0x42f   : > { %4240 = vst [vmem:[%s6409_s15 + $0x98] sm:$0xff] %v4721_v25  ;;  %v3970_v23 = vpop.f32.mrb[40].mxu0 }
 0x430   : > { %v4776_v0 = vadd.f32 %v3970_v23, %v6398_v37  ;;  %v3972_v42 = vpop.f32.mrb[41].mxu0 }
 0x431   : > { %v4777_v7 = vadd.f32 %v3972_v42, %v6401_v34  ;;  %v3974_v40 = vpop.f32.mrb[42].mxu0 }
 0x432   : > { %v4778_v21 = vadd.f32 %v3974_v40, %v6398_v37  ;;  %v3976_v14 = vpop.f32.mrb[43].mxu0 }
 0x433   : > { %v4722_v62 = vpack.c.bf16 %v4777_v7, %v4776_v0  ;;  %v4779_v36 = vadd.f32 %v3976_v14, %v6401_v34 }
 0x435   : > { %4241 = vst [vmem:[%s6409_s15 + $0xa0] sm:$0xff] %v4722_v62  ;;  %v4723_v4 = vpack.c.bf16 %v4779_v36, %v4778_v21 }
 0x437   : > { %4242 = vst [vmem:[%s6409_s15 + $0xa8] sm:$0xff] %v4723_v4  ;;  %v3980_v43 = vpop.f32.mrb[44].mxu0 }
 0x438   : > { %v4780_v8 = vadd.f32 %v3980_v43, %v6398_v37  ;;  %v3982_v44 = vpop.f32.mrb[45].mxu0 }
 0x439   : > { %v4781_v59 = vadd.f32 %v3982_v44, %v6401_v34  ;;  %v3984_v28 = vpop.f32.mrb[46].mxu0 }
 0x43a   : > { %v4782_v1 = vadd.f32 %v3984_v28, %v6398_v37  ;;  %v3986_v9 = vpop.f32.mrb[47].mxu0 }
 0x43b   : > { %v4724_v11 = vpack.c.bf16 %v4781_v59, %v4780_v8  ;;  %v4783_v6 = vadd.f32 %v3986_v9, %v6401_v34 }
 0x43d   : > { %4243 = vst [vmem:[%s6409_s15 + $0xb0] sm:$0xff] %v4724_v11  ;;  %v4725_v15 = vpack.c.bf16 %v4783_v6, %v4782_v1 }
 0x43f   : > { %4244 = vst [vmem:[%s6409_s15 + $0xb8] sm:$0xff] %v4725_v15  ;;  %v3990_v16 = vpop.f32.mrb[48].mxu0 }
 0x440   : > { %v4784_v45 = vadd.f32 %v3990_v16, %v6398_v37  ;;  %v3992_v10 = vpop.f32.mrb[49].mxu0 }
 0x441   : > { %v4785_v63 = vadd.f32 %v3992_v10, %v6401_v34  ;;  %v3994_v29 = vpop.f32.mrb[50].mxu0 }
 0x442   : > { %v4786_v31 = vadd.f32 %v3994_v29, %v6398_v37  ;;  %v3996_v47 = vpop.f32.mrb[51].mxu0 }
 0x443   : > { %v4726_v50 = vpack.c.bf16 %v4785_v63, %v4784_v45  ;;  %v4787_v24 = vadd.f32 %v3996_v47, %v6401_v34 }
 0x445   : > { %4245 = vst [vmem:[%s6409_s15 + $0xc0] sm:$0xff] %v4726_v50  ;;  %v4727_v41 = vpack.c.bf16 %v4787_v24, %v4786_v31 }
 0x447   : > { %4246 = vst [vmem:[%s6409_s15 + $0xc8] sm:$0xff] %v4727_v41  ;;  %v4000_v35 = vpop.f32.mrb[52].mxu0 }
 0x448   : > { %v4788_v39 = vadd.f32 %v4000_v35, %v6398_v37  ;;  %v4002_v5 = vpop.f32.mrb[53].mxu0 }
 0x449   : > { %v4789_v58 = vadd.f32 %v4002_v5, %v6401_v34  ;;  %v4004_v54 = vpop.f32.mrb[54].mxu0 }
 0x44a   : > { %v4790_v53 = vadd.f32 %v4004_v54, %v6398_v37  ;;  %v4006_v46 = vpop.f32.mrb[55].mxu0 }
 0x44b   : > { %v4728_v57 = vpack.c.bf16 %v4789_v58, %v4788_v39  ;;  %v4791_v32 = vadd.f32 %v4006_v46, %v6401_v34 }
 0x44d   : > { %4247 = vst [vmem:[%s6409_s15 + $0xd0] sm:$0xff] %v4728_v57  ;;  %v4729_v26 = vpack.c.bf16 %v4791_v32, %v4790_v53 }
 0x44f   : > { %4248 = vst [vmem:[%s6409_s15 + $0xd8] sm:$0xff] %v4729_v26  ;;  %v4010_v30 = vpop.f32.mrb[56].mxu0 }
 0x450   : > { %v4792_v27 = vadd.f32 %v4010_v30, %v6398_v37  ;;  %v4012_v38 = vpop.f32.mrb[57].mxu0 }
 0x451   : > { %v4793_v51 = vadd.f32 %v4012_v38, %v6401_v34  ;;  %v4014_v48 = vpop.f32.mrb[58].mxu0 }
 0x452   : > { %v4794_v49 = vadd.f32 %v4014_v48, %v6398_v37  ;;  %v4016_v22 = vpop.f32.mrb[59].mxu0 }
 0x453   : > { %v4730_v52 = vpack.c.bf16 %v4793_v51, %v4792_v27  ;;  %v4795_v3 = vadd.f32 %v4016_v22, %v6401_v34 }
 0x455   : > { %4249 = vst [vmem:[%s6409_s15 + $0xe0] sm:$0xff] %v4730_v52  ;;  %v4731_v17 = vpack.c.bf16 %v4795_v3, %v4794_v49 }
 0x457   : > { %4250 = vst [vmem:[%s6409_s15 + $0xe8] sm:$0xff] %v4731_v17  ;;  %v4020_v19 = vpop.f32.mrb[60].mxu0 }
 0x458   : > { %v4796_v12 = vadd.f32 %v4020_v19, %v6398_v37  ;;  %v4022_v55 = vpop.f32.mrb[61].mxu0 }
 0x459   : > { %v4797_v20 = vadd.f32 %v4022_v55, %v6401_v34  ;;  %v4024_v13 = vpop.f32.mrb[62].mxu0 }
 0x45a   : > { %v4798_v2 = vadd.f32 %v4024_v13, %v6398_v37  ;;  %v4026_v18 = vpop.f32.mrb[63].mxu0 }
 0x45b   : > { %v4732_v60 = vpack.c.bf16 %v4797_v20, %v4796_v12  ;;  %v4799_v56 = vadd.f32 %v4026_v18, %v6401_v34 }
 0x45d   : > { %4251 = vst [vmem:[%s6409_s15 + $0xf0] sm:$0xff] %v4732_v60  ;;  %v4733_v33 = vpack.c.bf16 %v4799_v56, %v4798_v2 }
 0x45f   : > { %4252 = vst [vmem:[%s6409_s15 + $0xf8] sm:$0xff] %v4733_v33 }
 0x460   : > { %5437 = shalt.err (!%p5434_p2)
}
 0x461   : > { %s5438_s26 = scalar_lea.hbm %s6506_s7, 4096  ;;  %s5442_s10 = scalar_lea.hbm %s6559_s5, 8192 }
 0x462   : > { %p5439_p13 = scmp.ne.s32.totalorder %s6506_s7, %s5438_s26  ;;  %p5443_p4 = scmp.lt.u32.totalorder %s6506_s7, %s6559_s5 }
 0x463   : > { %p5444_p7 = scmp.lt.u32.totalorder %s5442_s10, %s5438_s26  ;;  %p5446_p11 = scmp.lt.u32.totalorder %s5438_s26, %s6506_s7 }
 0x464   : > { %p5440_p6 = pnand %p5439_p13, %p6573_p0 }
 0x465   : > { %p5445_p8 = por %p5444_p7, %p5443_p4 }
 0x466   : > { %p5441_p10 = pneg %p5440_p6 }
 0x467   : > { %p5447_p1 = por %p5446_p11, %p5445_p8 }
 0x469   : > { %p5448_p3 = pnand %p5447_p1, %p5441_p10 }
 0x46b   : > { %5451 = shalt.err (!%p5448_p3)
}
 0x46c   : > { %s5504_s9 = smov 128   ;;  %s5505_s11 = smov 8  }
 0x46d   : > { %5002 = dma.vmem_to_hbm [thread:$0]  (%p6573_p0), %s6508_s30, 4096, %s6506_s7, %s4254_s22, %s5504_s9, %s5504_s9, %s5505_s11  }
 0x46e PF: > { %s4283_s23 = sand.u32 1, %s5482_s18   ;;  %p6574_p5 = scmp.ne.s32.totalorder %s6564_s25, 0 }
 0x46f   : > { %p6575_p9 = scmp.ge.s32.totalorder %s5494_s21, 2  ;;  %s4284_s6 = scalar_lea.sflag [#allocation4], %s4283_s23 }
 0x471   : > { %p5016_p12 = pnand %p6575_p9, %p6574_p5 }
 0x473   : > { %5477 = dma.done.wait (!%p5016_p12), %s4284_s6, 4096  }
 0x474   : > { %5479 = vsyncadd (!%p5016_p12), %s4284_s6, 4294963200  ;;  %p19_p2 = scmp.ge.s32.totalorder %s5649_s16, 4   ;;  %s6576_s18 = smov %s5486_s19 }
 0x475   : > { %s6577_s19 = smov %s5490_s20  ;;  %s6578_s20 = smov %s5658_s27 }
 0x476   : > { %s6579_s21 = smov %s5649_s16  ;;  %21 = sbr.rel (!%p19_p2) target bundleno = 6 (0x6), region = 93 }
 0x47d   :  { %4289 = vsyncpa [#allocation3], 1 }
 0x47e   :  { %4291 = vsyncpa [#allocation3 + $0x1], 1 }
 0x47f   :  { %4292 = vsyncpa [#allocation6], 1 }
 0x480   :  { %4293 = vsyncpa [#allocation4], 1 }
 0x481   :  { %4295 = vsyncpa [#allocation4 + $0x1], 1 }

</bundles_post_ra>
